<compile_context>
chip_gen: v5e
topology: v5e:2x2
jax: 0.10.0
libtpu: 0.0.40
codegen_flags: <defaults>
</compile_context>

<pallas_src>
import jax
import jax.numpy as jnp
import numpy as np
from jax.experimental import pallas as pl
from jax.experimental.pallas import tpu as pltpu

K = 5  # every conv / transposed conv uses kernel_size=5, stride=1, no padding

# (in_channels, out_channels) per layer
ENC_CH = [(3, 2), (2, 1), (1, 1), (1, 1)]
DEC_CH = [(1, 1), (1, 1), (1, 2), (2, 3)]
N_PARAMS = 2 * (len(ENC_CH) + len(DEC_CH))          # 16 flattened param arrays
MAX_DEC_CIN = max(cin for cin, _ in DEC_CH)         # 2


# ---------------------------------------------------------------------------
# In-kernel helpers (operate on lists of per-channel (TB, L) f32 slabs; weights
# are flattened f32 vectors in SMEM, read as scalars with static indices).
# ---------------------------------------------------------------------------
def _tree_sum(terms):
    """Pairwise tree reduction: O(log n) dependent-add depth (VPU ILP)."""
    while len(terms) > 1:
        nxt = [terms[i] + terms[i + 1] for i in range(0, len(terms) - 1, 2)]
        if len(terms) % 2:
            nxt.append(terms[-1])
        terms = nxt
    return terms[0]


def _conv1d(chans, w_ref, b_ref, cin, cout, apply_tanh):
    """nn.Conv1d (VALID, stride 1). PyTorch weight layout (cout, cin, K)."""
    Lout = chans[0].shape[-1] - K + 1
    # Hoist the shifted windows: one lane-shift per (ci, k), reused across co.
    shifted = [[chans[ci][:, k:k + Lout] for k in range(K)] for ci in range(cin)]
    outs = []
    for co in range(cout):
        terms = [w_ref[(co * cin + ci) * K + k] * shifted[ci][k]
                 for ci in range(cin) for k in range(K)]
        acc = _tree_sum(terms) + b_ref[co]
        outs.append(jnp.tanh(acc) if apply_tanh else acc)
    return outs


def _convt1d(chans, w_ref, b_ref, cin, cout, apply_tanh, pad_ref):
    """nn.ConvTranspose1d (stride 1, no padding) == full conv with flipped taps.
    PyTorch weight layout (cin, cout, K).  `pad_ref` is a persistent VMEM
    scratch (MAX_DEC_CIN, TB, LP) zero-filled at the start of each grid step;
    channel interiors are written at lane offset K-1 and shifted windows are
    read back (replaces per-layer lane concatenation)."""
    Lin = chans[0].shape[-1]
    Lout = Lin + K - 1
    for ci in range(cin):
        pad_ref[ci, :, K - 1:K - 1 + Lin] = chans[ci]
    # Hoisted shifted windows, reused across output channels.
    shifted = [[pad_ref[ci, :, k:k + Lout] for k in range(K)] for ci in range(cin)]
    outs = []
    for co in range(cout):
        terms = [w_ref[(ci * cout + co) * K + (K - 1 - k)] * shifted[ci][k]
                 for ci in range(cin) for k in range(K)]
        acc = _tree_sum(terms) + b_ref[co]
        outs.append(jnp.tanh(acc) if apply_tanh else acc)
    return outs


# ---------------------------------------------------------------------------
# The kernel: full encoder + decoder hot path for one batch tile.
# ---------------------------------------------------------------------------
def autoencoder_kernel(x_ref, *refs):
    # x_ref: (TB, 3, L) in VMEM (io dtype); refs = 16 flattened param refs
    # (SMEM), then out_ref (TB, 3, L) in VMEM, then pad scratch (VMEM f32).
    param_refs = refs[:N_PARAMS]
    out_ref = refs[N_PARAMS]
    pad_ref = refs[N_PARAMS + 1]

    # Zero the transposed-conv padding scratch once per grid step (it persists
    # across steps; within a step interiors only grow rightward so one zeroing
    # suffices for all decoder layers).
    pad_ref[...] = jnp.zeros_like(pad_ref)

    # Channel-major (TB, L) slabs; accumulate in f32 regardless of I/O dtype.
    xb = x_ref[...].astype(jnp.float32)
    chans = [xb[:, ci, :] for ci in range(3)]

    idx = 0
    # encoder: Conv1d + Tanh, four times
    for (cin, cout) in ENC_CH:
        w_ref, b_ref = param_refs[idx], param_refs[idx + 1]
        idx += 2
        chans = _conv1d(chans, w_ref, b_ref, cin, cout, apply_tanh=True)

    # decoder: ConvTranspose1d (+Tanh on all but the last layer)
    for li, (cin, cout) in enumerate(DEC_CH):
        w_ref, b_ref = param_refs[idx], param_refs[idx + 1]
        idx += 2
        chans = _convt1d(chans, w_ref, b_ref, cin, cout,
                         apply_tanh=(li < len(DEC_CH) - 1), pad_ref=pad_ref)

    for co in range(3):
        out_ref[:, co, :] = chans[co].astype(out_ref.dtype)


# ---------------------------------------------------------------------------
# Wrapper / parameter setup (plain-JAX glue)
# ---------------------------------------------------------------------------
def init_params(key):
    params = []
    for (cin, cout) in ENC_CH:                       # Conv1d: weight (cout,cin,K)
        key, kw, kb = jax.random.split(key, 3)
        bound = 1.0 / np.sqrt(cin * K)
        w = jax.random.uniform(kw, (cout, cin, K), jnp.float32, -bound, bound)
        b = jax.random.uniform(kb, (cout,), jnp.float32, -bound, bound)
        params.append((w, b))
    for (cin, cout) in DEC_CH:                       # ConvTranspose1d: weight (cin,cout,K)
        key, kw, kb = jax.random.split(key, 3)
        bound = 1.0 / np.sqrt(cin * K)
        w = jax.random.uniform(kw, (cin, cout, K), jnp.float32, -bound, bound)
        b = jax.random.uniform(kb, (cout,), jnp.float32, -bound, bound)
        params.append((w, b))
    return params


def autoencoder_forward(x, params, *, batch_tile=8, io_dtype=jnp.float32):
    """x: (B, L, 3) like the PyTorch module input; returns (B, 3, L)."""
    B, L, C = x.shape
    assert C == 3 and L - 4 * len(ENC_CH) >= 1

    # The module's own transpose(1, 2): (B, L, 3) -> (B, 3, L).  The kernel
    # consumes and produces (B, 3, L) directly, so no output transpose is paid.
    x_b3l = jnp.transpose(x, (0, 2, 1)).astype(io_dtype)

    TB = batch_tile
    Bp = ((B + TB - 1) // TB) * TB
    if Bp != B:
        x_b3l = jnp.pad(x_b3l, ((0, Bp - B), (0, 0), (0, 0)))

    flat_params = []
    for w, b in params:
        flat_params.append(w.reshape(-1).astype(jnp.float32))
        flat_params.append(b.reshape(-1).astype(jnp.float32))

    LP = L + 2 * (K - 1)          # scratch lane extent (covers widest decoder layer)
    nb = Bp // TB

    out = pl.pallas_call(
        autoencoder_kernel,
        out_shape=jax.ShapeDtypeStruct((Bp, 3, L), io_dtype),
        grid=(nb,),
        in_specs=[pl.BlockSpec((TB, 3, L), lambda i: (i, 0, 0))]
                 + [pl.BlockSpec(memory_space=pltpu.MemorySpace.SMEM)] * N_PARAMS,
        out_specs=pl.BlockSpec((TB, 3, L), lambda i: (i, 0, 0)),
        scratch_shapes=[pltpu.VMEM((MAX_DEC_CIN, TB, LP), jnp.float32)],
        compiler_params=pltpu.CompilerParams(
            dimension_semantics=("parallel",),       # shards grid across TCs on v7x
            vmem_limit_bytes=32 * 1024 * 1024),      # explicit; safe on v5e/v6e/v7x
    )(x_b3l, *flat_params)

    if Bp != B:
        out = out[:B]
    return out


# ---------------------------------------------------------------------------
# Pure-JAX reference (for correctness check only)
# ---------------------------------------------------------------------------
def reference_forward(x, params):
    h = jnp.transpose(x, (0, 2, 1))                            # (B, 3, L)
    for i, (cin, cout) in enumerate(ENC_CH):
        w, b = params[i]
        h = jax.lax.conv_general_dilated(h, w, (1,), 'VALID',
                                         dimension_numbers=('NCH', 'OIH', 'NCH'))
        h = jnp.tanh(h + b[None, :, None])
    for j, (cin, cout) in enumerate(DEC_CH):
        w, b = params[len(ENC_CH) + j]
        wt = jnp.transpose(jnp.flip(w, axis=-1), (1, 0, 2))    # (cout, cin, K)
        h = jax.lax.conv_general_dilated(h, wt, (1,), [(K - 1, K - 1)],
                                         dimension_numbers=('NCH', 'OIH', 'NCH'))
        h = h + b[None, :, None]
        if j < len(DEC_CH) - 1:
            h = jnp.tanh(h)
    return h


if __name__ == "__main__":
    key = jax.random.PRNGKey(0)
    kp, kx = jax.random.split(key)
    params = init_params(kp)

    # small but lane-dense shapes: L multiple of 128, B multiple of the tile
    B, L = 16, 128
    x = jax.random.normal(kx, (B, L, 3), jnp.float32)

    ref = jax.block_until_ready(reference_forward(x, params))

    # f32 I/O path (matches PyTorch numerics)
    out = jax.block_until_ready(autoencoder_forward(x, params, batch_tile=8))
    assert out.shape == (B, 3, L)
    np.testing.assert_allclose(np.asarray(out), np.asarray(ref),
                               rtol=1e-4, atol=1e-4)

    # bf16 HBM-facing I/O path (f32 accumulation in-kernel) — looser tolerance
    out_bf16 = jax.block_until_ready(
        autoencoder_forward(x, params, batch_tile=8, io_dtype=jnp.bfloat16))
    np.testing.assert_allclose(np.asarray(out_bf16, dtype=np.float32),
                               np.asarray(ref), rtol=5e-2, atol=5e-2)

    print("KERNEL_OK")
</pallas_src>

<mosaic_0001>
module attributes {stable_mosaic.version = 11 : i64} {
  func.func @autoencoder_kernel(%arg0: i32, %arg1: memref<8x3x128xf32, #tpu.memory_space<vmem>>, %arg2: memref<30xf32, #tpu.memory_space<smem>>, %arg3: memref<2xf32, #tpu.memory_space<smem>>, %arg4: memref<10xf32, #tpu.memory_space<smem>>, %arg5: memref<1xf32, #tpu.memory_space<smem>>, %arg6: memref<5xf32, #tpu.memory_space<smem>>, %arg7: memref<1xf32, #tpu.memory_space<smem>>, %arg8: memref<5xf32, #tpu.memory_space<smem>>, %arg9: memref<1xf32, #tpu.memory_space<smem>>, %arg10: memref<5xf32, #tpu.memory_space<smem>>, %arg11: memref<1xf32, #tpu.memory_space<smem>>, %arg12: memref<5xf32, #tpu.memory_space<smem>>, %arg13: memref<1xf32, #tpu.memory_space<smem>>, %arg14: memref<10xf32, #tpu.memory_space<smem>>, %arg15: memref<2xf32, #tpu.memory_space<smem>>, %arg16: memref<30xf32, #tpu.memory_space<smem>>, %arg17: memref<3xf32, #tpu.memory_space<smem>>, %arg18: memref<8x3x128xf32, #tpu.memory_space<vmem>>, %arg19: memref<2x8x136xf32, #tpu.memory_space<vmem>>) attributes {dimension_semantics = [#tpu.dimension_semantics<parallel>], iteration_bounds = array<i64: 2>, scalar_prefetch = 0 : i64, scratch_operands = 1 : i64, tpu.core_type = #tpu.core_type<tc>, window_params = [{transform_indices = @transform_0, window_bounds = array<i64: 8, 3, 128>}, {transform_indices = @transform_1, window_bounds = array<i64: 30>}, {transform_indices = @transform_2, window_bounds = array<i64: 2>}, {transform_indices = @transform_3, window_bounds = array<i64: 10>}, {transform_indices = @transform_4, window_bounds = array<i64: 1>}, {transform_indices = @transform_5, window_bounds = array<i64: 5>}, {transform_indices = @transform_6, window_bounds = array<i64: 1>}, {transform_indices = @transform_7, window_bounds = array<i64: 5>}, {transform_indices = @transform_8, window_bounds = array<i64: 1>}, {transform_indices = @transform_9, window_bounds = array<i64: 5>}, {transform_indices = @transform_10, window_bounds = array<i64: 1>}, {transform_indices = @transform_11, window_bounds = array<i64: 5>}, {transform_indices = @transform_12, window_bounds = array<i64: 1>}, {transform_indices = @transform_13, window_bounds = array<i64: 10>}, {transform_indices = @transform_14, window_bounds = array<i64: 2>}, {transform_indices = @transform_15, window_bounds = array<i64: 30>}, {transform_indices = @transform_16, window_bounds = array<i64: 3>}, {transform_indices = @transform_17, window_bounds = array<i64: 8, 3, 128>}]} {
    %cst = arith.constant 0.000000e+00 : f32
    %0 = vector.broadcast %cst : f32 to vector<2x8x136xf32>
    %c0 = arith.constant 0 : index
    %c0_0 = arith.constant 0 : index
    %c0_1 = arith.constant 0 : index
    %1 = vector.load %arg19[%c0, %c0_0, %c0_1] : memref<2x8x136xf32, #tpu.memory_space<vmem>>, vector<2x8x136xf32>
    tpu.vector_store %arg19[%c0, %c0_0, %c0_1], %0 {strides = array<i32>} : memref<2x8x136xf32, #tpu.memory_space<vmem>>, vector<2x8x136xf32>,
    %c0_2 = arith.constant 0 : index
    %c0_3 = arith.constant 0 : index
    %c0_4 = arith.constant 0 : index
    %2 = vector.load %arg1[%c0_2, %c0_3, %c0_4] : memref<8x3x128xf32, #tpu.memory_space<vmem>>, vector<8x3x128xf32>
    %3 = vector.extract_strided_slice %2 {offsets = [0, 0, 0], sizes = [8, 1, 128], strides = [1, 1, 1]} : vector<8x3x128xf32> to vector<8x1x128xf32>
    %4 = vector.shape_cast %3 : vector<8x1x128xf32> to vector<8x128xf32>
    %5 = vector.extract_strided_slice %2 {offsets = [0, 1, 0], sizes = [8, 1, 128], strides = [1, 1, 1]} : vector<8x3x128xf32> to vector<8x1x128xf32>
    %6 = vector.shape_cast %5 : vector<8x1x128xf32> to vector<8x128xf32>
    %7 = vector.extract_strided_slice %2 {offsets = [0, 2, 0], sizes = [8, 1, 128], strides = [1, 1, 1]} : vector<8x3x128xf32> to vector<8x1x128xf32>
    %8 = vector.shape_cast %7 : vector<8x1x128xf32> to vector<8x128xf32>
    %9 = vector.extract_strided_slice %4 {offsets = [0, 0], sizes = [8, 124], strides = [1, 1]} : vector<8x128xf32> to vector<8x124xf32>
    %10 = vector.extract_strided_slice %4 {offsets = [0, 1], sizes = [8, 124], strides = [1, 1]} : vector<8x128xf32> to vector<8x124xf32>
    %11 = vector.extract_strided_slice %4 {offsets = [0, 2], sizes = [8, 124], strides = [1, 1]} : vector<8x128xf32> to vector<8x124xf32>
    %12 = vector.extract_strided_slice %4 {offsets = [0, 3], sizes = [8, 124], strides = [1, 1]} : vector<8x128xf32> to vector<8x124xf32>
    %13 = vector.extract_strided_slice %4 {offsets = [0, 4], sizes = [8, 124], strides = [1, 1]} : vector<8x128xf32> to vector<8x124xf32>
    %14 = vector.extract_strided_slice %6 {offsets = [0, 0], sizes = [8, 124], strides = [1, 1]} : vector<8x128xf32> to vector<8x124xf32>
    %15 = vector.extract_strided_slice %6 {offsets = [0, 1], sizes = [8, 124], strides = [1, 1]} : vector<8x128xf32> to vector<8x124xf32>
    %16 = vector.extract_strided_slice %6 {offsets = [0, 2], sizes = [8, 124], strides = [1, 1]} : vector<8x128xf32> to vector<8x124xf32>
    %17 = vector.extract_strided_slice %6 {offsets = [0, 3], sizes = [8, 124], strides = [1, 1]} : vector<8x128xf32> to vector<8x124xf32>
    %18 = vector.extract_strided_slice %6 {offsets = [0, 4], sizes = [8, 124], strides = [1, 1]} : vector<8x128xf32> to vector<8x124xf32>
    %19 = vector.extract_strided_slice %8 {offsets = [0, 0], sizes = [8, 124], strides = [1, 1]} : vector<8x128xf32> to vector<8x124xf32>
    %20 = vector.extract_strided_slice %8 {offsets = [0, 1], sizes = [8, 124], strides = [1, 1]} : vector<8x128xf32> to vector<8x124xf32>
    %21 = vector.extract_strided_slice %8 {offsets = [0, 2], sizes = [8, 124], strides = [1, 1]} : vector<8x128xf32> to vector<8x124xf32>
    %22 = vector.extract_strided_slice %8 {offsets = [0, 3], sizes = [8, 124], strides = [1, 1]} : vector<8x128xf32> to vector<8x124xf32>
    %23 = vector.extract_strided_slice %8 {offsets = [0, 4], sizes = [8, 124], strides = [1, 1]} : vector<8x128xf32> to vector<8x124xf32>
    %c0_5 = arith.constant 0 : index
    %24 = memref.load %arg2[%c0_5] : memref<30xf32, #tpu.memory_space<smem>>
    %25 = vector.broadcast %24 : f32 to vector<8x124xf32>
    %26 = arith.mulf %25, %9 : vector<8x124xf32>
    %c1 = arith.constant 1 : index
    %27 = memref.load %arg2[%c1] : memref<30xf32, #tpu.memory_space<smem>>
    %28 = vector.broadcast %27 : f32 to vector<8x124xf32>
    %29 = arith.mulf %28, %10 : vector<8x124xf32>
    %c2 = arith.constant 2 : index
    %30 = memref.load %arg2[%c2] : memref<30xf32, #tpu.memory_space<smem>>
    %31 = vector.broadcast %30 : f32 to vector<8x124xf32>
    %32 = arith.mulf %31, %11 : vector<8x124xf32>
    %c3 = arith.constant 3 : index
    %33 = memref.load %arg2[%c3] : memref<30xf32, #tpu.memory_space<smem>>
    %34 = vector.broadcast %33 : f32 to vector<8x124xf32>
    %35 = arith.mulf %34, %12 : vector<8x124xf32>
    %c4 = arith.constant 4 : index
    %36 = memref.load %arg2[%c4] : memref<30xf32, #tpu.memory_space<smem>>
    %37 = vector.broadcast %36 : f32 to vector<8x124xf32>
    %38 = arith.mulf %37, %13 : vector<8x124xf32>
    %c5 = arith.constant 5 : index
    %39 = memref.load %arg2[%c5] : memref<30xf32, #tpu.memory_space<smem>>
    %40 = vector.broadcast %39 : f32 to vector<8x124xf32>
    %41 = arith.mulf %40, %14 : vector<8x124xf32>
    %c6 = arith.constant 6 : index
    %42 = memref.load %arg2[%c6] : memref<30xf32, #tpu.memory_space<smem>>
    %43 = vector.broadcast %42 : f32 to vector<8x124xf32>
    %44 = arith.mulf %43, %15 : vector<8x124xf32>
    %c7 = arith.constant 7 : index
    %45 = memref.load %arg2[%c7] : memref<30xf32, #tpu.memory_space<smem>>
    %46 = vector.broadcast %45 : f32 to vector<8x124xf32>
    %47 = arith.mulf %46, %16 : vector<8x124xf32>
    %c8 = arith.constant 8 : index
    %48 = memref.load %arg2[%c8] : memref<30xf32, #tpu.memory_space<smem>>
    %49 = vector.broadcast %48 : f32 to vector<8x124xf32>
    %50 = arith.mulf %49, %17 : vector<8x124xf32>
    %c9 = arith.constant 9 : index
    %51 = memref.load %arg2[%c9] : memref<30xf32, #tpu.memory_space<smem>>
    %52 = vector.broadcast %51 : f32 to vector<8x124xf32>
    %53 = arith.mulf %52, %18 : vector<8x124xf32>
    %c10 = arith.constant 10 : index
    %54 = memref.load %arg2[%c10] : memref<30xf32, #tpu.memory_space<smem>>
    %55 = vector.broadcast %54 : f32 to vector<8x124xf32>
    %56 = arith.mulf %55, %19 : vector<8x124xf32>
    %c11 = arith.constant 11 : index
    %57 = memref.load %arg2[%c11] : memref<30xf32, #tpu.memory_space<smem>>
    %58 = vector.broadcast %57 : f32 to vector<8x124xf32>
    %59 = arith.mulf %58, %20 : vector<8x124xf32>
    %c12 = arith.constant 12 : index
    %60 = memref.load %arg2[%c12] : memref<30xf32, #tpu.memory_space<smem>>
    %61 = vector.broadcast %60 : f32 to vector<8x124xf32>
    %62 = arith.mulf %61, %21 : vector<8x124xf32>
    %c13 = arith.constant 13 : index
    %63 = memref.load %arg2[%c13] : memref<30xf32, #tpu.memory_space<smem>>
    %64 = vector.broadcast %63 : f32 to vector<8x124xf32>
    %65 = arith.mulf %64, %22 : vector<8x124xf32>
    %c14 = arith.constant 14 : index
    %66 = memref.load %arg2[%c14] : memref<30xf32, #tpu.memory_space<smem>>
    %67 = vector.broadcast %66 : f32 to vector<8x124xf32>
    %68 = arith.mulf %67, %23 : vector<8x124xf32>
    %69 = arith.addf %26, %29 : vector<8x124xf32>
    %70 = arith.addf %32, %35 : vector<8x124xf32>
    %71 = arith.addf %38, %41 : vector<8x124xf32>
    %72 = arith.addf %44, %47 : vector<8x124xf32>
    %73 = arith.addf %50, %53 : vector<8x124xf32>
    %74 = arith.addf %56, %59 : vector<8x124xf32>
    %75 = arith.addf %62, %65 : vector<8x124xf32>
    %76 = arith.addf %69, %70 : vector<8x124xf32>
    %77 = arith.addf %71, %72 : vector<8x124xf32>
    %78 = arith.addf %73, %74 : vector<8x124xf32>
    %79 = arith.addf %75, %68 : vector<8x124xf32>
    %80 = arith.addf %76, %77 : vector<8x124xf32>
    %81 = arith.addf %78, %79 : vector<8x124xf32>
    %82 = arith.addf %80, %81 : vector<8x124xf32>
    %c0_6 = arith.constant 0 : index
    %83 = memref.load %arg3[%c0_6] : memref<2xf32, #tpu.memory_space<smem>>
    %84 = vector.broadcast %83 : f32 to vector<8x124xf32>
    %85 = arith.addf %82, %84 : vector<8x124xf32>
    %86 = math.tanh %85 : vector<8x124xf32>
    %c15 = arith.constant 15 : index
    %87 = memref.load %arg2[%c15] : memref<30xf32, #tpu.memory_space<smem>>
    %88 = vector.broadcast %87 : f32 to vector<8x124xf32>
    %89 = arith.mulf %88, %9 : vector<8x124xf32>
    %c16 = arith.constant 16 : index
    %90 = memref.load %arg2[%c16] : memref<30xf32, #tpu.memory_space<smem>>
    %91 = vector.broadcast %90 : f32 to vector<8x124xf32>
    %92 = arith.mulf %91, %10 : vector<8x124xf32>
    %c17 = arith.constant 17 : index
    %93 = memref.load %arg2[%c17] : memref<30xf32, #tpu.memory_space<smem>>
    %94 = vector.broadcast %93 : f32 to vector<8x124xf32>
    %95 = arith.mulf %94, %11 : vector<8x124xf32>
    %c18 = arith.constant 18 : index
    %96 = memref.load %arg2[%c18] : memref<30xf32, #tpu.memory_space<smem>>
    %97 = vector.broadcast %96 : f32 to vector<8x124xf32>
    %98 = arith.mulf %97, %12 : vector<8x124xf32>
    %c19 = arith.constant 19 : index
    %99 = memref.load %arg2[%c19] : memref<30xf32, #tpu.memory_space<smem>>
    %100 = vector.broadcast %99 : f32 to vector<8x124xf32>
    %101 = arith.mulf %100, %13 : vector<8x124xf32>
    %c20 = arith.constant 20 : index
    %102 = memref.load %arg2[%c20] : memref<30xf32, #tpu.memory_space<smem>>
    %103 = vector.broadcast %102 : f32 to vector<8x124xf32>
    %104 = arith.mulf %103, %14 : vector<8x124xf32>
    %c21 = arith.constant 21 : index
    %105 = memref.load %arg2[%c21] : memref<30xf32, #tpu.memory_space<smem>>
    %106 = vector.broadcast %105 : f32 to vector<8x124xf32>
    %107 = arith.mulf %106, %15 : vector<8x124xf32>
    %c22 = arith.constant 22 : index
    %108 = memref.load %arg2[%c22] : memref<30xf32, #tpu.memory_space<smem>>
    %109 = vector.broadcast %108 : f32 to vector<8x124xf32>
    %110 = arith.mulf %109, %16 : vector<8x124xf32>
    %c23 = arith.constant 23 : index
    %111 = memref.load %arg2[%c23] : memref<30xf32, #tpu.memory_space<smem>>
    %112 = vector.broadcast %111 : f32 to vector<8x124xf32>
    %113 = arith.mulf %112, %17 : vector<8x124xf32>
    %c24 = arith.constant 24 : index
    %114 = memref.load %arg2[%c24] : memref<30xf32, #tpu.memory_space<smem>>
    %115 = vector.broadcast %114 : f32 to vector<8x124xf32>
    %116 = arith.mulf %115, %18 : vector<8x124xf32>
    %c25 = arith.constant 25 : index
    %117 = memref.load %arg2[%c25] : memref<30xf32, #tpu.memory_space<smem>>
    %118 = vector.broadcast %117 : f32 to vector<8x124xf32>
    %119 = arith.mulf %118, %19 : vector<8x124xf32>
    %c26 = arith.constant 26 : index
    %120 = memref.load %arg2[%c26] : memref<30xf32, #tpu.memory_space<smem>>
    %121 = vector.broadcast %120 : f32 to vector<8x124xf32>
    %122 = arith.mulf %121, %20 : vector<8x124xf32>
    %c27 = arith.constant 27 : index
    %123 = memref.load %arg2[%c27] : memref<30xf32, #tpu.memory_space<smem>>
    %124 = vector.broadcast %123 : f32 to vector<8x124xf32>
    %125 = arith.mulf %124, %21 : vector<8x124xf32>
    %c28 = arith.constant 28 : index
    %126 = memref.load %arg2[%c28] : memref<30xf32, #tpu.memory_space<smem>>
    %127 = vector.broadcast %126 : f32 to vector<8x124xf32>
    %128 = arith.mulf %127, %22 : vector<8x124xf32>
    %c29 = arith.constant 29 : index
    %129 = memref.load %arg2[%c29] : memref<30xf32, #tpu.memory_space<smem>>
    %130 = vector.broadcast %129 : f32 to vector<8x124xf32>
    %131 = arith.mulf %130, %23 : vector<8x124xf32>
    %132 = arith.addf %89, %92 : vector<8x124xf32>
    %133 = arith.addf %95, %98 : vector<8x124xf32>
    %134 = arith.addf %101, %104 : vector<8x124xf32>
    %135 = arith.addf %107, %110 : vector<8x124xf32>
    %136 = arith.addf %113, %116 : vector<8x124xf32>
    %137 = arith.addf %119, %122 : vector<8x124xf32>
    %138 = arith.addf %125, %128 : vector<8x124xf32>
    %139 = arith.addf %132, %133 : vector<8x124xf32>
    %140 = arith.addf %134, %135 : vector<8x124xf32>
    %141 = arith.addf %136, %137 : vector<8x124xf32>
    %142 = arith.addf %138, %131 : vector<8x124xf32>
    %143 = arith.addf %139, %140 : vector<8x124xf32>
    %144 = arith.addf %141, %142 : vector<8x124xf32>
    %145 = arith.addf %143, %144 : vector<8x124xf32>
    %c1_7 = arith.constant 1 : index
    %146 = memref.load %arg3[%c1_7] : memref<2xf32, #tpu.memory_space<smem>>
    %147 = vector.broadcast %146 : f32 to vector<8x124xf32>
    %148 = arith.addf %145, %147 : vector<8x124xf32>
    %149 = math.tanh %148 : vector<8x124xf32>
    %150 = vector.extract_strided_slice %86 {offsets = [0, 0], sizes = [8, 120], strides = [1, 1]} : vector<8x124xf32> to vector<8x120xf32>
    %151 = vector.extract_strided_slice %86 {offsets = [0, 1], sizes = [8, 120], strides = [1, 1]} : vector<8x124xf32> to vector<8x120xf32>
    %152 = vector.extract_strided_slice %86 {offsets = [0, 2], sizes = [8, 120], strides = [1, 1]} : vector<8x124xf32> to vector<8x120xf32>
    %153 = vector.extract_strided_slice %86 {offsets = [0, 3], sizes = [8, 120], strides = [1, 1]} : vector<8x124xf32> to vector<8x120xf32>
    %154 = vector.extract_strided_slice %86 {offsets = [0, 4], sizes = [8, 120], strides = [1, 1]} : vector<8x124xf32> to vector<8x120xf32>
    %155 = vector.extract_strided_slice %149 {offsets = [0, 0], sizes = [8, 120], strides = [1, 1]} : vector<8x124xf32> to vector<8x120xf32>
    %156 = vector.extract_strided_slice %149 {offsets = [0, 1], sizes = [8, 120], strides = [1, 1]} : vector<8x124xf32> to vector<8x120xf32>
    %157 = vector.extract_strided_slice %149 {offsets = [0, 2], sizes = [8, 120], strides = [1, 1]} : vector<8x124xf32> to vector<8x120xf32>
    %158 = vector.extract_strided_slice %149 {offsets = [0, 3], sizes = [8, 120], strides = [1, 1]} : vector<8x124xf32> to vector<8x120xf32>
    %159 = vector.extract_strided_slice %149 {offsets = [0, 4], sizes = [8, 120], strides = [1, 1]} : vector<8x124xf32> to vector<8x120xf32>
    %c0_8 = arith.constant 0 : index
    %160 = memref.load %arg4[%c0_8] : memref<10xf32, #tpu.memory_space<smem>>
    %161 = vector.broadcast %160 : f32 to vector<8x120xf32>
    %162 = arith.mulf %161, %150 : vector<8x120xf32>
    %c1_9 = arith.constant 1 : index
    %163 = memref.load %arg4[%c1_9] : memref<10xf32, #tpu.memory_space<smem>>
    %164 = vector.broadcast %163 : f32 to vector<8x120xf32>
    %165 = arith.mulf %164, %151 : vector<8x120xf32>
    %c2_10 = arith.constant 2 : index
    %166 = memref.load %arg4[%c2_10] : memref<10xf32, #tpu.memory_space<smem>>
    %167 = vector.broadcast %166 : f32 to vector<8x120xf32>
    %168 = arith.mulf %167, %152 : vector<8x120xf32>
    %c3_11 = arith.constant 3 : index
    %169 = memref.load %arg4[%c3_11] : memref<10xf32, #tpu.memory_space<smem>>
    %170 = vector.broadcast %169 : f32 to vector<8x120xf32>
    %171 = arith.mulf %170, %153 : vector<8x120xf32>
    %c4_12 = arith.constant 4 : index
    %172 = memref.load %arg4[%c4_12] : memref<10xf32, #tpu.memory_space<smem>>
    %173 = vector.broadcast %172 : f32 to vector<8x120xf32>
    %174 = arith.mulf %173, %154 : vector<8x120xf32>
    %c5_13 = arith.constant 5 : index
    %175 = memref.load %arg4[%c5_13] : memref<10xf32, #tpu.memory_space<smem>>
    %176 = vector.broadcast %175 : f32 to vector<8x120xf32>
    %177 = arith.mulf %176, %155 : vector<8x120xf32>
    %c6_14 = arith.constant 6 : index
    %178 = memref.load %arg4[%c6_14] : memref<10xf32, #tpu.memory_space<smem>>
    %179 = vector.broadcast %178 : f32 to vector<8x120xf32>
    %180 = arith.mulf %179, %156 : vector<8x120xf32>
    %c7_15 = arith.constant 7 : index
    %181 = memref.load %arg4[%c7_15] : memref<10xf32, #tpu.memory_space<smem>>
    %182 = vector.broadcast %181 : f32 to vector<8x120xf32>
    %183 = arith.mulf %182, %157 : vector<8x120xf32>
    %c8_16 = arith.constant 8 : index
    %184 = memref.load %arg4[%c8_16] : memref<10xf32, #tpu.memory_space<smem>>
    %185 = vector.broadcast %184 : f32 to vector<8x120xf32>
    %186 = arith.mulf %185, %158 : vector<8x120xf32>
    %c9_17 = arith.constant 9 : index
    %187 = memref.load %arg4[%c9_17] : memref<10xf32, #tpu.memory_space<smem>>
    %188 = vector.broadcast %187 : f32 to vector<8x120xf32>
    %189 = arith.mulf %188, %159 : vector<8x120xf32>
    %190 = arith.addf %162, %165 : vector<8x120xf32>
    %191 = arith.addf %168, %171 : vector<8x120xf32>
    %192 = arith.addf %174, %177 : vector<8x120xf32>
    %193 = arith.addf %180, %183 : vector<8x120xf32>
    %194 = arith.addf %186, %189 : vector<8x120xf32>
    %195 = arith.addf %190, %191 : vector<8x120xf32>
    %196 = arith.addf %192, %193 : vector<8x120xf32>
    %197 = arith.addf %195, %196 : vector<8x120xf32>
    %198 = arith.addf %197, %194 : vector<8x120xf32>
    %c0_18 = arith.constant 0 : index
    %199 = memref.load %arg5[%c0_18] : memref<1xf32, #tpu.memory_space<smem>>
    %200 = vector.broadcast %199 : f32 to vector<8x120xf32>
    %201 = arith.addf %198, %200 : vector<8x120xf32>
    %202 = math.tanh %201 : vector<8x120xf32>
    %203 = vector.extract_strided_slice %202 {offsets = [0, 0], sizes = [8, 116], strides = [1, 1]} : vector<8x120xf32> to vector<8x116xf32>
    %204 = vector.extract_strided_slice %202 {offsets = [0, 1], sizes = [8, 116], strides = [1, 1]} : vector<8x120xf32> to vector<8x116xf32>
    %205 = vector.extract_strided_slice %202 {offsets = [0, 2], sizes = [8, 116], strides = [1, 1]} : vector<8x120xf32> to vector<8x116xf32>
    %206 = vector.extract_strided_slice %202 {offsets = [0, 3], sizes = [8, 116], strides = [1, 1]} : vector<8x120xf32> to vector<8x116xf32>
    %207 = vector.extract_strided_slice %202 {offsets = [0, 4], sizes = [8, 116], strides = [1, 1]} : vector<8x120xf32> to vector<8x116xf32>
    %c0_19 = arith.constant 0 : index
    %208 = memref.load %arg6[%c0_19] : memref<5xf32, #tpu.memory_space<smem>>
    %209 = vector.broadcast %208 : f32 to vector<8x116xf32>
    %210 = arith.mulf %209, %203 : vector<8x116xf32>
    %c1_20 = arith.constant 1 : index
    %211 = memref.load %arg6[%c1_20] : memref<5xf32, #tpu.memory_space<smem>>
    %212 = vector.broadcast %211 : f32 to vector<8x116xf32>
    %213 = arith.mulf %212, %204 : vector<8x116xf32>
    %c2_21 = arith.constant 2 : index
    %214 = memref.load %arg6[%c2_21] : memref<5xf32, #tpu.memory_space<smem>>
    %215 = vector.broadcast %214 : f32 to vector<8x116xf32>
    %216 = arith.mulf %215, %205 : vector<8x116xf32>
    %c3_22 = arith.constant 3 : index
    %217 = memref.load %arg6[%c3_22] : memref<5xf32, #tpu.memory_space<smem>>
    %218 = vector.broadcast %217 : f32 to vector<8x116xf32>
    %219 = arith.mulf %218, %206 : vector<8x116xf32>
    %c4_23 = arith.constant 4 : index
    %220 = memref.load %arg6[%c4_23] : memref<5xf32, #tpu.memory_space<smem>>
    %221 = vector.broadcast %220 : f32 to vector<8x116xf32>
    %222 = arith.mulf %221, %207 : vector<8x116xf32>
    %223 = arith.addf %210, %213 : vector<8x116xf32>
    %224 = arith.addf %216, %219 : vector<8x116xf32>
    %225 = arith.addf %223, %224 : vector<8x116xf32>
    %226 = arith.addf %225, %222 : vector<8x116xf32>
    %c0_24 = arith.constant 0 : index
    %227 = memref.load %arg7[%c0_24] : memref<1xf32, #tpu.memory_space<smem>>
    %228 = vector.broadcast %227 : f32 to vector<8x116xf32>
    %229 = arith.addf %226, %228 : vector<8x116xf32>
    %230 = math.tanh %229 : vector<8x116xf32>
    %231 = vector.extract_strided_slice %230 {offsets = [0, 0], sizes = [8, 112], strides = [1, 1]} : vector<8x116xf32> to vector<8x112xf32>
    %232 = vector.extract_strided_slice %230 {offsets = [0, 1], sizes = [8, 112], strides = [1, 1]} : vector<8x116xf32> to vector<8x112xf32>
    %233 = vector.extract_strided_slice %230 {offsets = [0, 2], sizes = [8, 112], strides = [1, 1]} : vector<8x116xf32> to vector<8x112xf32>
    %234 = vector.extract_strided_slice %230 {offsets = [0, 3], sizes = [8, 112], strides = [1, 1]} : vector<8x116xf32> to vector<8x112xf32>
    %235 = vector.extract_strided_slice %230 {offsets = [0, 4], sizes = [8, 112], strides = [1, 1]} : vector<8x116xf32> to vector<8x112xf32>
    %c0_25 = arith.constant 0 : index
    %236 = memref.load %arg8[%c0_25] : memref<5xf32, #tpu.memory_space<smem>>
    %237 = vector.broadcast %236 : f32 to vector<8x112xf32>
    %238 = arith.mulf %237, %231 : vector<8x112xf32>
    %c1_26 = arith.constant 1 : index
    %239 = memref.load %arg8[%c1_26] : memref<5xf32, #tpu.memory_space<smem>>
    %240 = vector.broadcast %239 : f32 to vector<8x112xf32>
    %241 = arith.mulf %240, %232 : vector<8x112xf32>
    %c2_27 = arith.constant 2 : index
    %242 = memref.load %arg8[%c2_27] : memref<5xf32, #tpu.memory_space<smem>>
    %243 = vector.broadcast %242 : f32 to vector<8x112xf32>
    %244 = arith.mulf %243, %233 : vector<8x112xf32>
    %c3_28 = arith.constant 3 : index
    %245 = memref.load %arg8[%c3_28] : memref<5xf32, #tpu.memory_space<smem>>
    %246 = vector.broadcast %245 : f32 to vector<8x112xf32>
    %247 = arith.mulf %246, %234 : vector<8x112xf32>
    %c4_29 = arith.constant 4 : index
    %248 = memref.load %arg8[%c4_29] : memref<5xf32, #tpu.memory_space<smem>>
    %249 = vector.broadcast %248 : f32 to vector<8x112xf32>
    %250 = arith.mulf %249, %235 : vector<8x112xf32>
    %251 = arith.addf %238, %241 : vector<8x112xf32>
    %252 = arith.addf %244, %247 : vector<8x112xf32>
    %253 = arith.addf %251, %252 : vector<8x112xf32>
    %254 = arith.addf %253, %250 : vector<8x112xf32>
    %c0_30 = arith.constant 0 : index
    %255 = memref.load %arg9[%c0_30] : memref<1xf32, #tpu.memory_space<smem>>
    %256 = vector.broadcast %255 : f32 to vector<8x112xf32>
    %257 = arith.addf %254, %256 : vector<8x112xf32>
    %258 = math.tanh %257 : vector<8x112xf32>
    %c0_31 = arith.constant 0 : index
    %c0_32 = arith.constant 0 : index
    %c4_33 = arith.constant 4 : index
    %259 = vector.load %arg19[%c0_31, %c0_32, %c4_33] : memref<2x8x136xf32, #tpu.memory_space<vmem>>, vector<1x8x112xf32>
    %260 = vector.shape_cast %259 : vector<1x8x112xf32> to vector<8x112xf32>
    %261 = vector.shape_cast %258 : vector<8x112xf32> to vector<1x8x112xf32>
    tpu.vector_store %arg19[%c0_31, %c0_32, %c4_33], %261 {strides = array<i32>} : memref<2x8x136xf32, #tpu.memory_space<vmem>>, vector<1x8x112xf32>,
    %c0_34 = arith.constant 0 : index
    %c0_35 = arith.constant 0 : index
    %c0_36 = arith.constant 0 : index
    %262 = vector.load %arg19[%c0_34, %c0_35, %c0_36] : memref<2x8x136xf32, #tpu.memory_space<vmem>>, vector<1x8x116xf32>
    %263 = vector.shape_cast %262 : vector<1x8x116xf32> to vector<8x116xf32>
    %c0_37 = arith.constant 0 : index
    %c0_38 = arith.constant 0 : index
    %c1_39 = arith.constant 1 : index
    %264 = vector.load %arg19[%c0_37, %c0_38, %c1_39] : memref<2x8x136xf32, #tpu.memory_space<vmem>>, vector<1x8x116xf32>
    %265 = vector.shape_cast %264 : vector<1x8x116xf32> to vector<8x116xf32>
    %c0_40 = arith.constant 0 : index
    %c0_41 = arith.constant 0 : index
    %c2_42 = arith.constant 2 : index
    %266 = vector.load %arg19[%c0_40, %c0_41, %c2_42] : memref<2x8x136xf32, #tpu.memory_space<vmem>>, vector<1x8x116xf32>
    %267 = vector.shape_cast %266 : vector<1x8x116xf32> to vector<8x116xf32>
    %c0_43 = arith.constant 0 : index
    %c0_44 = arith.constant 0 : index
    %c3_45 = arith.constant 3 : index
    %268 = vector.load %arg19[%c0_43, %c0_44, %c3_45] : memref<2x8x136xf32, #tpu.memory_space<vmem>>, vector<1x8x116xf32>
    %269 = vector.shape_cast %268 : vector<1x8x116xf32> to vector<8x116xf32>
    %c0_46 = arith.constant 0 : index
    %c0_47 = arith.constant 0 : index
    %c4_48 = arith.constant 4 : index
    %270 = vector.load %arg19[%c0_46, %c0_47, %c4_48] : memref<2x8x136xf32, #tpu.memory_space<vmem>>, vector<1x8x116xf32>
    %271 = vector.shape_cast %270 : vector<1x8x116xf32> to vector<8x116xf32>
    %c4_49 = arith.constant 4 : index
    %272 = memref.load %arg10[%c4_49] : memref<5xf32, #tpu.memory_space<smem>>
    %273 = vector.broadcast %272 : f32 to vector<8x116xf32>
    %274 = arith.mulf %273, %263 : vector<8x116xf32>
    %c3_50 = arith.constant 3 : index
    %275 = memref.load %arg10[%c3_50] : memref<5xf32, #tpu.memory_space<smem>>
    %276 = vector.broadcast %275 : f32 to vector<8x116xf32>
    %277 = arith.mulf %276, %265 : vector<8x116xf32>
    %c2_51 = arith.constant 2 : index
    %278 = memref.load %arg10[%c2_51] : memref<5xf32, #tpu.memory_space<smem>>
    %279 = vector.broadcast %278 : f32 to vector<8x116xf32>
    %280 = arith.mulf %279, %267 : vector<8x116xf32>
    %c1_52 = arith.constant 1 : index
    %281 = memref.load %arg10[%c1_52] : memref<5xf32, #tpu.memory_space<smem>>
    %282 = vector.broadcast %281 : f32 to vector<8x116xf32>
    %283 = arith.mulf %282, %269 : vector<8x116xf32>
    %c0_53 = arith.constant 0 : index
    %284 = memref.load %arg10[%c0_53] : memref<5xf32, #tpu.memory_space<smem>>
    %285 = vector.broadcast %284 : f32 to vector<8x116xf32>
    %286 = arith.mulf %285, %271 : vector<8x116xf32>
    %287 = arith.addf %274, %277 : vector<8x116xf32>
    %288 = arith.addf %280, %283 : vector<8x116xf32>
    %289 = arith.addf %287, %288 : vector<8x116xf32>
    %290 = arith.addf %289, %286 : vector<8x116xf32>
    %c0_54 = arith.constant 0 : index
    %291 = memref.load %arg11[%c0_54] : memref<1xf32, #tpu.memory_space<smem>>
    %292 = vector.broadcast %291 : f32 to vector<8x116xf32>
    %293 = arith.addf %290, %292 : vector<8x116xf32>
    %294 = math.tanh %293 : vector<8x116xf32>
    %c0_55 = arith.constant 0 : index
    %c0_56 = arith.constant 0 : index
    %c4_57 = arith.constant 4 : index
    %295 = vector.load %arg19[%c0_55, %c0_56, %c4_57] : memref<2x8x136xf32, #tpu.memory_space<vmem>>, vector<1x8x116xf32>
    %296 = vector.shape_cast %295 : vector<1x8x116xf32> to vector<8x116xf32>
    %297 = vector.shape_cast %294 : vector<8x116xf32> to vector<1x8x116xf32>
    tpu.vector_store %arg19[%c0_55, %c0_56, %c4_57], %297 {strides = array<i32>} : memref<2x8x136xf32, #tpu.memory_space<vmem>>, vector<1x8x116xf32>,
    %c0_58 = arith.constant 0 : index
    %c0_59 = arith.constant 0 : index
    %c0_60 = arith.constant 0 : index
    %298 = vector.load %arg19[%c0_58, %c0_59, %c0_60] : memref<2x8x136xf32, #tpu.memory_space<vmem>>, vector<1x8x120xf32>
    %299 = vector.shape_cast %298 : vector<1x8x120xf32> to vector<8x120xf32>
    %c0_61 = arith.constant 0 : index
    %c0_62 = arith.constant 0 : index
    %c1_63 = arith.constant 1 : index
    %300 = vector.load %arg19[%c0_61, %c0_62, %c1_63] : memref<2x8x136xf32, #tpu.memory_space<vmem>>, vector<1x8x120xf32>
    %301 = vector.shape_cast %300 : vector<1x8x120xf32> to vector<8x120xf32>
    %c0_64 = arith.constant 0 : index
    %c0_65 = arith.constant 0 : index
    %c2_66 = arith.constant 2 : index
    %302 = vector.load %arg19[%c0_64, %c0_65, %c2_66] : memref<2x8x136xf32, #tpu.memory_space<vmem>>, vector<1x8x120xf32>
    %303 = vector.shape_cast %302 : vector<1x8x120xf32> to vector<8x120xf32>
    %c0_67 = arith.constant 0 : index
    %c0_68 = arith.constant 0 : index
    %c3_69 = arith.constant 3 : index
    %304 = vector.load %arg19[%c0_67, %c0_68, %c3_69] : memref<2x8x136xf32, #tpu.memory_space<vmem>>, vector<1x8x120xf32>
    %305 = vector.shape_cast %304 : vector<1x8x120xf32> to vector<8x120xf32>
    %c0_70 = arith.constant 0 : index
    %c0_71 = arith.constant 0 : index
    %c4_72 = arith.constant 4 : index
    %306 = vector.load %arg19[%c0_70, %c0_71, %c4_72] : memref<2x8x136xf32, #tpu.memory_space<vmem>>, vector<1x8x120xf32>
    %307 = vector.shape_cast %306 : vector<1x8x120xf32> to vector<8x120xf32>
    %c4_73 = arith.constant 4 : index
    %308 = memref.load %arg12[%c4_73] : memref<5xf32, #tpu.memory_space<smem>>
    %309 = vector.broadcast %308 : f32 to vector<8x120xf32>
    %310 = arith.mulf %309, %299 : vector<8x120xf32>
    %c3_74 = arith.constant 3 : index
    %311 = memref.load %arg12[%c3_74] : memref<5xf32, #tpu.memory_space<smem>>
    %312 = vector.broadcast %311 : f32 to vector<8x120xf32>
    %313 = arith.mulf %312, %301 : vector<8x120xf32>
    %c2_75 = arith.constant 2 : index
    %314 = memref.load %arg12[%c2_75] : memref<5xf32, #tpu.memory_space<smem>>
    %315 = vector.broadcast %314 : f32 to vector<8x120xf32>
    %316 = arith.mulf %315, %303 : vector<8x120xf32>
    %c1_76 = arith.constant 1 : index
    %317 = memref.load %arg12[%c1_76] : memref<5xf32, #tpu.memory_space<smem>>
    %318 = vector.broadcast %317 : f32 to vector<8x120xf32>
    %319 = arith.mulf %318, %305 : vector<8x120xf32>
    %c0_77 = arith.constant 0 : index
    %320 = memref.load %arg12[%c0_77] : memref<5xf32, #tpu.memory_space<smem>>
    %321 = vector.broadcast %320 : f32 to vector<8x120xf32>
    %322 = arith.mulf %321, %307 : vector<8x120xf32>
    %323 = arith.addf %310, %313 : vector<8x120xf32>
    %324 = arith.addf %316, %319 : vector<8x120xf32>
    %325 = arith.addf %323, %324 : vector<8x120xf32>
    %326 = arith.addf %325, %322 : vector<8x120xf32>
    %c0_78 = arith.constant 0 : index
    %327 = memref.load %arg13[%c0_78] : memref<1xf32, #tpu.memory_space<smem>>
    %328 = vector.broadcast %327 : f32 to vector<8x120xf32>
    %329 = arith.addf %326, %328 : vector<8x120xf32>
    %330 = math.tanh %329 : vector<8x120xf32>
    %c0_79 = arith.constant 0 : index
    %c0_80 = arith.constant 0 : index
    %c4_81 = arith.constant 4 : index
    %331 = vector.load %arg19[%c0_79, %c0_80, %c4_81] : memref<2x8x136xf32, #tpu.memory_space<vmem>>, vector<1x8x120xf32>
    %332 = vector.shape_cast %331 : vector<1x8x120xf32> to vector<8x120xf32>
    %333 = vector.shape_cast %330 : vector<8x120xf32> to vector<1x8x120xf32>
    tpu.vector_store %arg19[%c0_79, %c0_80, %c4_81], %333 {strides = array<i32>} : memref<2x8x136xf32, #tpu.memory_space<vmem>>, vector<1x8x120xf32>,
    %c0_82 = arith.constant 0 : index
    %c0_83 = arith.constant 0 : index
    %c0_84 = arith.constant 0 : index
    %334 = vector.load %arg19[%c0_82, %c0_83, %c0_84] : memref<2x8x136xf32, #tpu.memory_space<vmem>>, vector<1x8x124xf32>
    %335 = vector.shape_cast %334 : vector<1x8x124xf32> to vector<8x124xf32>
    %c0_85 = arith.constant 0 : index
    %c0_86 = arith.constant 0 : index
    %c1_87 = arith.constant 1 : index
    %336 = vector.load %arg19[%c0_85, %c0_86, %c1_87] : memref<2x8x136xf32, #tpu.memory_space<vmem>>, vector<1x8x124xf32>
    %337 = vector.shape_cast %336 : vector<1x8x124xf32> to vector<8x124xf32>
    %c0_88 = arith.constant 0 : index
    %c0_89 = arith.constant 0 : index
    %c2_90 = arith.constant 2 : index
    %338 = vector.load %arg19[%c0_88, %c0_89, %c2_90] : memref<2x8x136xf32, #tpu.memory_space<vmem>>, vector<1x8x124xf32>
    %339 = vector.shape_cast %338 : vector<1x8x124xf32> to vector<8x124xf32>
    %c0_91 = arith.constant 0 : index
    %c0_92 = arith.constant 0 : index
    %c3_93 = arith.constant 3 : index
    %340 = vector.load %arg19[%c0_91, %c0_92, %c3_93] : memref<2x8x136xf32, #tpu.memory_space<vmem>>, vector<1x8x124xf32>
    %341 = vector.shape_cast %340 : vector<1x8x124xf32> to vector<8x124xf32>
    %c0_94 = arith.constant 0 : index
    %c0_95 = arith.constant 0 : index
    %c4_96 = arith.constant 4 : index
    %342 = vector.load %arg19[%c0_94, %c0_95, %c4_96] : memref<2x8x136xf32, #tpu.memory_space<vmem>>, vector<1x8x124xf32>
    %343 = vector.shape_cast %342 : vector<1x8x124xf32> to vector<8x124xf32>
    %c4_97 = arith.constant 4 : index
    %344 = memref.load %arg14[%c4_97] : memref<10xf32, #tpu.memory_space<smem>>
    %345 = vector.broadcast %344 : f32 to vector<8x124xf32>
    %346 = arith.mulf %345, %335 : vector<8x124xf32>
    %c3_98 = arith.constant 3 : index
    %347 = memref.load %arg14[%c3_98] : memref<10xf32, #tpu.memory_space<smem>>
    %348 = vector.broadcast %347 : f32 to vector<8x124xf32>
    %349 = arith.mulf %348, %337 : vector<8x124xf32>
    %c2_99 = arith.constant 2 : index
    %350 = memref.load %arg14[%c2_99] : memref<10xf32, #tpu.memory_space<smem>>
    %351 = vector.broadcast %350 : f32 to vector<8x124xf32>
    %352 = arith.mulf %351, %339 : vector<8x124xf32>
    %c1_100 = arith.constant 1 : index
    %353 = memref.load %arg14[%c1_100] : memref<10xf32, #tpu.memory_space<smem>>
    %354 = vector.broadcast %353 : f32 to vector<8x124xf32>
    %355 = arith.mulf %354, %341 : vector<8x124xf32>
    %c0_101 = arith.constant 0 : index
    %356 = memref.load %arg14[%c0_101] : memref<10xf32, #tpu.memory_space<smem>>
    %357 = vector.broadcast %356 : f32 to vector<8x124xf32>
    %358 = arith.mulf %357, %343 : vector<8x124xf32>
    %359 = arith.addf %346, %349 : vector<8x124xf32>
    %360 = arith.addf %352, %355 : vector<8x124xf32>
    %361 = arith.addf %359, %360 : vector<8x124xf32>
    %362 = arith.addf %361, %358 : vector<8x124xf32>
    %c0_102 = arith.constant 0 : index
    %363 = memref.load %arg15[%c0_102] : memref<2xf32, #tpu.memory_space<smem>>
    %364 = vector.broadcast %363 : f32 to vector<8x124xf32>
    %365 = arith.addf %362, %364 : vector<8x124xf32>
    %366 = math.tanh %365 : vector<8x124xf32>
    %c9_103 = arith.constant 9 : index
    %367 = memref.load %arg14[%c9_103] : memref<10xf32, #tpu.memory_space<smem>>
    %368 = vector.broadcast %367 : f32 to vector<8x124xf32>
    %369 = arith.mulf %368, %335 : vector<8x124xf32>
    %c8_104 = arith.constant 8 : index
    %370 = memref.load %arg14[%c8_104] : memref<10xf32, #tpu.memory_space<smem>>
    %371 = vector.broadcast %370 : f32 to vector<8x124xf32>
    %372 = arith.mulf %371, %337 : vector<8x124xf32>
    %c7_105 = arith.constant 7 : index
    %373 = memref.load %arg14[%c7_105] : memref<10xf32, #tpu.memory_space<smem>>
    %374 = vector.broadcast %373 : f32 to vector<8x124xf32>
    %375 = arith.mulf %374, %339 : vector<8x124xf32>
    %c6_106 = arith.constant 6 : index
    %376 = memref.load %arg14[%c6_106] : memref<10xf32, #tpu.memory_space<smem>>
    %377 = vector.broadcast %376 : f32 to vector<8x124xf32>
    %378 = arith.mulf %377, %341 : vector<8x124xf32>
    %c5_107 = arith.constant 5 : index
    %379 = memref.load %arg14[%c5_107] : memref<10xf32, #tpu.memory_space<smem>>
    %380 = vector.broadcast %379 : f32 to vector<8x124xf32>
    %381 = arith.mulf %380, %343 : vector<8x124xf32>
    %382 = arith.addf %369, %372 : vector<8x124xf32>
    %383 = arith.addf %375, %378 : vector<8x124xf32>
    %384 = arith.addf %382, %383 : vector<8x124xf32>
    %385 = arith.addf %384, %381 : vector<8x124xf32>
    %c1_108 = arith.constant 1 : index
    %386 = memref.load %arg15[%c1_108] : memref<2xf32, #tpu.memory_space<smem>>
    %387 = vector.broadcast %386 : f32 to vector<8x124xf32>
    %388 = arith.addf %385, %387 : vector<8x124xf32>
    %389 = math.tanh %388 : vector<8x124xf32>
    %c0_109 = arith.constant 0 : index
    %c0_110 = arith.constant 0 : index
    %c4_111 = arith.constant 4 : index
    %390 = vector.load %arg19[%c0_109, %c0_110, %c4_111] : memref<2x8x136xf32, #tpu.memory_space<vmem>>, vector<1x8x124xf32>
    %391 = vector.shape_cast %390 : vector<1x8x124xf32> to vector<8x124xf32>
    %392 = vector.shape_cast %366 : vector<8x124xf32> to vector<1x8x124xf32>
    tpu.vector_store %arg19[%c0_109, %c0_110, %c4_111], %392 {strides = array<i32>} : memref<2x8x136xf32, #tpu.memory_space<vmem>>, vector<1x8x124xf32>,
    %c1_112 = arith.constant 1 : index
    %c0_113 = arith.constant 0 : index
    %c4_114 = arith.constant 4 : index
    %393 = vector.load %arg19[%c1_112, %c0_113, %c4_114] : memref<2x8x136xf32, #tpu.memory_space<vmem>>, vector<1x8x124xf32>
    %394 = vector.shape_cast %393 : vector<1x8x124xf32> to vector<8x124xf32>
    %395 = vector.shape_cast %389 : vector<8x124xf32> to vector<1x8x124xf32>
    tpu.vector_store %arg19[%c1_112, %c0_113, %c4_114], %395 {strides = array<i32>} : memref<2x8x136xf32, #tpu.memory_space<vmem>>, vector<1x8x124xf32>,
    %c0_115 = arith.constant 0 : index
    %c0_116 = arith.constant 0 : index
    %c0_117 = arith.constant 0 : index
    %396 = vector.load %arg19[%c0_115, %c0_116, %c0_117] : memref<2x8x136xf32, #tpu.memory_space<vmem>>, vector<1x8x128xf32>
    %397 = vector.shape_cast %396 : vector<1x8x128xf32> to vector<8x128xf32>
    %c0_118 = arith.constant 0 : index
    %c0_119 = arith.constant 0 : index
    %c1_120 = arith.constant 1 : index
    %398 = vector.load %arg19[%c0_118, %c0_119, %c1_120] : memref<2x8x136xf32, #tpu.memory_space<vmem>>, vector<1x8x128xf32>
    %399 = vector.shape_cast %398 : vector<1x8x128xf32> to vector<8x128xf32>
    %c0_121 = arith.constant 0 : index
    %c0_122 = arith.constant 0 : index
    %c2_123 = arith.constant 2 : index
    %400 = vector.load %arg19[%c0_121, %c0_122, %c2_123] : memref<2x8x136xf32, #tpu.memory_space<vmem>>, vector<1x8x128xf32>
    %401 = vector.shape_cast %400 : vector<1x8x128xf32> to vector<8x128xf32>
    %c0_124 = arith.constant 0 : index
    %c0_125 = arith.constant 0 : index
    %c3_126 = arith.constant 3 : index
    %402 = vector.load %arg19[%c0_124, %c0_125, %c3_126] : memref<2x8x136xf32, #tpu.memory_space<vmem>>, vector<1x8x128xf32>
    %403 = vector.shape_cast %402 : vector<1x8x128xf32> to vector<8x128xf32>
    %c0_127 = arith.constant 0 : index
    %c0_128 = arith.constant 0 : index
    %c4_129 = arith.constant 4 : index
    %404 = vector.load %arg19[%c0_127, %c0_128, %c4_129] : memref<2x8x136xf32, #tpu.memory_space<vmem>>, vector<1x8x128xf32>
    %405 = vector.shape_cast %404 : vector<1x8x128xf32> to vector<8x128xf32>
    %c1_130 = arith.constant 1 : index
    %c0_131 = arith.constant 0 : index
    %c0_132 = arith.constant 0 : index
    %406 = vector.load %arg19[%c1_130, %c0_131, %c0_132] : memref<2x8x136xf32, #tpu.memory_space<vmem>>, vector<1x8x128xf32>
    %407 = vector.shape_cast %406 : vector<1x8x128xf32> to vector<8x128xf32>
    %c1_133 = arith.constant 1 : index
    %c0_134 = arith.constant 0 : index
    %c1_135 = arith.constant 1 : index
    %408 = vector.load %arg19[%c1_133, %c0_134, %c1_135] : memref<2x8x136xf32, #tpu.memory_space<vmem>>, vector<1x8x128xf32>
    %409 = vector.shape_cast %408 : vector<1x8x128xf32> to vector<8x128xf32>
    %c1_136 = arith.constant 1 : index
    %c0_137 = arith.constant 0 : index
    %c2_138 = arith.constant 2 : index
    %410 = vector.load %arg19[%c1_136, %c0_137, %c2_138] : memref<2x8x136xf32, #tpu.memory_space<vmem>>, vector<1x8x128xf32>
    %411 = vector.shape_cast %410 : vector<1x8x128xf32> to vector<8x128xf32>
    %c1_139 = arith.constant 1 : index
    %c0_140 = arith.constant 0 : index
    %c3_141 = arith.constant 3 : index
    %412 = vector.load %arg19[%c1_139, %c0_140, %c3_141] : memref<2x8x136xf32, #tpu.memory_space<vmem>>, vector<1x8x128xf32>
    %413 = vector.shape_cast %412 : vector<1x8x128xf32> to vector<8x128xf32>
    %c1_142 = arith.constant 1 : index
    %c0_143 = arith.constant 0 : index
    %c4_144 = arith.constant 4 : index
    %414 = vector.load %arg19[%c1_142, %c0_143, %c4_144] : memref<2x8x136xf32, #tpu.memory_space<vmem>>, vector<1x8x128xf32>
    %415 = vector.shape_cast %414 : vector<1x8x128xf32> to vector<8x128xf32>
    %c4_145 = arith.constant 4 : index
    %416 = memref.load %arg16[%c4_145] : memref<30xf32, #tpu.memory_space<smem>>
    %417 = vector.broadcast %416 : f32 to vector<8x128xf32>
    %418 = arith.mulf %417, %397 : vector<8x128xf32>
    %c3_146 = arith.constant 3 : index
    %419 = memref.load %arg16[%c3_146] : memref<30xf32, #tpu.memory_space<smem>>
    %420 = vector.broadcast %419 : f32 to vector<8x128xf32>
    %421 = arith.mulf %420, %399 : vector<8x128xf32>
    %c2_147 = arith.constant 2 : index
    %422 = memref.load %arg16[%c2_147] : memref<30xf32, #tpu.memory_space<smem>>
    %423 = vector.broadcast %422 : f32 to vector<8x128xf32>
    %424 = arith.mulf %423, %401 : vector<8x128xf32>
    %c1_148 = arith.constant 1 : index
    %425 = memref.load %arg16[%c1_148] : memref<30xf32, #tpu.memory_space<smem>>
    %426 = vector.broadcast %425 : f32 to vector<8x128xf32>
    %427 = arith.mulf %426, %403 : vector<8x128xf32>
    %c0_149 = arith.constant 0 : index
    %428 = memref.load %arg16[%c0_149] : memref<30xf32, #tpu.memory_space<smem>>
    %429 = vector.broadcast %428 : f32 to vector<8x128xf32>
    %430 = arith.mulf %429, %405 : vector<8x128xf32>
    %c19_150 = arith.constant 19 : index
    %431 = memref.load %arg16[%c19_150] : memref<30xf32, #tpu.memory_space<smem>>
    %432 = vector.broadcast %431 : f32 to vector<8x128xf32>
    %433 = arith.mulf %432, %407 : vector<8x128xf32>
    %c18_151 = arith.constant 18 : index
    %434 = memref.load %arg16[%c18_151] : memref<30xf32, #tpu.memory_space<smem>>
    %435 = vector.broadcast %434 : f32 to vector<8x128xf32>
    %436 = arith.mulf %435, %409 : vector<8x128xf32>
    %c17_152 = arith.constant 17 : index
    %437 = memref.load %arg16[%c17_152] : memref<30xf32, #tpu.memory_space<smem>>
    %438 = vector.broadcast %437 : f32 to vector<8x128xf32>
    %439 = arith.mulf %438, %411 : vector<8x128xf32>
    %c16_153 = arith.constant 16 : index
    %440 = memref.load %arg16[%c16_153] : memref<30xf32, #tpu.memory_space<smem>>
    %441 = vector.broadcast %440 : f32 to vector<8x128xf32>
    %442 = arith.mulf %441, %413 : vector<8x128xf32>
    %c15_154 = arith.constant 15 : index
    %443 = memref.load %arg16[%c15_154] : memref<30xf32, #tpu.memory_space<smem>>
    %444 = vector.broadcast %443 : f32 to vector<8x128xf32>
    %445 = arith.mulf %444, %415 : vector<8x128xf32>
    %446 = arith.addf %418, %421 : vector<8x128xf32>
    %447 = arith.addf %424, %427 : vector<8x128xf32>
    %448 = arith.addf %430, %433 : vector<8x128xf32>
    %449 = arith.addf %436, %439 : vector<8x128xf32>
    %450 = arith.addf %442, %445 : vector<8x128xf32>
    %451 = arith.addf %446, %447 : vector<8x128xf32>
    %452 = arith.addf %448, %449 : vector<8x128xf32>
    %453 = arith.addf %451, %452 : vector<8x128xf32>
    %454 = arith.addf %453, %450 : vector<8x128xf32>
    %c0_155 = arith.constant 0 : index
    %455 = memref.load %arg17[%c0_155] : memref<3xf32, #tpu.memory_space<smem>>
    %456 = vector.broadcast %455 : f32 to vector<8x128xf32>
    %457 = arith.addf %454, %456 : vector<8x128xf32>
    %c9_156 = arith.constant 9 : index
    %458 = memref.load %arg16[%c9_156] : memref<30xf32, #tpu.memory_space<smem>>
    %459 = vector.broadcast %458 : f32 to vector<8x128xf32>
    %460 = arith.mulf %459, %397 : vector<8x128xf32>
    %c8_157 = arith.constant 8 : index
    %461 = memref.load %arg16[%c8_157] : memref<30xf32, #tpu.memory_space<smem>>
    %462 = vector.broadcast %461 : f32 to vector<8x128xf32>
    %463 = arith.mulf %462, %399 : vector<8x128xf32>
    %c7_158 = arith.constant 7 : index
    %464 = memref.load %arg16[%c7_158] : memref<30xf32, #tpu.memory_space<smem>>
    %465 = vector.broadcast %464 : f32 to vector<8x128xf32>
    %466 = arith.mulf %465, %401 : vector<8x128xf32>
    %c6_159 = arith.constant 6 : index
    %467 = memref.load %arg16[%c6_159] : memref<30xf32, #tpu.memory_space<smem>>
    %468 = vector.broadcast %467 : f32 to vector<8x128xf32>
    %469 = arith.mulf %468, %403 : vector<8x128xf32>
    %c5_160 = arith.constant 5 : index
    %470 = memref.load %arg16[%c5_160] : memref<30xf32, #tpu.memory_space<smem>>
    %471 = vector.broadcast %470 : f32 to vector<8x128xf32>
    %472 = arith.mulf %471, %405 : vector<8x128xf32>
    %c24_161 = arith.constant 24 : index
    %473 = memref.load %arg16[%c24_161] : memref<30xf32, #tpu.memory_space<smem>>
    %474 = vector.broadcast %473 : f32 to vector<8x128xf32>
    %475 = arith.mulf %474, %407 : vector<8x128xf32>
    %c23_162 = arith.constant 23 : index
    %476 = memref.load %arg16[%c23_162] : memref<30xf32, #tpu.memory_space<smem>>
    %477 = vector.broadcast %476 : f32 to vector<8x128xf32>
    %478 = arith.mulf %477, %409 : vector<8x128xf32>
    %c22_163 = arith.constant 22 : index
    %479 = memref.load %arg16[%c22_163] : memref<30xf32, #tpu.memory_space<smem>>
    %480 = vector.broadcast %479 : f32 to vector<8x128xf32>
    %481 = arith.mulf %480, %411 : vector<8x128xf32>
    %c21_164 = arith.constant 21 : index
    %482 = memref.load %arg16[%c21_164] : memref<30xf32, #tpu.memory_space<smem>>
    %483 = vector.broadcast %482 : f32 to vector<8x128xf32>
    %484 = arith.mulf %483, %413 : vector<8x128xf32>
    %c20_165 = arith.constant 20 : index
    %485 = memref.load %arg16[%c20_165] : memref<30xf32, #tpu.memory_space<smem>>
    %486 = vector.broadcast %485 : f32 to vector<8x128xf32>
    %487 = arith.mulf %486, %415 : vector<8x128xf32>
    %488 = arith.addf %460, %463 : vector<8x128xf32>
    %489 = arith.addf %466, %469 : vector<8x128xf32>
    %490 = arith.addf %472, %475 : vector<8x128xf32>
    %491 = arith.addf %478, %481 : vector<8x128xf32>
    %492 = arith.addf %484, %487 : vector<8x128xf32>
    %493 = arith.addf %488, %489 : vector<8x128xf32>
    %494 = arith.addf %490, %491 : vector<8x128xf32>
    %495 = arith.addf %493, %494 : vector<8x128xf32>
    %496 = arith.addf %495, %492 : vector<8x128xf32>
    %c1_166 = arith.constant 1 : index
    %497 = memref.load %arg17[%c1_166] : memref<3xf32, #tpu.memory_space<smem>>
    %498 = vector.broadcast %497 : f32 to vector<8x128xf32>
    %499 = arith.addf %496, %498 : vector<8x128xf32>
    %c14_167 = arith.constant 14 : index
    %500 = memref.load %arg16[%c14_167] : memref<30xf32, #tpu.memory_space<smem>>
    %501 = vector.broadcast %500 : f32 to vector<8x128xf32>
    %502 = arith.mulf %501, %397 : vector<8x128xf32>
    %c13_168 = arith.constant 13 : index
    %503 = memref.load %arg16[%c13_168] : memref<30xf32, #tpu.memory_space<smem>>
    %504 = vector.broadcast %503 : f32 to vector<8x128xf32>
    %505 = arith.mulf %504, %399 : vector<8x128xf32>
    %c12_169 = arith.constant 12 : index
    %506 = memref.load %arg16[%c12_169] : memref<30xf32, #tpu.memory_space<smem>>
    %507 = vector.broadcast %506 : f32 to vector<8x128xf32>
    %508 = arith.mulf %507, %401 : vector<8x128xf32>
    %c11_170 = arith.constant 11 : index
    %509 = memref.load %arg16[%c11_170] : memref<30xf32, #tpu.memory_space<smem>>
    %510 = vector.broadcast %509 : f32 to vector<8x128xf32>
    %511 = arith.mulf %510, %403 : vector<8x128xf32>
    %c10_171 = arith.constant 10 : index
    %512 = memref.load %arg16[%c10_171] : memref<30xf32, #tpu.memory_space<smem>>
    %513 = vector.broadcast %512 : f32 to vector<8x128xf32>
    %514 = arith.mulf %513, %405 : vector<8x128xf32>
    %c29_172 = arith.constant 29 : index
    %515 = memref.load %arg16[%c29_172] : memref<30xf32, #tpu.memory_space<smem>>
    %516 = vector.broadcast %515 : f32 to vector<8x128xf32>
    %517 = arith.mulf %516, %407 : vector<8x128xf32>
    %c28_173 = arith.constant 28 : index
    %518 = memref.load %arg16[%c28_173] : memref<30xf32, #tpu.memory_space<smem>>
    %519 = vector.broadcast %518 : f32 to vector<8x128xf32>
    %520 = arith.mulf %519, %409 : vector<8x128xf32>
    %c27_174 = arith.constant 27 : index
    %521 = memref.load %arg16[%c27_174] : memref<30xf32, #tpu.memory_space<smem>>
    %522 = vector.broadcast %521 : f32 to vector<8x128xf32>
    %523 = arith.mulf %522, %411 : vector<8x128xf32>
    %c26_175 = arith.constant 26 : index
    %524 = memref.load %arg16[%c26_175] : memref<30xf32, #tpu.memory_space<smem>>
    %525 = vector.broadcast %524 : f32 to vector<8x128xf32>
    %526 = arith.mulf %525, %413 : vector<8x128xf32>
    %c25_176 = arith.constant 25 : index
    %527 = memref.load %arg16[%c25_176] : memref<30xf32, #tpu.memory_space<smem>>
    %528 = vector.broadcast %527 : f32 to vector<8x128xf32>
    %529 = arith.mulf %528, %415 : vector<8x128xf32>
    %530 = arith.addf %502, %505 : vector<8x128xf32>
    %531 = arith.addf %508, %511 : vector<8x128xf32>
    %532 = arith.addf %514, %517 : vector<8x128xf32>
    %533 = arith.addf %520, %523 : vector<8x128xf32>
    %534 = arith.addf %526, %529 : vector<8x128xf32>
    %535 = arith.addf %530, %531 : vector<8x128xf32>
    %536 = arith.addf %532, %533 : vector<8x128xf32>
    %537 = arith.addf %535, %536 : vector<8x128xf32>
    %538 = arith.addf %537, %534 : vector<8x128xf32>
    %c2_177 = arith.constant 2 : index
    %539 = memref.load %arg17[%c2_177] : memref<3xf32, #tpu.memory_space<smem>>
    %540 = vector.broadcast %539 : f32 to vector<8x128xf32>
    %541 = arith.addf %538, %540 : vector<8x128xf32>
    %c0_178 = arith.constant 0 : index
    %c0_179 = arith.constant 0 : index
    %c0_180 = arith.constant 0 : index
    %542 = vector.load %arg18[%c0_178, %c0_179, %c0_180] : memref<8x3x128xf32, #tpu.memory_space<vmem>>, vector<8x1x128xf32>
    %543 = vector.shape_cast %542 : vector<8x1x128xf32> to vector<8x128xf32>
    %544 = vector.shape_cast %457 : vector<8x128xf32> to vector<8x1x128xf32>
    tpu.vector_store %arg18[%c0_178, %c0_179, %c0_180], %544 {strides = array<i32>} : memref<8x3x128xf32, #tpu.memory_space<vmem>>, vector<8x1x128xf32>,
    %c0_181 = arith.constant 0 : index
    %c1_182 = arith.constant 1 : index
    %c0_183 = arith.constant 0 : index
    %545 = vector.load %arg18[%c0_181, %c1_182, %c0_183] : memref<8x3x128xf32, #tpu.memory_space<vmem>>, vector<8x1x128xf32>
    %546 = vector.shape_cast %545 : vector<8x1x128xf32> to vector<8x128xf32>
    %547 = vector.shape_cast %499 : vector<8x128xf32> to vector<8x1x128xf32>
    tpu.vector_store %arg18[%c0_181, %c1_182, %c0_183], %547 {strides = array<i32>} : memref<8x3x128xf32, #tpu.memory_space<vmem>>, vector<8x1x128xf32>,
    %c0_184 = arith.constant 0 : index
    %c2_185 = arith.constant 2 : index
    %c0_186 = arith.constant 0 : index
    %548 = vector.load %arg18[%c0_184, %c2_185, %c0_186] : memref<8x3x128xf32, #tpu.memory_space<vmem>>, vector<8x1x128xf32>
    %549 = vector.shape_cast %548 : vector<8x1x128xf32> to vector<8x128xf32>
    %550 = vector.shape_cast %541 : vector<8x128xf32> to vector<8x1x128xf32>
    tpu.vector_store %arg18[%c0_184, %c2_185, %c0_186], %550 {strides = array<i32>} : memref<8x3x128xf32, #tpu.memory_space<vmem>>, vector<8x1x128xf32>,
    return
  }
  func.func @transform_0(%arg0: i32) -> (i32, i32, i32) {
    %c0_i32 = arith.constant 0 : i32
    %c0_i32_0 = arith.constant 0 : i32
    %c0_i32_1 = arith.constant 0 : i32
    return %arg0, %c0_i32, %c0_i32_0 : i32, i32, i32
  }
  func.func @transform_1(%arg0: i32) -> i32 {
    %c0_i32 = arith.constant 0 : i32
    %c0_i32_0 = arith.constant 0 : i32
    return %c0_i32 : i32
  }
  func.func @transform_2(%arg0: i32) -> i32 {
    %c0_i32 = arith.constant 0 : i32
    %c0_i32_0 = arith.constant 0 : i32
    return %c0_i32 : i32
  }
  func.func @transform_3(%arg0: i32) -> i32 {
    %c0_i32 = arith.constant 0 : i32
    %c0_i32_0 = arith.constant 0 : i32
    return %c0_i32 : i32
  }
  func.func @transform_4(%arg0: i32) -> i32 {
    %c0_i32 = arith.constant 0 : i32
    %c0_i32_0 = arith.constant 0 : i32
    return %c0_i32 : i32
  }
  func.func @transform_5(%arg0: i32) -> i32 {
    %c0_i32 = arith.constant 0 : i32
    %c0_i32_0 = arith.constant 0 : i32
    return %c0_i32 : i32
  }
  func.func @transform_6(%arg0: i32) -> i32 {
    %c0_i32 = arith.constant 0 : i32
    %c0_i32_0 = arith.constant 0 : i32
    return %c0_i32 : i32
  }
  func.func @transform_7(%arg0: i32) -> i32 {
    %c0_i32 = arith.constant 0 : i32
    %c0_i32_0 = arith.constant 0 : i32
    return %c0_i32 : i32
  }
  func.func @transform_8(%arg0: i32) -> i32 {
    %c0_i32 = arith.constant 0 : i32
    %c0_i32_0 = arith.constant 0 : i32
    return %c0_i32 : i32
  }
  func.func @transform_9(%arg0: i32) -> i32 {
    %c0_i32 = arith.constant 0 : i32
    %c0_i32_0 = arith.constant 0 : i32
    return %c0_i32 : i32
  }
  func.func @transform_10(%arg0: i32) -> i32 {
    %c0_i32 = arith.constant 0 : i32
    %c0_i32_0 = arith.constant 0 : i32
    return %c0_i32 : i32
  }
  func.func @transform_11(%arg0: i32) -> i32 {
    %c0_i32 = arith.constant 0 : i32
    %c0_i32_0 = arith.constant 0 : i32
    return %c0_i32 : i32
  }
  func.func @transform_12(%arg0: i32) -> i32 {
    %c0_i32 = arith.constant 0 : i32
    %c0_i32_0 = arith.constant 0 : i32
    return %c0_i32 : i32
  }
  func.func @transform_13(%arg0: i32) -> i32 {
    %c0_i32 = arith.constant 0 : i32
    %c0_i32_0 = arith.constant 0 : i32
    return %c0_i32 : i32
  }
  func.func @transform_14(%arg0: i32) -> i32 {
    %c0_i32 = arith.constant 0 : i32
    %c0_i32_0 = arith.constant 0 : i32
    return %c0_i32 : i32
  }
  func.func @transform_15(%arg0: i32) -> i32 {
    %c0_i32 = arith.constant 0 : i32
    %c0_i32_0 = arith.constant 0 : i32
    return %c0_i32 : i32
  }
  func.func @transform_16(%arg0: i32) -> i32 {
    %c0_i32 = arith.constant 0 : i32
    %c0_i32_0 = arith.constant 0 : i32
    return %c0_i32 : i32
  }
  func.func @transform_17(%arg0: i32) -> (i32, i32, i32) {
    %c0_i32 = arith.constant 0 : i32
    %c0_i32_0 = arith.constant 0 : i32
    %c0_i32_1 = arith.constant 0 : i32
    return %arg0, %c0_i32, %c0_i32_0 : i32, i32, i32
  }
}

</mosaic_0001>

<bundles_post_ra>
// kernel: tpu_custom_call.1
= control target key start
LH: loop header
LB: loop body
LE: loop exit
PB: predicated region body
PF: predicated region fallthrough
CT: control target
= control target key end

     0   :  { %s6908_s0 = inlined_call_operand.vmem [shape: f32[16,3,128], index: 0, kind: input, shape index: {}]   ;;  %s6909_s1 = inlined_call_operand.vmem [shape: f32[30], index: 1, kind: input, shape index: {}]   ;;  %s6910_s2 = inlined_call_operand.vmem [shape: f32[2], index: 2, kind: input, shape index: {}]   ;;  %s6911_s3 = inlined_call_operand.vmem [shape: f32[10], index: 3, kind: input, shape index: {}]   ;;  %s6912_s4 = inlined_call_operand.<no memory space> [shape: f32[1], index: 4, kind: input, shape index: {}]   ;;  %s6913_s5 = inlined_call_operand.vmem [shape: f32[5], index: 5, kind: input, shape index: {}]   ;;  %s6914_s6 = inlined_call_operand.<no memory space> [shape: f32[1], index: 6, kind: input, shape index: {}]   ;;  %s6915_s7 = inlined_call_operand.vmem [shape: f32[5], index: 7, kind: input, shape index: {}]   ;;  %s6916_s8 = inlined_call_operand.<no memory space> [shape: f32[1], index: 8, kind: input, shape index: {}]   ;;  %s6917_s9 = inlined_call_operand.vmem [shape: f32[5], index: 9, kind: input, shape index: {}]   ;;  %s6918_s11 = inlined_call_operand.vmem [shape: f32[5], index: 11, kind: input, shape index: {}]   ;;  %s6919_s13 = inlined_call_operand.vmem [shape: f32[10], index: 13, kind: input, shape index: {}]   ;;  %s6920_s14 = inlined_call_operand.vmem [shape: f32[2], index: 14, kind: input, shape index: {}]   ;;  %s6921_s15 = inlined_call_operand.vmem [shape: f32[30], index: 15, kind: input, shape index: {}]   ;;  %s6922_s16 = inlined_call_operand.vmem [shape: f32[3], index: 16, kind: input, shape index: {}]   ;;  %s6923_s17 = inlined_call_operand.vmem [shape: f32[16,3,128], index: 17, kind: output, shape index: {}]   ;;  %s6924_s10 = inlined_call_operand.<no memory space> [shape: f32[1], index: 10, kind: input, shape index: {}]   ;;  %s6925_s12 = inlined_call_operand.<no memory space> [shape: f32[1], index: 12, kind: input, shape index: {}]  }
   0x1   :  { %6926 = sst [smem:[#allocation66_spill]] %s6908_s0 }
   0x2   :  { %6927 = sst [smem:[#allocation67_spill]] %s6909_s1 }
   0x3   :  { %22 = sst [smem:[#allocation3]] %s6912_s4 }
   0x4   :  { %23 = sst [smem:[#allocation4]] %s6914_s6 }
   0x5   :  { %24 = sst [smem:[#allocation5]] %s6916_s8 }
   0x6   :  { %25 = sst [smem:[#allocation6]] %s6924_s10 }
   0x7   :  { %26 = sst [smem:[#allocation7]] %s6925_s12 }
   0x8   :  { %27 = vsyncpa [#allocation9], 0 }
   0x9   :  { %28 = vsyncpa [#allocation11], 0 }
   0xa   :  { %29 = vsyncpa [#allocation14], 0 }
   0xb   :  { %30 = vsyncpa [#allocation17], 0 }
   0xc   :  { %31 = vsyncpa [#allocation20], 0 }
   0xd   :  { %32 = vsyncpa [#allocation23], 0  ;;  %s4695_s4 = smov 0  }
   0xe LB: > { %s453_s10 = sshll.u32 %s6910_s2, 4  ;;  %s4018_s12 = sadd.s32 4294967295, %s4569_s4   ;;  %s4569_s4 = sphi %s4695_s4, %s38_s4   ;;  %s454_s10 = int_to_ptr.vmem [resolvable:$true] %s453_s10 }
   0xf   : > { %p4020_p0 = scmp.ge.s32.totalorder %s4569_s4, 1  ;;  %p431_p1 = scmp.lt.s32.totalorder %s4569_s4, 3 }
  0x10   : > { %p4708_p2 = scmp.eq.s32.totalorder %s4018_s12, 0  ;;  %s476_s23 = sshll.u32 %s6913_s5, 4  ;;  %s477_s23 = int_to_ptr.vmem [resolvable:$true] %s476_s23 }
  0x11   : > { %p4712_p3 = pnand %p4020_p0, %p431_p1  ;;  %s502_s26 = sshll.u32 %s6917_s9, 4  ;;  %s503_s26 = int_to_ptr.vmem [resolvable:$true] %s502_s26 }
  0x12   : > { %s528_s0 = sshll.u32 %s6919_s13, 4  ;;  %s548_s19 = sshll.u32 %s6921_s15, 4  ;;  %s529_s0 = int_to_ptr.vmem [resolvable:$true] %s528_s0  ;;  %s549_s19 = int_to_ptr.vmem [resolvable:$true] %s548_s19 }
  0x13   : > { %p4191_p4 = pneg %p4712_p3  ;;  %s4571_s6 = smov [#allocation10]  }
  0x14   : > { %s4572_s8 = smov [#allocation13]   ;;  %s4573_s21 = smov [#allocation16]  }
  0x15   : > { %p4726_p5 = pnand %p4708_p2, %p4191_p4  ;;  %s4574_s22 = smov [#allocation19]  }
  0x16   : > { %s4575_s24 = smov [#allocation22]   ;;  %s6931_s29 = sld [smem:[#allocation67_spill]] }
  0x17   : > { %4197 = dma.vmem_to_smem (!%p4726_p5), %s454_s10, 16, %s4571_s6, [#allocation11]  }
  0x18   : > { %4203 = dma.vmem_to_smem (!%p4726_p5), %s477_s23, 16, %s4572_s8, [#allocation14]  }
  0x19   : > { %4209 = dma.vmem_to_smem (!%p4726_p5), %s503_s26, 16, %s4573_s21, [#allocation17]  }
  0x1a   : > { %4215 = dma.vmem_to_smem (!%p4726_p5), %s529_s0, 16, %s4574_s22, [#allocation20]  }
  0x1b   : > { %4221 = dma.vmem_to_smem (!%p4726_p5), %s549_s19, 16, %s4575_s24, [#allocation23]  }
  0x1c   : > { %s443_s10 = sshll.u32 %s6931_s29, 4  ;;  %s463_s23 = sshll.u32 %s6911_s3, 4  ;;  %s444_s10 = int_to_ptr.vmem [resolvable:$true] %s443_s10  ;;  %s464_s23 = int_to_ptr.vmem [resolvable:$true] %s463_s23 }
  0x1d   : > { %s4576_s6 = smov [#allocation8]   ;;  %s4577_s26 = smov [#allocation12]  }
  0x1e   : > { %4194 = dma.vmem_to_smem (!%p4726_p5), %s444_s10, 16, %s4576_s6, [#allocation9]  }
  0x1f   : > { %4200 = dma.vmem_to_smem (!%p4726_p5), %s464_s23, 16, %s4577_s26, [#allocation11]  }
  0x20   : > { %s489_s8 = sshll.u32 %s6915_s7, 4  ;;  %s515_s24 = sshll.u32 %s6918_s11, 4  ;;  %s490_s8 = int_to_ptr.vmem [resolvable:$true] %s489_s8  ;;  %s516_s24 = int_to_ptr.vmem [resolvable:$true] %s515_s24 }
  0x21   : > { %s4578_s25 = smov [#allocation15]   ;;  %s4579_s28 = smov [#allocation18]  }
  0x22   : > { %4206 = dma.vmem_to_smem (!%p4726_p5), %s490_s8, 16, %s4578_s25, [#allocation14]  }
  0x23   : > { %4212 = dma.vmem_to_smem (!%p4726_p5), %s516_s24, 16, %s4579_s28, [#allocation17]  }
  0x24   : > { %s538_s30 = sshll.u32 %s6920_s14, 4  ;;  %s558_s6 = sshll.u32 %s6922_s16, 4  ;;  %s539_s30 = int_to_ptr.vmem [resolvable:$true] %s538_s30  ;;  %s559_s6 = int_to_ptr.vmem [resolvable:$true] %s558_s6 }
  0x25   : > { %s4580_s26 = smov [#allocation21]   ;;  %s4581_s0 = smov [#allocation24]  }
  0x26   : > { %4218 = dma.vmem_to_smem (!%p4726_p5), %s539_s30, 16, %s4580_s26, [#allocation20]  }
  0x27   : > { %4224 = dma.vmem_to_smem (!%p4726_p5), %s559_s6, 16, %s4581_s0, [#allocation23]  }
  0x28   : > { %580 = sbr.rel (%p4712_p3) target bundleno = 3195 (0xc7b), region = 88 }
  0x2d   : > { %4544 = dma.done.wait (%p4708_p2), [#allocation9], 16  }
  0x2e   : > { %4546 = vsyncadd (%p4708_p2), [#allocation9], 4294967280 }
  0x2f   : > { %4548 = dma.done.wait (%p4708_p2), [#allocation11], 32  }
  0x30   : > { %4550 = vsyncadd (%p4708_p2), [#allocation11], 4294967264 }
  0x31   : > { %4552 = dma.done.wait (%p4708_p2), [#allocation14], 32  }
  0x32   : > { %4554 = vsyncadd (%p4708_p2), [#allocation14], 4294967264 }
  0x33   : > { %4556 = dma.done.wait (%p4708_p2), [#allocation17], 32  }
  0x34   : > { %4558 = vsyncadd (%p4708_p2), [#allocation17], 4294967264 }
  0x35   : > { %4560 = dma.done.wait (%p4708_p2), [#allocation20], 32  }
  0x36   : > { %4562 = vsyncadd (%p4708_p2), [#allocation20], 4294967264 }
  0x37   : > { %4564 = dma.done.wait (%p4708_p2), [#allocation23], 32  }
  0x38   : > { %4566 = vsyncadd (%p4708_p2), [#allocation23], 4294967264 }
  0x39   : > { %637 = sfence }
  0x3a   : > { %s4045_s20 = sshll.u32 %s4018_s12, 3  ;;  %s4049_s27 = sld [smem:[#allocation8 + $0x1]]  ;;  %vm3188_vm0 = vcmask 1041409   ;;  %vm3191_vm1 = vcmask 1042434   ;;  %vm3194_vm2 = vcmask 1043459   ;;  %vm3197_vm3 = vcmask 1044484  }
  0x3b   : > { %p685_p6 = scmp.lt.s32.totalorder %s4045_s20, 15  ;;  %s6932_s22 = sld [smem:[#allocation66_spill]]  ;;  %vm697_vm4 = vcmask 64512   ;;  %vm3200_vm5 = vcmask 1045509   ;;  %vm3203_vm6 = vcmask 1046534   ;;  %vm3206_vm7 = vcmask 1047559  }
  0x3c   : > { %s4582_s12 = smov 127   ;;  %s4051_s1 = sld [smem:[#allocation8 + $0x3]]  ;;  %vm3211_vm8 = vcmask 949280   ;;  %vm3257_vm9 = vcmask 982048   ;;  %vm3303_vm10 = vcmask 1014816   ;;  %vm3388_vm11 = vcmask 1047584  }
  0x3d   : > { %s7004_s20 = smov (!%p685_p6, %s4045_s20), 15  ;;  %s4053_s25 = sld [smem:[#allocation8 + $0x5]]  ;;  %vm3444_vm12 = vcmask 1039360   ;;  %vm3503_vm13 = vcmask 23552   ;;  %vm3493_vm14 = vcmask 1031168   ;;  %vm3515_vm15 = vcmask 1014784  }
  0x3e   : > { %s4046_s19 = sshll.u32 %s7004_s20, 2  ;;  %s4583_s28 = smov 4  }
  0x3f   : > { %s4055_s29 = sld [smem:[#allocation8 + $0x7]]  ;;  %s4584_s6 = smov 126  }
  0x40   : > { %v720_v0 = vstv %s4049_s27  ;;  %s4057_s10 = sld [smem:[#allocation8 + $0x9]]  ;;  %s4585_s0 = smov 3  }
  0x41   : > { %s4812_s24 = scalar_lea.vmem %s6932_s22, %s4046_s19  ;;  %s4059_s30 = sld [smem:[#allocation8 + $0xb]] }
  0x42   : > { %v4815_v1 = vld [vmem:[%s4812_s24 + $0x10] sm:$0x7]  ;;  %v4818_v2 = vld [vmem:[%s4812_s24 + $0x8] sm:$0x7]  ;;  %v4821_v3 = vld [vmem:[%s4812_s24] sm:$0x7]  ;;  %v740_v14 = vstv %s4051_s1 }
  0x43   : > { %v725_v4 = vmul.f32 %v720_v0, %v4815_v1  ;;  %v723_v5 = vmul.f32 %v720_v0, %v4818_v2  ;;  %v721_v6 = vmul.f32 %v720_v0, %v4821_v3  ;;  %v4830_v7 = vld [vmem:[%s4812_s24 + $0x14] sm:$0x7]  ;;  %v4833_v8 = vld [vmem:[%s4812_s24 + $0xc] sm:$0x7]  ;;  %v4836_v9 = vld [vmem:[%s4812_s24 + $0x4] sm:$0x7]  ;;  %v741_v17 = vmul.f32 %v740_v14, %v4821_v3 }
  0x44   : > { %v726_v10 = vmul.f32 %v720_v0, %v4830_v7  ;;  %v724_v11 = vmul.f32 %v720_v0, %v4833_v8  ;;  %v722_v12 = vmul.f32 %v720_v0, %v4836_v9  ;;  %v4845_v13 = vld [vmem:[%s4812_s24 + $0x1c] sm:$0x7]  ;;  %v4848_v15 = vld [vmem:[%s4812_s24 + $0x18] sm:$0x7]  ;;  %v743_v19 = vmul.f32 %v740_v14, %v4818_v2  ;;  %s4061_s18 = sld [smem:[#allocation8 + $0xd]] }
  0x45   : > { %875 = vrot.lane.b32.xlu2 %v725_v4, %s4582_s12  ;;  %871 = vrot.lane.b32.xlu1 %v723_v5, %s4582_s12  ;;  %v728_v16 = vmul.f32 %v720_v0, %v4845_v13  ;;  %v727_v18 = vmul.f32 %v720_v0, %v4848_v15  ;;  %v744_v20 = vmul.f32 %v740_v14, %v4833_v8  ;;  %v760_v25 = vstv %s4053_s25  ;;  %s4050_s23 = sld [smem:[#allocation8 + $0x2]] }
  0x46   : > { %867 = vrot.lane.b32.xlu0 %v721_v6, %s4582_s12  ;;  %v742_v21 = vmul.f32 %v740_v14, %v4836_v9  ;;  %v746_v22 = vmul.f32 %v740_v14, %v4830_v7  ;;  %v747_v23 = vmul.f32 %v740_v14, %v4848_v15  ;;  %v745_v24 = vmul.f32 %v740_v14, %v4815_v1  ;;  %s4054_s26 = sld [smem:[#allocation8 + $0x6]] }
  0x47   : > { %v761_v26 = vmul.f32 %v760_v25, %v4821_v3  ;;  %v762_v27 = vmul.f32 %v760_v25, %v4836_v9  ;;  %v748_v30 = vmul.f32 %v740_v14, %v4845_v13  ;;  %v764_v31 = vmul.f32 %v760_v25, %v4833_v8  ;;  %s4074_s27 = sld [smem:[#allocation8 + $0x1a]] }
  0x48   : > { %v765_v32 = vmul.f32 %v760_v25, %v4815_v1  ;;  %v763_v33 = vmul.f32 %v760_v25, %v4818_v2  ;;  %v767_v37 = vmul.f32 %v760_v25, %v4848_v15  ;;  %v768_v38 = vmul.f32 %v760_v25, %v4845_v13  ;;  %s4076_s8 = sld [smem:[#allocation8 + $0x1c]] }
  0x49   : > { %v947_v28 = vrot.slane %v761_v26, 1  ;;  %v948_v29 = vrot.slane %v762_v27, 1  ;;  %v950_v34 = vrot.slane %v764_v31, 1  ;;  %v766_v39 = vmul.f32 %v760_v25, %v4830_v7  ;;  %s4070_s21 = sld [smem:[#allocation8 + $0x16]] }
  0x4a   : > { %v951_v35 = vrot.slane %v765_v32, 1  ;;  %v949_v36 = vrot.slane %v763_v33, 1  ;;  %v953_v40 = vrot.slane %v767_v37, 1  ;;  %v954_v41 = vrot.slane %v768_v38, 1  ;;  %s4077_s22 = sld [smem:[#allocation8 + $0x1d]] }
  0x4b   : > { %v952_v42 = vrot.slane %v766_v39, 1  ;;  %v780_v43 = vstv %s4055_s29  ;;  %v800_v50 = vstv %s4057_s10  ;;  %v820_v61 = vstv %s4059_s30  ;;  %s4072_s1 = sld [smem:[#allocation8 + $0x18]] }
  0x4c   : > { %v782_v44 = vmul.f32 %v780_v43, %v4836_v9  ;;  %v783_v45 = vmul.f32 %v780_v43, %v4818_v2  ;;  %v781_v46 = vmul.f32 %v780_v43, %v4821_v3  ;;  %v785_v47 = vmul.f32 %v780_v43, %v4815_v1  ;;  %s4062_s25 = sld [smem:[#allocation8 + $0xe]] }
  0x4d   : > { %877 = vrot.lane.b32.xlu2 %v726_v10, %s4582_s12  ;;  %873 = vrot.lane.b32.xlu1 %v724_v11, %s4582_s12  ;;  %v786_v48 = vmul.f32 %v780_v43, %v4830_v7  ;;  %v784_v49 = vmul.f32 %v780_v43, %v4833_v8  ;;  %v788_v51 = vmul.f32 %v780_v43, %v4845_v13  ;;  %v730_v33 = vstv %s4050_s23  ;;  %s4068_s29 = sld [smem:[#allocation8 + $0x14]] }
  0x4e   : > { %869 = vrot.lane.b32.xlu0 %v722_v12, %s4582_s12  ;;  %v801_v52 = vmul.f32 %v800_v50, %v4821_v3  ;;  %v787_v53 = vmul.f32 %v780_v43, %v4848_v15  ;;  %v803_v54 = vmul.f32 %v800_v50, %v4818_v2  ;;  %v804_v55 = vmul.f32 %v800_v50, %v4833_v8  ;;  %s4066_s10 = sld [smem:[#allocation8 + $0x12]] }
  0x4f   : > { %v802_v56 = vmul.f32 %v800_v50, %v4836_v9  ;;  %v806_v58 = vmul.f32 %v800_v50, %v4830_v7  ;;  %v807_v59 = vmul.f32 %v800_v50, %v4848_v15  ;;  %v805_v60 = vmul.f32 %v800_v50, %v4815_v1  ;;  %s4073_s30 = sld [smem:[#allocation8 + $0x19]] }
  0x50   : > { %v821_v63 = vmul.f32 %v820_v61, %v4821_v3  ;;  %v822_v0 = vmul.f32 %v820_v61, %v4836_v9  ;;  %v808_v4 = vmul.f32 %v800_v50, %v4845_v13  ;;  %v824_v6 = vmul.f32 %v820_v61, %v4833_v8  ;;  %s4075_s23 = sld [smem:[#allocation8 + $0x1b]] }
  0x51   : > { %v825_v10 = vmul.f32 %v820_v61, %v4815_v1  ;;  %v823_v11 = vmul.f32 %v820_v61, %v4818_v2  ;;  %v737_v50 = vmul.f32 %v730_v33, %v4848_v15  ;;  %s4133_s20 = sld [smem:[#allocation24 + $0x1]] }
  0x55   : > { %881 = vrot.lane.b32.xlu1 %v728_v16, %s4582_s12  ;;  %907 = vrot.lane.b32.xlu2 %v741_v17, %s4582_s12  ;;  %v827_v17 = vmul.f32 %v820_v61, %v4848_v15 }
  0x56   : > { %879 = vrot.lane.b32.xlu0 %v727_v18, %s4582_s12  ;;  %v828_v18 = vmul.f32 %v820_v61, %v4845_v13 }
  0x5d   : > { %911 = vrot.lane.b32.xlu1 %v743_v19, %s4582_s12  ;;  %913 = vrot.lane.b32.xlu2 %v744_v20, %s4582_s12  ;;  %v826_v19 = vmul.f32 %v820_v61, %v4830_v7  ;;  %v840_v20 = vstv %s4061_s18  ;;  %s4069_s18 = sld [smem:[#allocation8 + $0x15]] }
  0x5e   : > { %909 = vrot.lane.b32.xlu0 %v742_v21, %s4582_s12  ;;  %v843_v25 = vmul.f32 %v840_v20, %v4818_v2  ;;  %v841_v26 = vmul.f32 %v840_v20, %v4821_v3  ;;  %v846_v31 = vmul.f32 %v840_v20, %v4830_v7  ;;  %v844_v32 = vmul.f32 %v840_v20, %v4833_v8 }
  0x5f   : > { %v848_v39 = vmul.f32 %v840_v20, %v4845_v13 }
  0x65   : > { %917 = vrot.lane.b32.xlu1 %v746_v22, %s4582_s12  ;;  %919 = vrot.lane.b32.xlu2 %v747_v23, %s4582_s12 }
  0x66   : > { %915 = vrot.lane.b32.xlu0 %v745_v24, %s4582_s12  ;;  %v842_v24 = vmul.f32 %v840_v20, %v4836_v9 }
  0x6d   : > { %955 = vrot.lane.b32.xlu1 %v947_v28, %s4583_s28  ;;  %957 = vrot.lane.b32.xlu2 %v948_v29, %s4583_s28 }
  0x6e   : > { %921 = vrot.lane.b32.xlu0 %v748_v30, %s4582_s12  ;;  %v845_v30 = vmul.f32 %v840_v20, %v4815_v1 }
  0x75   : > { %961 = vrot.lane.b32.xlu1 %v950_v34, %s4583_s28  ;;  %963 = vrot.lane.b32.xlu2 %v951_v35, %s4583_s28  ;;  %v731_v34 = vmul.f32 %v730_v33, %v4821_v3 }
  0x76   : > { %959 = vrot.lane.b32.xlu0 %v949_v36, %s4583_s28 }
  0x7d   : > { %967 = vrot.lane.b32.xlu1 %v953_v40, %s4583_s28  ;;  %969 = vrot.lane.b32.xlu2 %v954_v41, %s4583_s28  ;;  %v847_v40 = vmul.f32 %v840_v20, %v4848_v15  ;;  %v734_v41 = vmul.f32 %v730_v33, %v4833_v8 }
  0x7e   : > { %965 = vrot.lane.b32.xlu0 %v952_v42, %s4583_s28  ;;  %v733_v42 = vmul.f32 %v730_v33, %v4818_v2 }
  0x85   : > { %997 = vrot.lane.b32.xlu1 %v782_v44, %s4582_s12  ;;  %999 = vrot.lane.b32.xlu2 %v783_v45, %s4582_s12  ;;  %v732_v45 = vmul.f32 %v730_v33, %v4836_v9 }
  0x86   : > { %995 = vrot.lane.b32.xlu0 %v781_v46, %s4582_s12 }
  0x8d   : > { %1003 = vrot.lane.b32.xlu1 %v785_v47, %s4582_s12  ;;  %1005 = vrot.lane.b32.xlu2 %v786_v48, %s4582_s12 }
  0x8e   : > { %1001 = vrot.lane.b32.xlu0 %v784_v49, %s4582_s12 }
  0x95   : > { %1009 = vrot.lane.b32.xlu1 %v788_v51, %s4582_s12  ;;  %1035 = vrot.lane.b32.xlu2 %v801_v52, %s4582_s12  ;;  %v736_v51 = vmul.f32 %v730_v33, %v4830_v7 }
  0x96   : > { %1007 = vrot.lane.b32.xlu0 %v787_v53, %s4582_s12 }
  0x9d   : > { %1039 = vrot.lane.b32.xlu1 %v803_v54, %s4582_s12  ;;  %1041 = vrot.lane.b32.xlu2 %v804_v55, %s4582_s12  ;;  %v735_v54 = vmul.f32 %v730_v33, %v4815_v1 }
  0x9e   : > { %1037 = vrot.lane.b32.xlu0 %v802_v56, %s4582_s12 }
  0x9f   : > { %v4910_v57 = vpop.permute.xlu2 %875 }
  0xa0   : > { %6933 = vst [vmem:[#allocation31_spill] sm:$0xff] %v4910_v57 }
  0xa5   : > { %1045 = vrot.lane.b32.xlu1 %v806_v58, %s4582_s12  ;;  %1047 = vrot.lane.b32.xlu2 %v807_v59, %s4582_s12 }
  0xa6   : > { %1043 = vrot.lane.b32.xlu0 %v805_v60, %s4582_s12  ;;  %v770_v60 = vstv %s4054_s26  ;;  %s4586_s26 = smov 1  }
  0xa7   : > { %v4918_v62 = vpop.permute.xlu2 %877  ;;  %v772_v20 = vmul.f32 %v770_v60, %v4836_v9 }
  0xa8   : > { %6934 = vst [vmem:[#allocation32_spill] sm:$0xff] %v4918_v62 }
  0xad   : > { %1075 = vrot.lane.b32.xlu1 %v821_v63, %s4582_s12  ;;  %1077 = vrot.lane.b32.xlu2 %v822_v0, %s4582_s12  ;;  %v738_v0 = vmul.f32 %v730_v33, %v4845_v13 }
  0xae   : > { %1049 = vrot.lane.b32.xlu0 %v808_v4, %s4582_s12 }
  0xaf   : > { %v908_v5 = vpop.permute.xlu2 %907 }
  0xb0   : > { %v931_v38 = vadd.f32 %v908_v5, %v731_v34  ;;  %v773_v5 = vmul.f32 %v770_v60, %v4818_v2 }
  0xb5   : > { %1081 = vrot.lane.b32.xlu1 %v824_v6, %s4582_s12  ;;  %1083 = vrot.lane.b32.xlu2 %v825_v10, %s4582_s12 }
  0xb6   : > { %1079 = vrot.lane.b32.xlu0 %v823_v11, %s4582_s12 }
  0xb7   : > { %v4932_v12 = vpop.permute.xlu1 %871  ;;  %v914_v14 = vpop.permute.xlu2 %913 }
  0xb8   : > { %6935 = vst [vmem:[#allocation33_spill] sm:$0xff] %v4932_v12  ;;  %v4934_v16 = vpop.permute.xlu0 %867  ;;  %v934_v47 = vadd.f32 %v914_v14, %v734_v41  ;;  %v5014_v41 = vstv %s4074_s27  ;;  %s4058_s27 = sld [smem:[#allocation8 + $0xa]] }
  0xb9   : > { %6936 = vst [vmem:[#allocation34_spill] sm:$0xff] %v4934_v16 }
  0xbd   : > { %1087 = vrot.lane.b32.xlu1 %v827_v17, %s4582_s12  ;;  %1089 = vrot.lane.b32.xlu2 %v828_v18, %s4582_s12 }
  0xbe   : > { %1085 = vrot.lane.b32.xlu0 %v826_v19, %s4582_s12  ;;  %v776_v19 = vmul.f32 %v770_v60, %v4830_v7 }
  0xbf   : > { %v4942_v21 = vpop.permute.xlu1 %873  ;;  %v920_v22 = vpop.permute.xlu2 %919 }
  0xc0   : > { %6937 = vst [vmem:[#allocation35_spill] sm:$0xff] %v4942_v21  ;;  %v4944_v23 = vpop.permute.xlu0 %869  ;;  %v937_v56 = vadd.f32 %v920_v22, %v737_v50  ;;  %v771_v22 = vmul.f32 %v770_v60, %v4821_v3  ;;  %v777_v50 = vmul.f32 %v770_v60, %v4848_v15 }
  0xc1   : > { %6938 = vst [vmem:[#allocation36_spill] sm:$0xff] %v4944_v23 }
  0xc5   : > { %1117 = vrot.lane.b32.xlu1 %v842_v24, %s4582_s12  ;;  %1119 = vrot.lane.b32.xlu2 %v843_v25, %s4582_s12 }
  0xc6   : > { %1115 = vrot.lane.b32.xlu0 %v841_v26, %s4582_s12 }
  0xc7   : > { %v4952_v27 = vpop.permute.xlu1 %881  ;;  %v4954_v28 = vpop.permute.xlu2 %957 }
  0xc8   : > { %6939 = vst [vmem:[#allocation37_spill] sm:$0xff] %v4952_v27  ;;  %v4956_v29 = vpop.permute.xlu0 %879 }
  0xc9   : > { %6940 = vst [vmem:[#allocation38_spill] sm:$0xff] %v4956_v29  ;;  %v5194_v29 = vstv %s4068_s29  ;;  %s4071_s29 = sld [smem:[#allocation8 + $0x17]] }
  0xcd   : > { %1123 = vrot.lane.b32.xlu1 %v845_v30, %s4582_s12  ;;  %1125 = vrot.lane.b32.xlu2 %v846_v31, %s4582_s12 }
  0xce   : > { %1121 = vrot.lane.b32.xlu0 %v844_v32, %s4582_s12 }
  0xcf   : > { %v912_v35 = vpop.permute.xlu1 %911  ;;  %v4965_v36 = vpop.permute.xlu2 %963 }
  0xd0   : > { %6941 = vst [vmem:[#allocation39_spill] sm:$0xff] %v4965_v36  ;;  %v910_v37 = vpop.permute.xlu0 %909  ;;  %v933_v48 = vadd.f32 %v912_v35, %v733_v42 }
  0xd1   : > { %v932_v49 = vadd.f32 %v910_v37, %v732_v45  ;;  %v775_v37 = vmul.f32 %v770_v60, %v4815_v1 }
  0xd5   : > { %1129 = vrot.lane.b32.xlu1 %v848_v39, %s4582_s12  ;;  %1155 = vrot.lane.b32.xlu2 %v931_v38, %s4584_s6  ;;  %v774_v38 = vmul.f32 %v770_v60, %v4833_v8 }
  0xd6   : > { %1127 = vrot.lane.b32.xlu0 %v847_v40, %s4582_s12 }
  0xd7   : > { %v918_v43 = vpop.permute.xlu1 %917  ;;  %v4974_v44 = vpop.permute.xlu2 %969 }
  0xd8   : > { %6942 = vst [vmem:[#allocation40_spill] sm:$0xff] %v4974_v44  ;;  %v916_v46 = vpop.permute.xlu0 %915  ;;  %v936_v58 = vadd.f32 %v918_v43, %v736_v51  ;;  %v5284_v44 = vstv %s4075_s23  ;;  %s4063_s23 = sld [smem:[#allocation8 + $0xf]] }
  0xd9   : > { %v935_v59 = vadd.f32 %v916_v46, %v735_v54 }
  0xdd   : > { %1159 = vrot.lane.b32.xlu1 %v933_v48, %s4584_s6  ;;  %1161 = vrot.lane.b32.xlu2 %v934_v47, %s4584_s6  ;;  %v1590_v47 = vmul.f32 %v5014_v41, %v4836_v9 }
  0xde   : > { %1157 = vrot.lane.b32.xlu0 %v932_v49, %s4584_s6  ;;  %v778_v49 = vmul.f32 %v770_v60, %v4845_v13 }
  0xdf   : > { %v4982_v52 = vpop.permute.xlu1 %955  ;;  %v1000_v53 = vpop.permute.xlu2 %999 }
  0xe0   : > { %v922_v55 = vpop.permute.xlu0 %921  ;;  %v1021_v10 = vadd.f32 %v1000_v53, %v773_v5  ;;  %v5023_v53 = vstv %s4076_s8  ;;  %s4064_s8 = sld [smem:[#allocation8 + $0x10]] }
  0xe1   : > { %v938_v6 = vadd.f32 %v922_v55, %v738_v0 }
  0xe2   : > { %v1197_v18 = vrot.slane %v1021_v10, 1  ;;  %v1610_v10 = vmul.f32 %v5023_v53, %v4836_v9 }
  0xe5   : > { %1165 = vrot.lane.b32.xlu1 %v936_v58, %s4584_s6  ;;  %1167 = vrot.lane.b32.xlu2 %v937_v56, %s4584_s6 }
  0xe6   : > { %1163 = vrot.lane.b32.xlu0 %v935_v59, %s4584_s6 }
  0xe7   : > { %v4988_v61 = vpop.permute.xlu1 %961  ;;  %v1006_v63 = vpop.permute.xlu2 %1005 }
  0xe8   : > { %6943 = vst [vmem:[#allocation41_spill] sm:$0xff] %v4988_v61  ;;  %v4991_v4 = vpop.permute.xlu0 %959  ;;  %v1024_v24 = vadd.f32 %v1006_v63, %v776_v19  ;;  %v1611_v63 = vmul.f32 %v5023_v53, %v4818_v2  ;;  %v1592_v19 = vmul.f32 %v5014_v41, %v4833_v8 }
  0xea   : > { %v1200_v33 = vrot.slane %v1024_v24, 1  ;;  %v5051_v24 = vstv %s4077_s22  ;;  %s4065_s22 = sld [smem:[#allocation8 + $0x11]] }
  0xee   : > { %1169 = vrot.lane.b32.xlu0 %v938_v6, %s4584_s6  ;;  %v1591_v6 = vmul.f32 %v5014_v41, %v4818_v2 }
  0xef   : > { %v4995_v11 = vpop.permute.xlu1 %967  ;;  %v4997_v14 = vpop.permute.xlu2 %1035 }
  0xf0   : > { %6944 = vst [vmem:[#allocation42_spill] sm:$0xff] %v4995_v11  ;;  %v4999_v17 = vpop.permute.xlu0 %965 }
  0xf1   : > { %6945 = vst [vmem:[#allocation43_spill] sm:$0xff] %v4997_v14 }
  0xf2   : > { %6946 = vst [vmem:[#allocation44_spill] sm:$0xff] %v4999_v17 }
  0xf6   : > { %1207 = vrot.lane.b32.xlu0 %v1197_v18, %s4585_s0 }
  0xf7   : > { %v998_v25 = vpop.permute.xlu1 %997  ;;  %v5005_v26 = vpop.permute.xlu2 %1041 }
  0xf8   : > { %6947 = vst [vmem:[#allocation45_spill] sm:$0xff] %v5005_v26  ;;  %v1020_v30 = vadd.f32 %v998_v25, %v772_v20  ;;  %v996_v31 = vpop.permute.xlu0 %995  ;;  %v5047_v20 = vstv %s4070_s21  ;;  %s4060_s21 = sld [smem:[#allocation8 + $0xc]] }
  0xf9   : > { %v1019_v32 = vadd.f32 %v996_v31, %v771_v22  ;;  %v1550_v31 = vmul.f32 %v5047_v20, %v4836_v9 }
  0xfa   : > { %v1196_v34 = vrot.slane %v1020_v30, 1  ;;  %v1589_v30 = vmul.f32 %v5014_v41, %v4821_v3 }
  0xfb   : > { %v1195_v35 = vrot.slane %v1019_v32, 1  ;;  %v1620_v32 = vmul.f32 %v5051_v24, %v4836_v9 }
  0xfc   : > { %1205 = vrot.lane.b32.xlu2 %v1196_v34, %s4585_s0 }
  0xfd   : > { %1203 = vrot.lane.b32.xlu1 %v1195_v35, %s4585_s0  ;;  %v1612_v35 = vmul.f32 %v5023_v53, %v4833_v8 }
  0xfe   : > { %1213 = vrot.lane.b32.xlu0 %v1200_v33, %s4585_s0 }
  0xff   : > { %v1004_v39 = vpop.permute.xlu1 %1003  ;;  %v5012_v40 = vpop.permute.xlu2 %1047 }
 0x100   : > { %6948 = vst [vmem:[#allocation46_spill] sm:$0xff] %v5012_v40  ;;  %v1023_v42 = vadd.f32 %v1004_v39, %v775_v37  ;;  %v1002_v43 = vpop.permute.xlu0 %1001  ;;  %v1613_v39 = vmul.f32 %v5023_v53, %v4815_v1 }
 0x101   : > { %v1022_v45 = vadd.f32 %v1002_v43, %v774_v38  ;;  %v1609_v38 = vmul.f32 %v5023_v53, %v4821_v3 }
 0x102   : > { %v1199_v46 = vrot.slane %v1023_v42, 1 }
 0x103   : > { %v1198_v48 = vrot.slane %v1022_v45, 1  ;;  %v1593_v45 = vmul.f32 %v5014_v41, %v4815_v1 }
 0x104   : > { %1211 = vrot.lane.b32.xlu2 %v1199_v46, %s4585_s0  ;;  %v1551_v46 = vmul.f32 %v5047_v20, %v4818_v2 }
 0x105   : > { %1209 = vrot.lane.b32.xlu1 %v1198_v48, %s4585_s0 }
 0x106   : > { %1845 = vrot.lane.b32.xlu0 %v1590_v47, %s4582_s12  ;;  %v1552_v47 = vmul.f32 %v5047_v20, %v4833_v8 }
 0x107   : > { %v1010_v51 = vpop.permute.xlu1 %1009  ;;  %v5025_v55 = vpop.permute.xlu2 %1077 }
 0x108   : > { %v1026_v54 = vadd.f32 %v1010_v51, %v778_v49  ;;  %v1008_v56 = vpop.permute.xlu0 %1007  ;;  %v1549_v51 = vmul.f32 %v5047_v20, %v4821_v3 }
 0x109   : > { %v1025_v58 = vadd.f32 %v1008_v56, %v777_v50  ;;  %v1619_v56 = vmul.f32 %v5051_v24, %v4821_v3 }
 0x10a   : > { %v1202_v59 = vrot.slane %v1026_v54, 1  ;;  %v1621_v54 = vmul.f32 %v5051_v24, %v4818_v2 }
 0x10b   : > { %v1201_v0 = vrot.slane %v1025_v58, 1 }
 0x10c   : > { %1217 = vrot.lane.b32.xlu2 %v1202_v59, %s4585_s0 }
 0x10d   : > { %1215 = vrot.lane.b32.xlu1 %v1201_v0, %s4585_s0  ;;  %v1594_v0 = vmul.f32 %v5014_v41, %v4830_v7 }
 0x10e   : > { %1887 = vrot.lane.b32.xlu0 %v1611_v63, %s4582_s12  ;;  %v1614_v63 = vmul.f32 %v5023_v53, %v4830_v7 }
 0x10f   : > { %v5032_v60 = vpop.permute.xlu1 %1039  ;;  %v5040_v18 = vpop.permute.xlu2 %1083 }
 0x110   : > { %6949 = vst [vmem:[#allocation47_spill] sm:$0xff] %v5032_v60  ;;  %v5034_v5 = vpop.permute.xlu0 %1037 }
 0x111   : > { %6950 = vst [vmem:[#allocation48_spill] sm:$0xff] %v5034_v5 }
 0x114   : > { %1847 = vrot.lane.b32.xlu2 %v1591_v6, %s4582_s12 }
 0x115   : > { %1885 = vrot.lane.b32.xlu1 %v1610_v10, %s4582_s12  ;;  %v1595_v10 = vmul.f32 %v5014_v41, %v4848_v15 }
 0x116   : > { %1849 = vrot.lane.b32.xlu0 %v1592_v19, %s4582_s12 }
 0x117   : > { %v5049_v22 = vpop.permute.xlu1 %1045  ;;  %v5061_v33 = vpop.permute.xlu2 %1089 }
 0x118   : > { %6951 = vst [vmem:[#allocation49_spill] sm:$0xff] %v5049_v22  ;;  %v5053_v25 = vpop.permute.xlu0 %1043 }
 0x119   : > { %6952 = vst [vmem:[#allocation50_spill] sm:$0xff] %v5053_v25 }
 0x11c   : > { %1843 = vrot.lane.b32.xlu2 %v1589_v30, %s4582_s12 }
 0x11d   : > { %1765 = vrot.lane.b32.xlu1 %v1550_v31, %s4582_s12  ;;  %v1553_v31 = vmul.f32 %v5047_v20, %v4815_v1 }
 0x11e   : > { %2061 = vrot.lane.b32.xlu0 %v1620_v32, %s4584_s6  ;;  %v1622_v32 = vmul.f32 %v5051_v24, %v4833_v8 }
 0x11f   : > { %v5070_v37 = vpop.permute.xlu1 %1075  ;;  %v5078_v42 = vpop.permute.xlu2 %1119 }
 0x120   : > { %v5066_v34 = vpop.permute.xlu0 %1049 }
 0x121   : > { %6953 = vst [vmem:[#allocation51_spill] sm:$0xff] %v5066_v34 }
 0x124   : > { %1889 = vrot.lane.b32.xlu2 %v1612_v35, %s4582_s12  ;;  %v1554_v35 = vmul.f32 %v5047_v20, %v4830_v7 }
 0x125   : > { %1883 = vrot.lane.b32.xlu1 %v1609_v38, %s4582_s12 }
 0x126   : > { %1891 = vrot.lane.b32.xlu0 %v1613_v39, %s4582_s12 }
 0x127   : > { %v5089_v48 = vpop.permute.xlu1 %1081  ;;  %v5094_v49 = vpop.permute.xlu2 %1125 }
 0x128   : > { %v5081_v43 = vpop.permute.xlu0 %1079 }
 0x12c   : > { %1851 = vrot.lane.b32.xlu2 %v1593_v45, %s4582_s12  ;;  %v1623_v45 = vmul.f32 %v5051_v24, %v4815_v1 }
 0x12d   : > { %1767 = vrot.lane.b32.xlu1 %v1551_v46, %s4582_s12 }
 0x12e   : > { %1769 = vrot.lane.b32.xlu0 %v1552_v47, %s4582_s12  ;;  %v1615_v47 = vmul.f32 %v5023_v53, %v4848_v15 }
 0x12f   : > { %v5105_v58 = vpop.permute.xlu1 %1087  ;;  %v5115_v6 = vpop.permute.xlu2 %1155 }
 0x130   : > { %v5096_v50 = vpop.permute.xlu0 %1085  ;;  %6954 = vst [vmem:[#allocation52_spill] sm:$0xff] %v5115_v6 }
 0x134   : > { %1763 = vrot.lane.b32.xlu2 %v1549_v51, %s4582_s12  ;;  %v1624_v51 = vmul.f32 %v5051_v24, %v4830_v7 }
 0x135   : > { %2063 = vrot.lane.b32.xlu1 %v1621_v54, %s4584_s6 }
 0x136   : > { %2059 = vrot.lane.b32.xlu0 %v1619_v56, %s4584_s6 }
 0x137   : > { %v5122_v19 = vpop.permute.xlu1 %1117  ;;  %v5132_v38 = vpop.permute.xlu2 %1161 }
 0x138   : > { %v5109_v59 = vpop.permute.xlu0 %1115  ;;  %6955 = vst [vmem:[#allocation53_spill] sm:$0xff] %v5132_v38 }
 0x13c   : > { %1893 = vrot.lane.b32.xlu2 %v1614_v63, %s4582_s12  ;;  %v1616_v63 = vmul.f32 %v5023_v53, %v4845_v13 }
 0x13d   : > { %1853 = vrot.lane.b32.xlu1 %v1594_v0, %s4582_s12  ;;  %v1596_v0 = vmul.f32 %v5014_v41, %v4845_v13  ;;  %v1625_v41 = vmul.f32 %v5051_v24, %v4848_v15 }
 0x13e   : > { %1855 = vrot.lane.b32.xlu0 %v1595_v10, %s4582_s12  ;;  %v1556_v10 = vmul.f32 %v5047_v20, %v4845_v13 }
 0x13f   : > { %v5141_v46 = vpop.permute.xlu1 %1123  ;;  %v5149_v54 = vpop.permute.xlu2 %1167 }
 0x140   : > { %v5124_v30 = vpop.permute.xlu0 %1121  ;;  %6956 = vst [vmem:[#allocation54_spill] sm:$0xff] %v5149_v54  ;;  %v1626_v54 = vmul.f32 %v5051_v24, %v4845_v13 }
 0x144   : > { %1771 = vrot.lane.b32.xlu2 %v1553_v31, %s4582_s12 }
 0x145   : > { %2065 = vrot.lane.b32.xlu1 %v1622_v32, %s4584_s6 }
 0x146   : > { %1773 = vrot.lane.b32.xlu0 %v1554_v35, %s4582_s12  ;;  %v5167_v35 = vstv %s4072_s1  ;;  %s4067_s1 = sld [smem:[#allocation8 + $0x13]] }
 0x147   : > { %v5160_v31 = vpop.permute.xlu1 %1129  ;;  %v1571_v27 = vmul.f32 %v5167_v35, %v4818_v2  ;;  %v1572_v38 = vmul.f32 %v5167_v35, %v4833_v8 }
 0x148   : > { %v5137_v39 = vpop.permute.xlu0 %1127 }
 0x14c   : > { %2067 = vrot.lane.b32.xlu2 %v1623_v45, %s4584_s6  ;;  %v1555_v45 = vmul.f32 %v5047_v20, %v4848_v15 }
 0x14d   : > { %1895 = vrot.lane.b32.xlu1 %v1615_v47, %s4582_s12  ;;  %v1570_v47 = vmul.f32 %v5167_v35, %v4836_v9 }
 0x14e   : > { %2069 = vrot.lane.b32.xlu0 %v1624_v51, %s4584_s6 }
 0x14f   : > { %v5178_v51 = vpop.permute.xlu1 %1159 }
 0x150   : > { %v5152_v56 = vpop.permute.xlu0 %1157  ;;  %6959 = vst [vmem:[#allocation57_spill] sm:$0xff] %v5178_v51  ;;  %v1569_v51 = vmul.f32 %v5167_v35, %v4821_v3 }
 0x151   : > { %6957 = vst [vmem:[#allocation55_spill] sm:$0xff] %v5152_v56 }
 0x154   : > { %1897 = vrot.lane.b32.xlu2 %v1616_v63, %s4582_s12  ;;  %v5181_v63 = vstv %s4062_s25  ;;  %s4587_s25 = smov 124  }
 0x155   : > { %1857 = vrot.lane.b32.xlu1 %v1596_v0, %s4582_s12  ;;  %v852_v20 = vmul.f32 %v5181_v63, %v4836_v9  ;;  %v854_v6 = vmul.f32 %v5181_v63, %v4833_v8  ;;  %v856_v25 = vmul.f32 %v5181_v63, %v4830_v7 }
 0x156   : > { %1777 = vrot.lane.b32.xlu0 %v1556_v10, %s4582_s12  ;;  %v5165_v32 = vpop.permute.xlu2 %1205 }
 0x158   : > { %v5169_v53 = vpop.permute.xlu0 %1163 }
 0x159   : > { %6958 = vst [vmem:[#allocation56_spill] sm:$0xff] %v5169_v53 }
 0x15c   : > { %2071 = vrot.lane.b32.xlu2 %v1625_v41, %s4584_s6  ;;  %v851_v41 = vmul.f32 %v5181_v63, %v4821_v3 }
 0x15d   : > { %1775 = vrot.lane.b32.xlu1 %v1555_v45, %s4582_s12 }
 0x15e   : > { %1805 = vrot.lane.b32.xlu0 %v1570_v47, %s4582_s12  ;;  %v5184_v0 = vpop.permute.xlu2 %1211  ;;  %v1530_v47 = vmul.f32 %v5194_v29, %v4836_v9 }
 0x15f   : > { %6960 = vst [vmem:[#allocation58_spill] sm:$0xff] %v5184_v0 }
 0x160   : > { %v5186_v10 = vpop.permute.xlu0 %1169 }
 0x161   : > { %6961 = vst [vmem:[#allocation59_spill] sm:$0xff] %v5186_v10  ;;  %v5203_v10 = vpop.permute.xlu1 %1165 }
 0x162   : > { %6963 = vst [vmem:[#allocation61_spill] sm:$0xff] %v5203_v10 }
 0x164   : > { %1293 = vrot.lane.b32.xlu2 %v852_v20, %s4584_s6  ;;  %v853_v20 = vmul.f32 %v5181_v63, %v4818_v2 }
 0x165   : > { %2073 = vrot.lane.b32.xlu1 %v1626_v54, %s4584_s6  ;;  %v1716_v54 = vrot.slane %v1530_v47, 1  ;;  %v5224_v47 = vstv %s4073_s30  ;;  %s4052_s30 = sld [smem:[#allocation8 + $0x4]] }
 0x166   : > { %1291 = vrot.lane.b32.xlu0 %v851_v41, %s4584_s6  ;;  %v5199_v45 = vpop.permute.xlu2 %1217  ;;  %v5213_v41 = vstv %s4066_s10  ;;  %s4588_s10 = smov 125  }
 0x167   : > { %6962 = vst [vmem:[#allocation60_spill] sm:$0xff] %v5199_v45  ;;  %v1510_v57 = vmul.f32 %v5213_v41, %v4836_v9  ;;  %v1573_v45 = vmul.f32 %v5167_v35, %v4815_v1 }
 0x168   : > { %v5205_v24 = vpop.permute.xlu0 %1207 }
 0x16c   : > { %1807 = vrot.lane.b32.xlu2 %v1571_v27, %s4582_s12  ;;  %v1580_v27 = vmul.f32 %v5224_v47, %v4836_v9 }
 0x16d   : > { %1295 = vrot.lane.b32.xlu1 %v853_v20, %s4584_s6 }
 0x16e   : > { %v1848_v62 = vpop.permute.xlu2 %1847  ;;  %1725 = vrot.lane.b32.xlu0 %v1716_v54, %s4583_s28 }
 0x16f   : > { %v5216_v10 = vpop.permute.xlu1 %1203 }
 0x170   : > { %6964 = vst [vmem:[#allocation62_spill] sm:$0xff] %v5216_v10  ;;  %v5218_v53 = vpop.permute.xlu0 %1213 }
 0x171   : > { %6965 = vst [vmem:[#allocation63_spill] sm:$0xff] %v5218_v53  ;;  %v1579_v53 = vmul.f32 %v5224_v47, %v4821_v3 }
 0x174   : > { %1677 = vrot.lane.b32.xlu2 %v1510_v57, %s4582_s12  ;;  %v1531_v57 = vmul.f32 %v5194_v29, %v4818_v2 }
 0x175   : > { %1297 = vrot.lane.b32.xlu1 %v854_v6, %s4584_s6 }
 0x176   : > { %v5230_v20 = vpop.permute.xlu2 %1843 }
 0x177   : > { %v5232_v54 = vpop.permute.xlu1 %1209 }
 0x178   : > { %6966 = vst [vmem:[#allocation64_spill] sm:$0xff] %v5232_v54  ;;  %v1846_v16 = vpop.permute.xlu0 %1845  ;;  %v1867_v54 = vadd.f32 %v5230_v20, %v1579_v53  ;;  %v857_v53 = vmul.f32 %v5181_v63, %v4848_v15 }
 0x179   : > { %v1868_v21 = vadd.f32 %v1846_v16, %v1580_v27  ;;  %v1581_v16 = vmul.f32 %v5224_v47, %v4818_v2 }
 0x17a   : > { %v2011_v36 = vrot.slane %v1867_v54, 1 }
 0x17b   : > { %v2012_v12 = vrot.slane %v1868_v21, 1  ;;  %v1511_v21 = vmul.f32 %v5213_v41, %v4818_v2 }
 0x17c   : > { %1809 = vrot.lane.b32.xlu2 %v1572_v38, %s4582_s12  ;;  %v855_v38 = vmul.f32 %v5181_v63, %v4815_v1 }
 0x17d   : > { %1803 = vrot.lane.b32.xlu1 %v1569_v51, %s4582_s12  ;;  %2021 = vrot.lane.b32.xlu0 %v2012_v12, %s4585_s0  ;;  %v1717_v51 = vrot.slane %v1531_v57, 1  ;;  %v1869_v12 = vadd.f32 %v1848_v62, %v1581_v16  ;;  %v1529_v62 = vmul.f32 %v5194_v29, %v4821_v3 }
 0x17e   : > { %v5243_v6 = vpop.permute.xlu2 %1889 }
 0x17f   : > { %v5245_v56 = vpop.permute.xlu1 %1215  ;;  %v2013_v22 = vrot.slane %v1869_v12, 1  ;;  %v1715_v12 = vrot.slane %v1529_v62, 1  ;;  %v1582_v62 = vmul.f32 %v5224_v47, %v4833_v8 }
 0x180   : > { %6967 = vst [vmem:[#allocation65_spill] sm:$0xff] %v5245_v56  ;;  %v5249_v27 = vpop.permute.xlu0 %1887 }
 0x184   : > { %1679 = vrot.lane.b32.xlu2 %v1511_v21, %s4582_s12  ;;  %v5271_v21 = vstv %s4069_s18  ;;  %s4056_s18 = sld [smem:[#allocation8 + $0x8]] }
 0x185   : > { %1299 = vrot.lane.b32.xlu1 %v855_v38, %s4584_s6  ;;  %1727 = vrot.lane.b32.xlu0 %v1717_v51, %s4583_s28  ;;  %v1512_v51 = vmul.f32 %v5213_v41, %v4833_v8 }
 0x186   : > { %v5258_v23 = vpop.permute.xlu2 %1851 }
 0x187   : > { %v1886_v40 = vpop.permute.xlu1 %1885 }
 0x188   : > { %v1850_v34 = vpop.permute.xlu0 %1849 }
 0x189   : > { %v1870_v60 = vadd.f32 %v1850_v34, %v1582_v62 }
 0x18c   : > { %2023 = vrot.lane.b32.xlu2 %v2013_v22, %s4585_s0  ;;  %v1509_v22 = vmul.f32 %v5213_v41, %v4821_v3 }
 0x18d   : > { %1811 = vrot.lane.b32.xlu1 %v1573_v45, %s4582_s12  ;;  %1301 = vrot.lane.b32.xlu0 %v856_v25, %s4584_s6  ;;  %v1540_v25 = vmul.f32 %v5271_v21, %v4836_v9  ;;  %v1532_v45 = vmul.f32 %v5194_v29, %v4833_v8 }
 0x18e   : > { %v5269_v57 = vpop.permute.xlu2 %1763 }
 0x18f   : > { %v1766_v16 = vpop.permute.xlu1 %1765 }
 0x190   : > { %v2062_v38 = vpop.permute.xlu0 %2061  ;;  %v1788_v56 = vadd.f32 %v1766_v16, %v1540_v25 }
 0x192   : > { %v1964_v17 = vrot.slane %v1788_v56, 1 }
 0x194   : > { %1681 = vrot.lane.b32.xlu2 %v1512_v51, %s4582_s12  ;;  %v1574_v51 = vmul.f32 %v5167_v35, %v4830_v7 }
 0x195   : > { %1675 = vrot.lane.b32.xlu1 %v1509_v22, %s4582_s12  ;;  %1723 = vrot.lane.b32.xlu0 %v1715_v12, %s4583_s28  ;;  %v1600_v22 = vmul.f32 %v5284_v44, %v4836_v9  ;;  %v1718_v12 = vrot.slane %v1532_v45, 1  ;;  %v2014_v9 = vrot.slane %v1870_v60, 1  ;;  %v1513_v60 = vmul.f32 %v5213_v41, %v4815_v1 }
 0x196   : > { %v5286_v14 = vpop.permute.xlu2 %1893 }
 0x197   : > { %v5288_v11 = vpop.permute.xlu1 %1883  ;;  %v1908_v16 = vadd.f32 %v1886_v40, %v1600_v22  ;;  %v1601_v22 = vmul.f32 %v5284_v44, %v4818_v2 }
 0x198   : > { %v5292_v26 = vpop.permute.xlu0 %1891 }
 0x199   : > { %v2084_v0 = vadd.f32 %v2062_v38, %v1908_v16 }
 0x19b   : > { %v2140_v5 = vrot.slane %v2084_v0, 1 }
 0x19c   : > { %1813 = vrot.lane.b32.xlu2 %v1574_v51, %s4582_s12 }
 0x19d   : > { %1729 = vrot.lane.b32.xlu1 %v1718_v12, %s4583_s28  ;;  %1973 = vrot.lane.b32.xlu0 %v1964_v17, %s4585_s0  ;;  %v1533_v17 = vmul.f32 %v5194_v29, %v4815_v1 }
 0x19e   : > { %v5303_v25 = vpop.permute.xlu2 %1771 }
 0x19f   : > { %v1768_v61 = vpop.permute.xlu1 %1767  ;;  %v1719_v0 = vrot.slane %v1533_v17, 1 }
 0x1a0   : > { %v1770_v45 = vpop.permute.xlu0 %1769 }
 0x1a4   : > { %2025 = vrot.lane.b32.xlu2 %v2014_v9, %s4585_s0  ;;  %v1909_v9 = vadd.f32 %v5249_v27, %v1601_v22  ;;  %v1599_v22 = vmul.f32 %v5284_v44, %v4821_v3 }
 0x1a5   : > { %2019 = vrot.lane.b32.xlu1 %v2011_v36, %s4585_s0  ;;  %2149 = vrot.lane.b32.xlu0 %v2140_v5, %s4586_s26  ;;  %v1541_v36 = vmul.f32 %v5271_v21, %v4818_v2  ;;  %v1583_v5 = vmul.f32 %v5224_v47, %v4815_v1  ;;  %v1575_v1 = vmul.f32 %v5167_v35, %v4848_v15 }
 0x1a6   : > { %v5311_v40 = vpop.permute.xlu2 %2067  ;;  %v858_v2 = vmul.f32 %v5181_v63, %v4845_v13 }
 0x1a7   : > { %v2064_v34 = vpop.permute.xlu1 %2063  ;;  %v1789_v20 = vadd.f32 %v1768_v61, %v1541_v36  ;;  %v1871_v38 = vadd.f32 %v5258_v23, %v1583_v5 }
 0x1a8   : > { %v2060_v56 = vpop.permute.xlu0 %2059  ;;  %v2085_v61 = vadd.f32 %v2064_v34, %v1909_v9  ;;  %v1534_v34 = vmul.f32 %v5194_v29, %v4830_v7  ;;  %v1542_v9 = vmul.f32 %v5271_v21, %v4833_v8 }
 0x1a9   : > { %v1965_v12 = vrot.slane %v1789_v20, 1  ;;  %v2015_v16 = vrot.slane %v1871_v38, 1  ;;  %v1576_v38 = vmul.f32 %v5167_v35, %v4845_v13 }
 0x1aa   : > { %v2141_v27 = vrot.slane %v2085_v61, 1 }
 0x1ac   : > { %1683 = vrot.lane.b32.xlu2 %v1513_v60, %s4582_s12 }
 0x1ad   : > { %1303 = vrot.lane.b32.xlu1 %v857_v53, %s4584_s6  ;;  %1731 = vrot.lane.b32.xlu0 %v1719_v0, %s4583_s28  ;;  %v1514_v53 = vmul.f32 %v5213_v41, %v4830_v7  ;;  %v1539_v0 = vmul.f32 %v5271_v21, %v4821_v3  ;;  %v1790_v3 = vadd.f32 %v1770_v45, %v1542_v9 }
 0x1ae   : > { %v5324_v54 = vpop.permute.xlu2 %1897  ;;  %v1535_v45 = vmul.f32 %v5194_v29, %v4848_v15 }
 0x1af   : > { %v1854_v62 = vpop.permute.xlu1 %1853  ;;  %v1787_v63 = vadd.f32 %v5269_v57, %v1539_v0  ;;  %v1907_v57 = vadd.f32 %v5288_v11, %v1599_v22  ;;  %v1515_v22 = vmul.f32 %v5213_v41, %v4848_v15 }
 0x1b0   : > { %v5327_v51 = vpop.permute.xlu0 %1855 }
 0x1b1   : > { %v2083_v61 = vadd.f32 %v2060_v56, %v1907_v57 }
 0x1b4   : > { %1975 = vrot.lane.b32.xlu2 %v1965_v12, %s4585_s0  ;;  %v1584_v12 = vmul.f32 %v5224_v47, %v4830_v7  ;;  %v1602_v7 = vmul.f32 %v5284_v44, %v4833_v8 }
 0x1b5   : > { %1815 = vrot.lane.b32.xlu1 %v1575_v1, %s4582_s12  ;;  %2027 = vrot.lane.b32.xlu0 %v2015_v16, %s4585_s0  ;;  %v1720_v1 = vrot.slane %v1534_v34, 1  ;;  %v1963_v16 = vrot.slane %v1787_v63, 1  ;;  %v2139_v34 = vrot.slane %v2083_v61, 1 }
 0x1b6   : > { %v5337_v23 = vpop.permute.xlu2 %2071  ;;  %v1872_v13 = vadd.f32 %v1854_v62, %v1584_v12  ;;  %v1910_v11 = vadd.f32 %v5243_v6, %v1602_v7  ;;  %v5386_v62 = vld [vmem:[%s4812_s24 + $0x10] sm:$0x7]  ;;  %v1721_v6 = vrot.slane %v1535_v45, 1 }
 0x1b7   : > { %v2066_v17 = vpop.permute.xlu1 %2065  ;;  %v1603_v8 = vmul.f32 %v5386_v62, %v5284_v44 }
 0x1b8   : > { %v5339_v60 = vpop.permute.xlu0 %1773  ;;  %v2016_v0 = vrot.slane %v1872_v13, 1  ;;  %v2086_v63 = vadd.f32 %v2066_v17, %v1910_v11  ;;  %v5414_v11 = vld [vmem:[%s4812_s24 + $0x1c] sm:$0x7] }
 0x1b9   : > { %v1911_v12 = vadd.f32 %v5292_v26, %v1603_v8 }
 0x1ba   : > { %v2142_v9 = vrot.slane %v2086_v63, 1 }
 0x1bb   : > { %v2087_v26 = vadd.f32 %v5311_v40, %v1911_v12  ;;  %v5434_v12 = vld [vmem:[%s4812_s24 + $0x18] sm:$0x7] }
 0x1bc   : > { %1305 = vrot.lane.b32.xlu2 %v858_v2, %s4584_s6 }
 0x1bd   : > { %2151 = vrot.lane.b32.xlu1 %v2141_v27, %s4586_s26  ;;  %1685 = vrot.lane.b32.xlu0 %v1514_v53, %s4582_s12  ;;  %v1966_v27 = vrot.slane %v1790_v3, 1 }
 0x1be   : > { %v5352_v36 = vpop.permute.xlu2 %1293 }
 0x1bf   : > { %v5355_v5 = vpop.permute.xlu1 %1895 }
 0x1c0   : > { %v5357_v20 = vpop.permute.xlu0 %2069 }
 0x1c4   : > { %1817 = vrot.lane.b32.xlu2 %v1576_v38, %s4582_s12 }
 0x1c5   : > { %1733 = vrot.lane.b32.xlu1 %v1720_v1, %s4583_s28  ;;  %1971 = vrot.lane.b32.xlu0 %v1963_v16, %s4585_s0  ;;  %v1585_v1 = vmul.f32 %v5224_v47, %v4848_v15  ;;  %v1543_v16 = vmul.f32 %v5386_v62, %v5271_v21 }
 0x1c6   : > { %v5371_v35 = vpop.permute.xlu2 %1807 }
 0x1c7   : > { %v1858_v2 = vpop.permute.xlu1 %1857  ;;  %v1873_v17 = vadd.f32 %v5327_v51, %v1585_v1  ;;  %v1791_v15 = vadd.f32 %v5303_v25, %v1543_v16  ;;  %v1536_v51 = vmul.f32 %v5414_v11, %v5194_v29  ;;  %v1586_v1 = vmul.f32 %v5414_v11, %v5224_v47 }
 0x1c8   : > { %v5375_v53 = vpop.permute.xlu0 %1777  ;;  %v1545_v16 = vmul.f32 %v5434_v12, %v5271_v21  ;;  %v1605_v47 = vmul.f32 %v5434_v12, %v5284_v44 }
 0x1c9   : > { %v2017_v61 = vrot.slane %v1873_v17, 1  ;;  %v1967_v7 = vrot.slane %v1791_v15, 1  ;;  %v1874_v15 = vadd.f32 %v1858_v2, %v1586_v1  ;;  %v5476_v1 = vld [vmem:[%s4812_s24 + $0x8] sm:$0x7] }
 0x1cc   : > { %2029 = vrot.lane.b32.xlu2 %v2016_v0, %s4585_s0  ;;  %v2143_v0 = vrot.slane %v2087_v26, 1 }
 0x1cd   : > { %1977 = vrot.lane.b32.xlu1 %v1966_v27, %s4585_s0  ;;  %2147 = vrot.lane.b32.xlu0 %v2139_v34, %s4586_s26  ;;  %v5408_v27 = vld [vmem:[%s4812_s24 + $0x14] sm:$0x7] }
 0x1ce   : > { %v5383_v56 = vpop.permute.xlu2 %1677  ;;  %v1544_v34 = vmul.f32 %v5408_v27, %v5271_v21  ;;  %v1604_v63 = vmul.f32 %v5408_v27, %v5284_v44 }
 0x1cf   : > { %v1776_v38 = vpop.permute.xlu1 %1775 }
 0x1d0   : > { %v5397_v57 = vpop.permute.xlu0 %1805  ;;  %v1792_v45 = vadd.f32 %v5339_v60, %v1544_v34  ;;  %v1912_v60 = vadd.f32 %v5286_v14, %v1604_v63  ;;  %v1793_v26 = vadd.f32 %v1776_v38, %v1545_v16  ;;  %v1606_v14 = vmul.f32 %v5414_v11, %v5284_v44 }
 0x1d1   : > { %v1913_v34 = vadd.f32 %v5355_v5, %v1605_v47  ;;  %v5483_v16 = vstv %s4064_s8  ;;  %s4084_s8 = sld [smem:[#allocation12 + $0x6]] }
 0x1d2   : > { %v1968_v29 = vrot.slane %v1792_v45, 1  ;;  %v1914_v2 = vadd.f32 %v5324_v54, %v1606_v14  ;;  %v5471_v54 = vld [vmem:[%s4812_s24 + $0x4] sm:$0x7] }
 0x1d3   : > { %v1490_v14 = vmul.f32 %v5471_v54, %v5483_v16 }
 0x1d4   : > { %1687 = vrot.lane.b32.xlu2 %v1515_v22, %s4582_s12  ;;  %v1722_v22 = vrot.slane %v1536_v51, 1  ;;  %v1969_v51 = vrot.slane %v1793_v26, 1 }
 0x1d5   : > { %2153 = vrot.lane.b32.xlu1 %v2142_v9, %s4586_s26  ;;  %1735 = vrot.lane.b32.xlu0 %v1721_v6, %s4583_s28  ;;  %v1516_v6 = vmul.f32 %v5414_v11, %v5213_v41  ;;  %v2088_v41 = vadd.f32 %v5357_v20, %v1912_v60  ;;  %v2018_v20 = vrot.slane %v1874_v15, 1 }
 0x1d6   : > { %v5403_v13 = vpop.permute.xlu2 %1809 }
 0x1d7   : > { %v2074_v3 = vpop.permute.xlu1 %2073 }
 0x1d8   : > { %v5418_v25 = vpop.permute.xlu0 %1291  ;;  %v2090_v5 = vadd.f32 %v2074_v3, %v1914_v2  ;;  %v5509_v2 = vstv %s4060_s21  ;;  %s709_s21 = sld [smem:[#allocation8]] }
 0x1da   : > { %v2146_v3 = vrot.slane %v2090_v5, 1 }
 0x1dc   : > { %2031 = vrot.lane.b32.xlu2 %v2017_v61, %s4585_s0 }
 0x1dd   : > { %1979 = vrot.lane.b32.xlu1 %v1967_v7, %s4585_s0  ;;  %2155 = vrot.lane.b32.xlu0 %v2143_v0, %s4586_s26  ;;  %v2144_v7 = vrot.slane %v2088_v41, 1  ;;  %v1546_v0 = vmul.f32 %v5414_v11, %v5271_v21  ;;  %v2089_v21 = vadd.f32 %v5337_v23, %v1913_v34 }
 0x1de   : > { %v5422_v40 = vpop.permute.xlu2 %1679 }
 0x1df   : > { %v5425_v8 = vpop.permute.xlu1 %1295  ;;  %v1794_v44 = vadd.f32 %v5375_v53, %v1546_v0  ;;  %v2145_v23 = vrot.slane %v2089_v21, 1 }
 0x1e0   : > { %v5442_v9 = vpop.permute.xlu0 %1725 }
 0x1e4   : > { %1737 = vrot.lane.b32.xlu2 %v1722_v22, %s4583_s28  ;;  %v5468_v22 = vstv %s4058_s27  ;;  %s4085_s27 = sld [smem:[#allocation12 + $0x7]] }
 0x1e5   : > { %1689 = vrot.lane.b32.xlu1 %v1516_v6, %s4582_s12  ;;  %1981 = vrot.lane.b32.xlu0 %v1968_v29, %s4585_s0  ;;  %v1970_v6 = vrot.slane %v1794_v44, 1  ;;  %v812_v29 = vmul.f32 %v5471_v54, %v5468_v22  ;;  %v813_v53 = vmul.f32 %v5476_v1, %v5468_v22 }
 0x1e6   : > { %v5445_v17 = vpop.permute.xlu2 %2023 }
 0x1e7   : > { %v5449_v61 = vpop.permute.xlu1 %1297  ;;  %v1100_v41 = vadd.f32 %v5025_v55, %v812_v29  ;;  %v1101_v47 = vadd.f32 %v5081_v43, %v813_v53  ;;  %v832_v29 = vmul.f32 %v5471_v54, %v5509_v2  ;;  %v1491_v53 = vmul.f32 %v5476_v1, %v5483_v16 }
 0x1e9   : > { %v1244_v34 = vrot.slane %v1100_v41, 1 }
 0x1ec   : > { %2157 = vrot.lane.b32.xlu2 %v2144_v7, %s4586_s26  ;;  %v5496_v7 = vld [vmem:[%s4812_s24] sm:$0x7] }
 0x1ed   : > { %2033 = vrot.lane.b32.xlu1 %v2018_v20, %s4585_s0  ;;  %1983 = vrot.lane.b32.xlu0 %v1969_v51, %s4585_s0  ;;  %v811_v0 = vmul.f32 %v5496_v7, %v5468_v22  ;;  %v5501_v20 = vld [vmem:[%s4812_s24 + $0xc] sm:$0x7]  ;;  %v1245_v51 = vrot.slane %v1101_v47, 1 }
 0x1ee   : > { %v5461_v38 = vpop.permute.xlu2 %1681  ;;  %v814_v55 = vmul.f32 %v5501_v20, %v5468_v22 }
 0x1ef   : > { %v5464_v45 = vpop.permute.xlu1 %1803  ;;  %v5466_v63 = vpop.permute.xlu0 %2021  ;;  %v1099_v43 = vadd.f32 %v5070_v37, %v811_v0  ;;  %v1140_v37 = vadd.f32 %v5122_v19, %v832_v29  ;;  %v1489_v0 = vmul.f32 %v5496_v7, %v5483_v16  ;;  %v1492_v19 = vmul.f32 %v5501_v20, %v5483_v16 }
 0x1f0   : > { %v1102_v21 = vadd.f32 %v5089_v48, %v814_v55  ;;  %v815_v55 = vmul.f32 %v5386_v62, %v5468_v22 }
 0x1f1   : > { %v1316_v41 = vadd.f32 %v5352_v36, %v1140_v37 }
 0x1f4   : > { %1985 = vrot.lane.b32.xlu2 %v1970_v6, %s4585_s0 }
 0x1f5   : > { %2159 = vrot.lane.b32.xlu1 %v2145_v23, %s4586_s26  ;;  %2161 = vrot.lane.b32.xlu0 %v2146_v3, %s4586_s26  ;;  %v1243_v23 = vrot.slane %v1099_v43, 1  ;;  %v1246_v3 = vrot.slane %v1102_v21, 1  ;;  %v5541_v43 = vstv %s4065_s22  ;;  %v1103_v21 = vadd.f32 %v5040_v18, %v815_v55  ;;  %s4083_s22 = sld [smem:[#allocation12 + $0x5]] }
 0x1f6   : > { %v5485_v60 = vpop.permute.xlu2 %1813  ;;  %v1501_v18 = vmul.f32 %v5476_v1, %v5541_v43 }
 0x1f7   : > { %v5489_v15 = vpop.permute.xlu1 %1299  ;;  %v5491_v26 = vpop.permute.xlu0 %1727 }
 0x1fc   : > { %1637 = vrot.lane.b32.xlu2 %v1490_v14, %s4582_s12 }
 0x1fd   : > { %1253 = vrot.lane.b32.xlu1 %v1244_v34, %s4585_s0  ;;  %1255 = vrot.lane.b32.xlu0 %v1245_v51, %s4585_s0  ;;  %v833_v34 = vmul.f32 %v5476_v1, %v5509_v2  ;;  %v1372_v51 = vrot.slane %v1316_v41, 1  ;;  %v1247_v41 = vrot.slane %v1103_v21, 1  ;;  %v1493_v21 = vmul.f32 %v5386_v62, %v5483_v16 }
 0x1fe   : > { %v5511_v44 = vpop.permute.xlu2 %2025 }
 0x1ff   : > { %v5514_v5 = vpop.permute.xlu1 %1811  ;;  %v5516_v6 = vpop.permute.xlu0 %1301  ;;  %v1141_v36 = vadd.f32 %v5078_v42, %v833_v34  ;;  %v816_v42 = vmul.f32 %v5408_v27, %v5468_v22 }
 0x204   : > { %1251 = vrot.lane.b32.xlu2 %v1243_v23, %s4585_s0  ;;  %v1317_v23 = vadd.f32 %v5425_v8, %v1141_v36  ;;  %v831_v36 = vmul.f32 %v5496_v7, %v5509_v2 }
 0x205   : > { %1639 = vrot.lane.b32.xlu1 %v1491_v53, %s4582_s12  ;;  %1257 = vrot.lane.b32.xlu0 %v1246_v3, %s4585_s0  ;;  %v1500_v53 = vmul.f32 %v5471_v54, %v5541_v43 }
 0x206   : > { %v5526_v48 = vpop.permute.xlu2 %1683  ;;  %v1373_v34 = vrot.slane %v1317_v23, 1 }
 0x207   : > { %v5529_v47 = vpop.permute.xlu1 %1675  ;;  %v5531_v14 = vpop.permute.xlu0 %1723 }
 0x20c   : > { %1635 = vrot.lane.b32.xlu2 %v1489_v0, %s4582_s12  ;;  %v1700_v0 = vadd.f32 %v5383_v56, %v1500_v53  ;;  %v834_v56 = vmul.f32 %v5501_v20, %v5509_v2  ;;  %v1701_v53 = vadd.f32 %v5422_v40, %v1501_v18 }
 0x20d   : > { %1381 = vrot.lane.b32.xlu1 %v1372_v51, %s4586_s26  ;;  %1641 = vrot.lane.b32.xlu0 %v1492_v19, %s4582_s12  ;;  %v1104_v19 = vadd.f32 %v5096_v50, %v816_v42  ;;  %v1139_v50 = vadd.f32 %v5109_v59, %v831_v36  ;;  %v1499_v36 = vmul.f32 %v5496_v7, %v5541_v43 }
 0x20e   : > { %v5548_v29 = vpop.permute.xlu2 %1975 }
 0x20f   : > { %v5553_v3 = vpop.permute.xlu1 %1729  ;;  %v1974_v37 = vpop.permute.xlu0 %1973  ;;  %v1248_v23 = vrot.slane %v1104_v19, 1  ;;  %v5592_v19 = vstv %s4067_s1  ;;  %s1459_s1 = sld [smem:[#allocation10]] }
 0x214   : > { %1259 = vrot.lane.b32.xlu2 %v1247_v41, %s4585_s0  ;;  %v1142_v41 = vadd.f32 %v5124_v30, %v834_v56  ;;  %v1494_v30 = vmul.f32 %v5408_v27, %v5483_v16 }
 0x215   : > { %1925 = vrot.lane.b32.xlu1 %v1700_v0, %s4584_s6  ;;  %1383 = vrot.lane.b32.xlu0 %v1373_v34, %s4586_s26  ;;  %v1315_v34 = vadd.f32 %v5418_v25, %v1139_v50  ;;  %v1502_v25 = vmul.f32 %v5501_v20, %v5541_v43 }
 0x216   : > { %v5563_v8 = vpop.permute.xlu2 %1305  ;;  %v1318_v42 = vadd.f32 %v5449_v61, %v1142_v41  ;;  %v1520_v61 = vmul.f32 %v5471_v54, %v5592_v19 }
 0x217   : > { %v5566_v55 = vpop.permute.xlu1 %2019  ;;  %v5568_v51 = vpop.permute.xlu0 %2149  ;;  %v1371_v59 = vrot.slane %v1315_v34, 1  ;;  %v1702_v50 = vadd.f32 %v5461_v38, %v1502_v25  ;;  %v1699_v34 = vadd.f32 %v5529_v47, %v1499_v36  ;;  %v1495_v47 = vmul.f32 %v5434_v12, %v5483_v16 }
 0x218   : > { %v1374_v18 = vrot.slane %v1318_v42, 1  ;;  %v1748_v41 = vadd.f32 %v5442_v9, %v1520_v61  ;;  %v817_v42 = vmul.f32 %v5434_v12, %v5468_v22 }
 0x21a   : > { %v1105_v38 = vadd.f32 %v5105_v58, %v817_v42 }
 0x21c   : > { %1927 = vrot.lane.b32.xlu2 %v1701_v53, %s4584_s6  ;;  %v1249_v36 = vrot.slane %v1105_v38, 1  ;;  %v1504_v38 = vmul.f32 %v5408_v27, %v5541_v43 }
 0x21d   : > { %1643 = vrot.lane.b32.xlu1 %v1493_v21, %s4582_s12  ;;  %1261 = vrot.lane.b32.xlu0 %v1248_v23, %s4585_s0  ;;  %v835_v23 = vmul.f32 %v5386_v62, %v5509_v2 }
 0x21e   : > { %v5583_v0 = vpop.permute.xlu2 %1817 }
 0x21f   : > { %v5586_v10 = vpop.permute.xlu1 %1303  ;;  %v5588_v40 = vpop.permute.xlu0 %1731 }
 0x224   : > { %1385 = vrot.lane.b32.xlu2 %v1374_v18, %s4586_s26  ;;  %v1143_v18 = vadd.f32 %v5141_v46, %v835_v23  ;;  %v1521_v23 = vmul.f32 %v5476_v1, %v5592_v19 }
 0x225   : > { %1645 = vrot.lane.b32.xlu0 %v1494_v30, %s4582_s12  ;;  %1379 = vrot.lane.b32.xlu1 %v1371_v59, %s4586_s26  ;;  %v1996_v30 = vadd.f32 %v1974_v37, %v1748_v41  ;;  %v818_v37 = vmul.f32 %v5414_v11, %v5468_v22  ;;  %v1503_v41 = vmul.f32 %v5386_v62, %v5541_v43 }
 0x226   : > { %v5601_v56 = vpop.permute.xlu2 %2029  ;;  %v1319_v59 = vadd.f32 %v5489_v15, %v1143_v18  ;;  %v1749_v42 = vadd.f32 %v5491_v26, %v1521_v23  ;;  %v5653_v26 = vstv %s4071_s29  ;;  %s4081_s29 = sld [smem:[#allocation12 + $0x3]] }
 0x227   : > { %v5605_v21 = vpop.permute.xlu1 %1815  ;;  %v5607_v53 = vpop.permute.xlu0 %2027  ;;  %v1106_v15 = vadd.f32 %v5061_v33, %v818_v37 }
 0x228   : > { %v1375_v46 = vrot.slane %v1319_v59, 1  ;;  %v1703_v59 = vadd.f32 %v5526_v48, %v1503_v41  ;;  %v1522_v41 = vmul.f32 %v5501_v20, %v5592_v19 }
 0x229   : > { %v1250_v18 = vrot.slane %v1106_v15, 1 }
 0x22c   : > { %1929 = vrot.lane.b32.xlu2 %v1702_v50, %s4584_s6 }
 0x22d   : > { %1923 = vrot.lane.b32.xlu1 %v1699_v34, %s4584_s6  ;;  %2101 = vrot.lane.b32.xlu0 %v1996_v30, %s4587_s25  ;;  %v836_v34 = vmul.f32 %v5408_v27, %v5509_v2  ;;  %v1997_v30 = vadd.f32 %v5548_v29, %v1749_v42  ;;  %v1560_v29 = vmul.f32 %v5471_v54, %v5653_v26 }
 0x22e   : > { %v5621_v9 = vpop.permute.xlu2 %1687 }
 0x22f   : > { %v5624_v61 = vpop.permute.xlu1 %2151  ;;  %v1686_v25 = vpop.permute.xlu0 %1685  ;;  %v1144_v33 = vadd.f32 %v5094_v49, %v836_v34  ;;  %v1496_v49 = vmul.f32 %v5414_v11, %v5483_v16  ;;  %v1828_v23 = vadd.f32 %v5397_v57, %v1560_v29 }
 0x231   : > { %v1320_v48 = vadd.f32 %v5516_v6, %v1144_v33  ;;  %v2044_v42 = vadd.f32 %v5466_v63, %v1828_v23  ;;  %v1519_v6 = vmul.f32 %v5496_v7, %v5592_v19 }
 0x233   : > { %v1376_v15 = vrot.slane %v1320_v48, 1  ;;  %v2172_v16 = vadd.f32 %v5568_v51, %v2044_v42  ;;  %v1747_v63 = vadd.f32 %v5531_v14, %v1519_v6  ;;  %v1561_v51 = vmul.f32 %v5476_v1, %v5653_v26 }
 0x234   : > { %1387 = vrot.lane.b32.xlu2 %v1375_v46, %s4586_s26  ;;  %v1523_v48 = vmul.f32 %v5386_v62, %v5592_v19  ;;  %v1505_v14 = vmul.f32 %v5434_v12, %v5541_v43 }
 0x235   : > { %1263 = vrot.lane.b32.xlu1 %v1249_v36, %s4585_s0  ;;  %1647 = vrot.lane.b32.xlu0 %v1495_v47, %s4582_s12  ;;  %v1704_v36 = vadd.f32 %v1686_v25, %v1504_v38  ;;  %v2188_v33 = vrot.slane %v2172_v16, 1 }
 0x236   : > { %v5635_v58 = vpop.permute.xlu2 %2031  ;;  %v1751_v23 = vadd.f32 %v5588_v40, %v1523_v48  ;;  %v1562_v40 = vmul.f32 %v5501_v20, %v5653_v26 }
 0x237   : > { %v5640_v50 = vpop.permute.xlu1 %1733  ;;  %v1972_v22 = vpop.permute.xlu0 %1971 }
 0x238   : > { %v1995_v38 = vadd.f32 %v1972_v22, %v1747_v63 }
 0x23c   : > { %2103 = vrot.lane.b32.xlu2 %v1997_v30, %s4587_s25  ;;  %v1750_v30 = vadd.f32 %v5553_v3, %v1522_v41 }
 0x23d   : > { %1931 = vrot.lane.b32.xlu1 %v1703_v59, %s4584_s6  ;;  %1265 = vrot.lane.b32.xlu0 %v1250_v18, %s4585_s0  ;;  %v837_v18 = vmul.f32 %v5434_v12, %v5509_v2 }
 0x23e   : > { %v5655_v47 = vpop.permute.xlu2 %1737 }
 0x23f   : > { %v1978_v46 = vpop.permute.xlu1 %1977  ;;  %v5660_v37 = vpop.permute.xlu0 %2147  ;;  %v1145_v29 = vadd.f32 %v5137_v39, %v837_v18 }
 0x240   : > { %v1998_v59 = vadd.f32 %v1978_v46, %v1750_v30 }
 0x241   : > { %v1321_v22 = vadd.f32 %v5586_v10, %v1145_v29  ;;  %v1559_v10 = vmul.f32 %v5496_v7, %v5653_v26 }
 0x243   : > { %v1377_v41 = vrot.slane %v1321_v22, 1  ;;  %v1827_v18 = vadd.f32 %v5464_v45, %v1559_v10  ;;  %v1563_v45 = vmul.f32 %v5386_v62, %v5653_v26 }
 0x244   : > { %1649 = vrot.lane.b32.xlu2 %v1496_v49, %s4582_s12  ;;  %v838_v49 = vmul.f32 %v5414_v11, %v5509_v2 }
 0x245   : > { %1389 = vrot.lane.b32.xlu1 %v1376_v15, %s4586_s26  ;;  %1933 = vrot.lane.b32.xlu0 %v1704_v36, %s4584_s6  ;;  %v1829_v36 = vadd.f32 %v5371_v35, %v1561_v51  ;;  %v1705_v15 = vadd.f32 %v5621_v9, %v1505_v14  ;;  %v1506_v9 = vmul.f32 %v5414_v11, %v5541_v43 }
 0x246   : > { %v5673_v34 = vpop.permute.xlu2 %2157  ;;  %v1146_v6 = vadd.f32 %v5160_v31, %v838_v49 }
 0x247   : > { %v2154_v57 = vpop.permute.xlu1 %2153  ;;  %v5676_v25 = vpop.permute.xlu0 %1735  ;;  %v2045_v16 = vadd.f32 %v5445_v17, %v1829_v36  ;;  %v1525_v36 = vmul.f32 %v5434_v12, %v5592_v19 }
 0x248   : > { %v1322_v35 = vadd.f32 %v5563_v8, %v1146_v6  ;;  %v2043_v8 = vadd.f32 %v5566_v55, %v1827_v18 }
 0x249   : > { %v2173_v31 = vadd.f32 %v5624_v61, %v2045_v16  ;;  %v1524_v61 = vmul.f32 %v5408_v27, %v5592_v19 }
 0x24a   : > { %v1378_v63 = vrot.slane %v1322_v35, 1 }
 0x24b   : > { %v1752_v14 = vadd.f32 %v5640_v50, %v1524_v61 }
 0x24c   : > { %2105 = vrot.lane.b32.xlu2 %v1998_v59, %s4587_s25  ;;  %v1830_v59 = vadd.f32 %v5403_v13, %v1562_v40  ;;  %v2171_v13 = vadd.f32 %v5660_v37, %v2043_v8 }
 0x24d   : > { %2197 = vrot.lane.b32.xlu0 %v2188_v33, %s4588_s10  ;;  %2099 = vrot.lane.b32.xlu1 %v1995_v38, %s4587_s25  ;;  %v2189_v33 = vrot.slane %v2173_v31, 1 }
 0x24e   : > { %v5692_v3 = vpop.permute.xlu2 %1985  ;;  %v2046_v29 = vadd.f32 %v5511_v44, %v1830_v59  ;;  %v1831_v44 = vadd.f32 %v5514_v5, %v1563_v45  ;;  %v2187_v22 = vrot.slane %v2171_v13, 1  ;;  %v1565_v5 = vmul.f32 %v5434_v12, %v5653_v26 }
 0x24f   : > { %v1980_v46 = vpop.permute.xlu1 %1979  ;;  %v2156_v39 = vpop.permute.xlu0 %2155 }
 0x250   : > { %v1999_v42 = vadd.f32 %v1980_v46, %v1751_v23  ;;  %v2174_v51 = vadd.f32 %v2154_v57, %v2046_v29  ;;  %v1526_v46 = vmul.f32 %v5414_v11, %v5592_v19  ;;  %v2047_v37 = vadd.f32 %v5607_v53, %v1831_v44 }
 0x251   : > { %v1566_v19 = vmul.f32 %v5414_v11, %v5653_v26  ;;  %v1833_v16 = vadd.f32 %v5605_v21, %v1565_v5 }
 0x252   : > { %v2190_v49 = vrot.slane %v2174_v51, 1  ;;  %v2175_v50 = vadd.f32 %v2156_v39, %v2047_v37  ;;  %v1754_v53 = vadd.f32 %v5655_v47, %v1526_v46  ;;  %v6970_v37 = vld [vmem:[#allocation39_spill] sm:$0xff] }
 0x253   : > { %v1834_v35 = vadd.f32 %v5583_v0, %v1566_v19 }
 0x254   : > { %1935 = vrot.lane.b32.xlu2 %v1705_v15, %s4584_s6  ;;  %v1564_v15 = vmul.f32 %v5408_v27, %v5653_v26  ;;  %v2191_v10 = vrot.slane %v2175_v50, 1  ;;  %v2002_v40 = vadd.f32 %v5692_v3, %v1754_v53  ;;  %v6971_v50 = vld [vmem:[#allocation41_spill] sm:$0xff]  ;;  %v6972_v53 = vld [vmem:[#allocation58_spill] sm:$0xff] }
 0x255   : > { %2107 = vrot.lane.b32.xlu0 %v1999_v42, %s4587_s25  ;;  %1391 = vrot.lane.b32.xlu1 %v1377_v41, %s4586_s26  ;;  %v1753_v41 = vadd.f32 %v5676_v25, %v1525_v36 }
 0x256   : > { %v5708_v2 = vpop.permute.xlu2 %1637  ;;  %v1832_v39 = vadd.f32 %v5485_v60, %v1564_v15 }
 0x257   : > { %v1690_v17 = vpop.permute.xlu1 %1689  ;;  %v1982_v30 = vpop.permute.xlu0 %1981 }
 0x258   : > { %v1706_v38 = vadd.f32 %v1690_v17, %v1506_v9  ;;  %v2000_v23 = vadd.f32 %v1982_v30, %v1752_v14  ;;  %v2049_v9 = vadd.f32 %v5635_v58, %v1833_v16  ;;  %v2048_v26 = vadd.f32 %v5601_v56, %v1832_v39  ;;  %v6968_v14 = vld [vmem:[#allocation62_spill] sm:$0xff] }
 0x259   : > { %v5761_v30 = vstv %s4052_s30  ;;  %s4087_s30 = sld [smem:[#allocation12 + $0x9]] }
 0x25a   : > { %v2176_v60 = vadd.f32 %v5673_v34, %v2048_v26  ;;  %v753_v56 = vmul.f32 %v5476_v1, %v5761_v30  ;;  %v752_v59 = vmul.f32 %v5471_v54, %v5761_v30  ;;  %v756_v16 = vmul.f32 %v5408_v27, %v5761_v30 }
 0x25c   : > { %1393 = vrot.lane.b32.xlu2 %v1378_v63, %s4586_s26  ;;  %v2192_v18 = vrot.slane %v2176_v60, 1  ;;  %v981_v61 = vadd.f32 %v4991_v4, %v753_v56  ;;  %v980_v13 = vadd.f32 %v4954_v28, %v752_v59  ;;  %v755_v4 = vmul.f32 %v5386_v62, %v5761_v30  ;;  %s4078_s26 = sld [smem:[#allocation10 + $0x1]] }
 0x25d   : > { %1937 = vrot.lane.b32.xlu0 %v1706_v38, %s4584_s6  ;;  %2199 = vrot.lane.b32.xlu1 %v2189_v33, %s4588_s10  ;;  %v751_v33 = vmul.f32 %v5496_v7, %v5761_v30  ;;  %v5774_v38 = vstv %s4056_s18  ;;  %v757_v56 = vmul.f32 %v5434_v12, %v5761_v30  ;;  %s4080_s18 = sld [smem:[#allocation12 + $0x2]] }
 0x25e   : > { %v5727_v43 = vpop.permute.xlu2 %1251  ;;  %v792_v45 = vmul.f32 %v5471_v54, %v5774_v38  ;;  %v793_v36 = vmul.f32 %v5476_v1, %v5774_v38  ;;  %v983_v5 = vadd.f32 %v6970_v37, %v755_v4  ;;  %v795_v4 = vmul.f32 %v5386_v62, %v5774_v38 }
 0x25f   : > { %v2034_v55 = vpop.permute.xlu1 %2033  ;;  %v1984_v48 = vpop.permute.xlu0 %1983  ;;  %v979_v51 = vadd.f32 %v4982_v52, %v751_v33 }
 0x260   : > { %v2001_v31 = vadd.f32 %v1984_v48, %v1753_v41  ;;  %v2050_v47 = vadd.f32 %v2034_v55, %v1834_v35  ;;  %v1229_v55 = vadd.f32 %v5205_v24, %v981_v61  ;;  %v1228_v48 = vadd.f32 %v5165_v32, %v980_v13  ;;  %v6978_v13 = vld [vmem:[#allocation42_spill] sm:$0xff] }
 0x261   : > { %v1227_v44 = vadd.f32 %v6968_v14, %v979_v51  ;;  %v1231_v41 = vadd.f32 %v6972_v53, %v983_v5  ;;  %v985_v51 = vadd.f32 %v6978_v13, %v757_v56  ;;  %v6982_v5 = vld [vmem:[#allocation50_spill] sm:$0xff] }
 0x264   : > { %2195 = vrot.lane.b32.xlu2 %v2187_v22, %s4588_s10  ;;  %v6969_v22 = vld [vmem:[#allocation48_spill] sm:$0xff] }
 0x265   : > { %2201 = vrot.lane.b32.xlu0 %v2190_v49, %s4588_s10  ;;  %2109 = vrot.lane.b32.xlu1 %v2000_v23, %s4587_s25  ;;  %v1060_v46 = vadd.f32 %v6969_v22, %v792_v45  ;;  %v754_v49 = vmul.f32 %v5501_v20, %v5761_v30  ;;  %v6980_v22 = vld [vmem:[#allocation43_spill] sm:$0xff] }
 0x266   : > { %v5741_v57 = vpop.permute.xlu2 %1635 }
 0x267   : > { %v2160_v42 = vpop.permute.xlu1 %2159  ;;  %v2162_v6 = vpop.permute.xlu0 %2161  ;;  %v982_v15 = vadd.f32 %v6971_v50, %v754_v49  ;;  %v1063_v50 = vadd.f32 %v6982_v5, %v795_v4 }
 0x268   : > { %v2177_v21 = vadd.f32 %v2160_v42, %v2049_v9  ;;  %v2178_v0 = vadd.f32 %v2162_v6, %v2050_v47  ;;  %v6973_v42 = vld [vmem:[#allocation64_spill] sm:$0xff] }
 0x269   : > { %v1230_v6 = vadd.f32 %v6973_v42, %v982_v15  ;;  %v6975_v47 = vld [vmem:[#allocation44_spill] sm:$0xff] }
 0x26a   : > { %v2193_v58 = vrot.slane %v2177_v21, 1  ;;  %v2194_v63 = vrot.slane %v2178_v0, 1  ;;  %v984_v21 = vadd.f32 %v6975_v47, %v756_v16  ;;  %v6976_v0 = vld [vmem:[#allocation63_spill] sm:$0xff] }
 0x26c   : > { %2203 = vrot.lane.b32.xlu2 %v2191_v10, %s4588_s10  ;;  %v6974_v10 = vld [vmem:[#allocation47_spill] sm:$0xff] }
 0x26d   : > { %2113 = vrot.lane.b32.xlu0 %v2002_v40, %s4587_s25  ;;  %2111 = vrot.lane.b32.xlu1 %v2001_v31, %s4587_s25  ;;  %v1061_v39 = vadd.f32 %v6974_v10, %v793_v36  ;;  %v794_v31 = vmul.f32 %v5501_v20, %v5774_v38 }
 0x26e   : > { %v5758_v25 = vpop.permute.xlu2 %1259 }
 0x26f   : > { %v1254_v3 = vpop.permute.xlu1 %1253  ;;  %v1256_v17 = vpop.permute.xlu0 %1255  ;;  %v1279_v53 = vadd.f32 %v5758_v25, %v1063_v50  ;;  %v798_v25 = vmul.f32 %v5414_v11, %v5774_v38 }
 0x270   : > { %v1276_v28 = vadd.f32 %v1254_v3, %v1060_v46  ;;  %v1277_v35 = vadd.f32 %v1256_v17, %v1061_v39  ;;  %v1232_v3 = vadd.f32 %v6976_v0, %v984_v21  ;;  %v796_v21 = vmul.f32 %v5408_v27, %v5774_v38 }
 0x274   : > { %2207 = vrot.lane.b32.xlu2 %v2193_v58, %s4588_s10 }
 0x275   : > { %2205 = vrot.lane.b32.xlu1 %v2192_v18, %s4588_s10  ;;  %2209 = vrot.lane.b32.xlu0 %v2194_v63, %s4588_s10  ;;  %v6977_v18 = vld [vmem:[#allocation45_spill] sm:$0xff] }
 0x276   : > { %v5772_v34 = vpop.permute.xlu2 %1927  ;;  %v1062_v63 = vadd.f32 %v6977_v18, %v794_v31 }
 0x277   : > { %v5776_v8 = vpop.permute.xlu1 %1639  ;;  %v1258_v29 = vpop.permute.xlu0 %1257 }
 0x278   : > { %v1278_v17 = vadd.f32 %v1258_v29, %v1062_v63  ;;  %v758_v29 = vmul.f32 %v5414_v11, %v5761_v30 }
 0x27c   : > { %1335 = vrot.lane.b32.xlu2 %v1229_v55, %s4587_s25  ;;  %v791_v55 = vmul.f32 %v5496_v7, %v5774_v38 }
 0x27d   : > { %1333 = vrot.lane.b32.xlu1 %v1228_v48, %s4587_s25  ;;  %1331 = vrot.lane.b32.xlu0 %v1227_v44, %s4587_s25  ;;  %v6979_v48 = vld [vmem:[#allocation65_spill] sm:$0xff] }
 0x27e   : > { %v1386_v52 = vpop.permute.xlu2 %1385  ;;  %v1233_v14 = vadd.f32 %v6979_v48, %v985_v51  ;;  %v1059_v46 = vadd.f32 %v6980_v22, %v791_v55 }
 0x27f   : > { %v1382_v24 = vpop.permute.xlu1 %1381  ;;  %v5794_v32 = vpop.permute.xlu0 %1641  ;;  %v1406_v33 = vadd.f32 %v1386_v52, %v1278_v17 }
 0x280   : > { %v1404_v23 = vadd.f32 %v1382_v24, %v1276_v28  ;;  %v1275_v49 = vadd.f32 %v5727_v43, %v1059_v46 }
 0x281   : > { %v1422_v44 = vrot.slane %v1406_v33, 1 }
 0x282   : > { %v1420_v19 = vrot.slane %v1404_v23, 1  ;;  %v6981_v23 = vld [vmem:[#allocation40_spill] sm:$0xff] }
 0x283   : > { %v986_v37 = vadd.f32 %v6981_v23, %v758_v29  ;;  %v5875_v23 = vstv %s4078_s26  ;;  %s4086_s26 = sld [smem:[#allocation12 + $0x8]] }
 0x284   : > { %1429 = vrot.lane.b32.xlu2 %v1420_v19, %s4588_s10  ;;  %v6983_v19 = vld [vmem:[#allocation60_spill] sm:$0xff] }
 0x285   : > { %1337 = vrot.lane.b32.xlu1 %v1230_v6, %s4587_s25  ;;  %1339 = vrot.lane.b32.xlu0 %v1231_v41, %s4587_s25  ;;  %v1234_v30 = vadd.f32 %v6983_v19, %v986_v37 }
 0x286   : > { %v5808_v40 = vpop.permute.xlu2 %1929 }
 0x287   : > { %v5812_v9 = vpop.permute.xlu1 %1925  ;;  %v1384_v26 = vpop.permute.xlu0 %1383 }
 0x288   : > { %v1405_v60 = vadd.f32 %v1384_v26, %v1277_v35 }
 0x28a   : > { %v1421_v58 = vrot.slane %v1405_v60, 1  ;;  %v6984_v60 = vld [vmem:[#allocation51_spill] sm:$0xff] }
 0x28b   : > { %v1066_v0 = vadd.f32 %v6984_v60, %v798_v25 }
 0x28c   : > { %1341 = vrot.lane.b32.xlu2 %v1232_v3, %s4587_s25  ;;  %v5859_v3 = vstv %s4063_s23  ;;  %s4082_s23 = sld [smem:[#allocation12 + $0x4]] }
 0x28d   : > { %1431 = vrot.lane.b32.xlu1 %v1421_v58, %s4588_s10  ;;  %v6985_v58 = vld [vmem:[#allocation49_spill] sm:$0xff]  ;;  %v1480_v56 = vmul.f32 %v5471_v54, %v5859_v3  ;;  %v1479_v55 = vmul.f32 %v5496_v7, %v5859_v3 }
 0x28e   : > { %v1388_v59 = vpop.permute.xlu2 %1387  ;;  %v1064_v18 = vadd.f32 %v6985_v58, %v796_v21  ;;  %v5886_v21 = vstv %s4085_s27  ;;  %s2245_s27 = sld [smem:[#allocation12]] }
 0x28f   : > { %v5821_v61 = vpop.permute.xlu1 %1643  ;;  %v1262_v45 = vpop.permute.xlu0 %1261  ;;  %v1407_v43 = vadd.f32 %v1388_v59, %v1279_v53  ;;  %v1659_v46 = vadd.f32 %v5741_v57, %v1479_v55 }
 0x290   : > { %v1280_v17 = vadd.f32 %v1262_v45, %v1064_v18 }
 0x291   : > { %v1423_v16 = vrot.slane %v1407_v43, 1 }
 0x294   : > { %1343 = vrot.lane.b32.xlu2 %v1233_v14, %s4587_s25 }
 0x295   : > { %1433 = vrot.lane.b32.xlu1 %v1422_v44, %s4588_s10  ;;  %v1660_v44 = vadd.f32 %v5708_v2, %v1480_v56  ;;  %v1483_v2 = vmul.f32 %v5386_v62, %v5859_v3 }
 0x296   : > { %v5835_v28 = vpop.permute.xlu2 %2103 }
 0x297   : > { %v1380_v52 = vpop.permute.xlu1 %1379  ;;  %v5837_v24 = vpop.permute.xlu0 %1645  ;;  %v1948_v45 = vadd.f32 %v5812_v9, %v1660_v44  ;;  %v5909_v44 = vstv %s4084_s8  ;;  %s2705_s8 = sld [smem:[#allocation3]] }
 0x298   : > { %v1403_v36 = vadd.f32 %v1380_v52, %v1275_v49  ;;  %v797_v52 = vmul.f32 %v5434_v12, %v5774_v38  ;;  %v1663_v38 = vadd.f32 %v5821_v61, %v1483_v2 }
 0x29a   : > { %v1419_v15 = vrot.slane %v1403_v36, 1 }
 0x29c   : > { %1427 = vrot.lane.b32.xlu0 %v1419_v15, %s4588_s10  ;;  %v6986_v15 = vld [vmem:[#allocation46_spill] sm:$0xff] }
 0x29d   : > { %1345 = vrot.lane.b32.xlu1 %v1234_v30, %s4587_s25  ;;  %v1065_v19 = vadd.f32 %v6986_v15, %v797_v52  ;;  %v1481_v30 = vmul.f32 %v5476_v1, %v5859_v3 }
 0x29e   : > { %v5845_v41 = vpop.permute.xlu2 %1649 }
 0x29f   : > { %v1924_v42 = vpop.permute.xlu1 %1923  ;;  %v2102_v6 = vpop.permute.xlu0 %2101 }
 0x2a0   : > { %v1947_v29 = vadd.f32 %v1924_v42, %v1659_v46  ;;  %v2124_v4 = vadd.f32 %v2102_v6, %v1948_v45  ;;  %v1485_v46 = vmul.f32 %v5434_v12, %v5859_v3  ;;  %v1486_v12 = vmul.f32 %v5414_v11, %v5859_v3 }
 0x2a4   : > { %1435 = vrot.lane.b32.xlu0 %v1423_v16, %s4588_s10  ;;  %v1661_v16 = vadd.f32 %v5776_v8, %v1481_v30 }
 0x2a6   : > { %v5848_v10 = vpop.permute.xlu2 %2105 }
 0x2a7   : > { %v1264_v39 = vpop.permute.xlu1 %1263  ;;  %v5850_v35 = vpop.permute.xlu0 %1647 }
 0x2a8   : > { %v1281_v43 = vadd.f32 %v1264_v39, %v1065_v19  ;;  %v1949_v39 = vadd.f32 %v5772_v34, %v1661_v16 }
 0x2ae   : > { %v5852_v31 = vpop.permute.xlu2 %1935 }
 0x2af   : > { %v1932_v26 = vpop.permute.xlu1 %1931  ;;  %v1266_v47 = vpop.permute.xlu0 %1265 }
 0x2b0   : > { %v1282_v63 = vadd.f32 %v1266_v47, %v1066_v0  ;;  %v1951_v42 = vadd.f32 %v1932_v26, %v1663_v38  ;;  %v1482_v26 = vmul.f32 %v5501_v20, %v5859_v3  ;;  %v5942_v38 = vstv %s709_s21  ;;  %s4090_s21 = sld [smem:[#allocation13 + $0x3]] }
 0x2b6   : > { %v1394_v59 = vpop.permute.xlu2 %1393 }
 0x2b7   : > { %v1410_v33 = vadd.f32 %v1394_v59, %v1282_v63  ;;  %v1390_v13 = vpop.permute.xlu1 %1389  ;;  %v5864_v51 = vpop.permute.xlu0 %1933 }
 0x2b8   : > { %v1408_v48 = vadd.f32 %v1390_v13, %v1280_v17  ;;  %v2125_v17 = vadd.f32 %v5835_v28, %v1949_v39 }
 0x2b9   : > { %v1426_v14 = vrot.slane %v1410_v33, 1  ;;  %v1662_v33 = vadd.f32 %v5794_v32, %v1482_v26 }
 0x2ba   : > { %v1424_v22 = vrot.slane %v1408_v48, 1 }
 0x2bb   : > { %1441 = vrot.lane.b32.xlu1 %v1426_v14, %s4588_s10  ;;  %v1950_v14 = vadd.f32 %v5808_v40, %v1662_v33 }
 0x2bc   : > { %1437 = vrot.lane.b32.xlu2 %v1424_v22, %s4588_s10 }
 0x2bd   : > { %v2126_v22 = vadd.f32 %v5848_v10, %v1950_v14 }
 0x2be   : > { %v2196_v49 = vpop.permute.xlu2 %2195 }
 0x2bf   : > { %v2100_v36 = vpop.permute.xlu1 %2099  ;;  %v2198_v37 = vpop.permute.xlu0 %2197 }
 0x2c0   : > { %v2123_v5 = vadd.f32 %v2100_v36, %v1947_v29  ;;  %v2220_v50 = vadd.f32 %v2198_v37, %v2124_v4  ;;  %v1484_v36 = vmul.f32 %v5408_v27, %v5859_v3 }
 0x2c2   : > { %v2219_v57 = vadd.f32 %v2196_v49, %v2123_v5  ;;  %v2230_v9 = vadd.f32 %v5875_v23, %v2220_v50  ;;  %v1665_v49 = vadd.f32 %v5850_v35, %v1485_v46  ;;  %v1664_v5 = vadd.f32 %v5837_v24, %v1484_v36  ;;  %v6990_v36 = vld [vmem:[#allocation57_spill] sm:$0xff] }
 0x2c4   : > { %v2229_v53 = vadd.f32 %v5875_v23, %v2219_v57  ;;  %4274 = vtanh.f32 %v2230_v9  ;;  %v1953_v10 = vadd.f32 %v5852_v31, %v1665_v49  ;;  %v1666_v9 = vadd.f32 %v5845_v41, %v1486_v12 }
 0x2c5   : > { %v1952_v11 = vadd.f32 %v5864_v51, %v1664_v5 }
 0x2c6   : > { %4276 = vtanh.f32 %v2229_v53  ;;  %v2204_v60 = vpop.permute.xlu2 %2203 }
 0x2c7   : > { %v1392_v62 = vpop.permute.xlu1 %1391  ;;  %v2108_v6 = vpop.permute.xlu0 %2107 }
 0x2c8   : > { %v1409_v25 = vadd.f32 %v1392_v62, %v1281_v43  ;;  %v2127_v47 = vadd.f32 %v2108_v6, %v1951_v42  ;;  %v712_v42 = vmul.f32 %v5471_v54, %v5942_v38 }
 0x2ca   : > { %v5888_v0 = vpop.eup %4274  ;;  %v1425_v58 = vrot.slane %v1409_v25, 1  ;;  %v2223_v18 = vadd.f32 %v2204_v60, %v2127_v47  ;;  %v6987_v47 = vld [vmem:[#allocation36_spill] sm:$0xff] }
 0x2cb   : > { %v2318_v61 = vmul.f32 %v5888_v0, %v5886_v21  ;;  %v892_v60 = vadd.f32 %v6987_v47, %v712_v42 }
 0x2cc   : > { %v5892_v63 = vpop.eup %4276  ;;  %v2233_v8 = vadd.f32 %v5875_v23, %v2223_v18  ;;  %1439 = vrot.lane.b32.xlu0 %v1425_v58, %s4588_s10  ;;  %v5951_v58 = vstv %s4083_s22  ;;  %s2723_s22 = sld [smem:[#allocation13]] }
 0x2cd   : > { %2475 = vrot.lane.b32.xlu2 %v2318_v61, %s4582_s12  ;;  %v2317_v56 = vmul.f32 %v5892_v63, %v5886_v21  ;;  %v6988_v61 = vld [vmem:[#allocation55_spill] sm:$0xff] }
 0x2ce   : > { %4278 = vtanh.f32 %v2233_v8  ;;  %v2208_v37 = vpop.permute.xlu2 %2207  ;;  %v1180_v39 = vadd.f32 %v6988_v61, %v892_v60 }
 0x2cf   : > { %v2200_v59 = vpop.permute.xlu1 %2199  ;;  %2473 = vrot.lane.b32.xlu1 %v2317_v56, %s4582_s12  ;;  %v1938_v34 = vpop.permute.xlu0 %1937  ;;  %v5961_v56 = vstv %s1459_s1  ;;  %s4091_s1 = sld [smem:[#allocation13 + $0x4]] }
 0x2d0   : > { %v2221_v13 = vadd.f32 %v2200_v59, %v2125_v17  ;;  %v1954_v31 = vadd.f32 %v1938_v34, %v1666_v9 }
 0x2d2   : > { %v2231_v55 = vadd.f32 %v5875_v23, %v2221_v13 }
 0x2d4   : > { %v5906_v48 = vpop.eup %4278  ;;  %4280 = vtanh.f32 %v2231_v55 }
 0x2d5   : > { %v5913_v28 = vmul.f32 %v5906_v48, %v5909_v44  ;;  %v2321_v15 = vmul.f32 %v5906_v48, %v5886_v21 }
 0x2d6   : > { %v1336_v24 = vpop.permute.xlu2 %1335 }
 0x2d7   : > { %v2110_v32 = vpop.permute.xlu1 %2109  ;;  %v2202_v45 = vpop.permute.xlu0 %2201 }
 0x2d8   : > { %v2222_v29 = vadd.f32 %v2202_v45, %v2126_v22  ;;  %v2128_v30 = vadd.f32 %v2110_v32, %v1952_v11  ;;  %v2298_v32 = vmul.f32 %v5888_v0, %v5951_v58  ;;  %v713_v45 = vmul.f32 %v5476_v1, %v5942_v38 }
 0x2d9   : > { %v714_v1 = vmul.f32 %v5501_v20, %v5942_v38  ;;  %v711_v11 = vmul.f32 %v5496_v7, %v5942_v38 }
 0x2da   : > { %v5918_v4 = vpop.eup %4280  ;;  %v2232_v40 = vadd.f32 %v5875_v23, %v2222_v29  ;;  %v6989_v29 = vld [vmem:[#allocation33_spill] sm:$0xff] }
 0x2db   : > { %v2319_v52 = vmul.f32 %v5918_v4, %v5886_v21  ;;  %v893_v49 = vadd.f32 %v6989_v29, %v713_v45  ;;  %v2299_v20 = vmul.f32 %v5918_v4, %v5951_v58  ;;  %v6997_v29 = vld [vmem:[#allocation32_spill] sm:$0xff] }
 0x2dc   : > { %4282 = vtanh.f32 %v2232_v40  ;;  %v5992_v40 = vstv %s4081_s29  ;;  %s4088_s29 = sld [smem:[#allocation13 + $0x1]] }
 0x2dd   : > { %2477 = vrot.lane.b32.xlu0 %v2319_v52, %s4582_s12 }
 0x2de   : > { %v1430_v8 = vpop.permute.xlu2 %1429 }
 0x2df   : > { %v2112_v2 = vpop.permute.xlu1 %2111  ;;  %v2114_v35 = vpop.permute.xlu0 %2113 }
 0x2e0   : > { %v2129_v50 = vadd.f32 %v2112_v2, %v1953_v10  ;;  %v2130_v41 = vadd.f32 %v2114_v35, %v1954_v31 }
 0x2e2   : > { %v5931_v57 = vpop.eup %4282  ;;  %v2225_v27 = vadd.f32 %v2208_v37, %v2129_v50  ;;  %v1181_v37 = vadd.f32 %v6990_v36, %v893_v49  ;;  %v6991_v50 = vld [vmem:[#allocation35_spill] sm:$0xff] }
 0x2e3   : > { %v2320_v19 = vmul.f32 %v5931_v57, %v5886_v21  ;;  %v894_v9 = vadd.f32 %v6991_v50, %v714_v1 }
 0x2e4   : > { %v2235_v3 = vadd.f32 %v5875_v23, %v2225_v27  ;;  %v1357_v2 = vadd.f32 %v1336_v24, %v1181_v37  ;;  %v6998_v37 = vld [vmem:[#allocation61_spill] sm:$0xff] }
 0x2e5   : > { %2481 = vrot.lane.b32.xlu0 %v2321_v15, %s4582_s12  ;;  %2479 = vrot.lane.b32.xlu2 %v2320_v19, %s4582_s12  ;;  %v6992_v15 = vld [vmem:[#allocation53_spill] sm:$0xff] }
 0x2e6   : > { %4284 = vtanh.f32 %v2235_v3  ;;  %v1182_v19 = vadd.f32 %v6992_v15, %v894_v9  ;;  %v1342_v31 = vpop.permute.xlu2 %1341 }
 0x2e7   : > { %v2206_v53 = vpop.permute.xlu1 %2205  ;;  %v2210_v43 = vpop.permute.xlu0 %2209 }
 0x2e8   : > { %v2224_v51 = vadd.f32 %v2206_v53, %v2128_v30  ;;  %v2226_v62 = vadd.f32 %v2210_v43, %v2130_v41  ;;  %v6993_v53 = vld [vmem:[#allocation34_spill] sm:$0xff] }
 0x2e9   : > { %v891_v43 = vadd.f32 %v6993_v53, %v711_v11  ;;  %v2300_v11 = vmul.f32 %v5931_v57, %v5951_v58 }
 0x2ea   : > { %v2234_v6 = vadd.f32 %v5875_v23, %v2224_v51  ;;  %v2236_v16 = vadd.f32 %v5875_v23, %v2226_v62  ;;  %v6994_v62 = vld [vmem:[#allocation52_spill] sm:$0xff] }
 0x2ec   : > { %v5948_v25 = vpop.eup %4284  ;;  %4286 = vtanh.f32 %v2234_v6  ;;  %v1179_v6 = vadd.f32 %v6994_v62, %v891_v43  ;;  %v4372_v62 = vld [vmem:[%s4812_s24 + $0x1c] sm:$0x7] }
 0x2ed   : > { %4288 = vtanh.f32 %v2236_v16  ;;  %v2323_v18 = vmul.f32 %v5948_v25, %v5886_v21  ;;  %v5957_v54 = vmul.f32 %v5948_v25, %v5951_v58  ;;  %v4370_v16 = vld [vmem:[%s4812_s24 + $0x10] sm:$0x7] }
 0x2ee   : > { %v715_v47 = vmul.f32 %v4370_v16, %v5942_v38  ;;  %v6999_v16 = vld [vmem:[#allocation37_spill] sm:$0xff] }
 0x2ef   : > { %v1334_v26 = vpop.permute.xlu1 %1333  ;;  %2485 = vrot.lane.b32.xlu2 %v2323_v18, %s4582_s12  ;;  %v1332_v12 = vpop.permute.xlu0 %1331  ;;  %v2297_v18 = vmul.f32 %v5892_v63, %v5951_v58 }
 0x2f0   : > { %v1356_v23 = vadd.f32 %v1334_v26, %v1180_v39  ;;  %v1355_v60 = vadd.f32 %v1332_v12, %v1179_v6  ;;  %v6022_v39 = vpop.permute.xlu2 %1343  ;;  %v718_v6 = vmul.f32 %v4372_v62, %v5942_v38 }
 0x2f2   : > { %v5963_v17 = vpop.eup %4286  ;;  %v1452_v59 = vadd.f32 %v1430_v8, %v1356_v23  ;;  %v4371_v23 = vld [vmem:[%s4812_s24 + $0x14] sm:$0x7] }
 0x2f3   : > { %v5965_v34 = vpop.eup %4288  ;;  %v2322_v33 = vmul.f32 %v5963_v17, %v5886_v21  ;;  %v5971_v13 = vmul.f32 %v5963_v17, %v5909_v44  ;;  %v716_v8 = vmul.f32 %v4371_v23, %v5942_v38 }
 0x2f4   : > { %v1462_v55 = vadd.f32 %v5961_v56, %v1452_v59  ;;  %v2324_v14 = vmul.f32 %v5965_v34, %v5886_v21  ;;  %v5978_v22 = vmul.f32 %v5965_v34, %v5951_v58  ;;  %v5982_v46 = vmul.f32 %v5965_v34, %v5909_v44  ;;  %v6995_v59 = vld [vmem:[#allocation31_spill] sm:$0xff] }
 0x2f5   : > { %2483 = vrot.lane.b32.xlu1 %v2322_v33, %s4582_s12  ;;  %v895_v33 = vadd.f32 %v6995_v59, %v715_v47  ;;  %v896_v49 = vadd.f32 %v6997_v29, %v716_v8  ;;  %v898_v47 = vadd.f32 %v6999_v16, %v718_v6 }
 0x2f6   : > { %4290 = vtanh.f32 %v1462_v55  ;;  %2487 = vrot.lane.b32.xlu0 %v2324_v14, %s4582_s12 }
 0x2f7   : > { %v1338_v21 = vpop.permute.xlu1 %1337  ;;  %2435 = vrot.lane.b32.xlu2 %v2298_v32, %s4583_s28  ;;  %v1340_v24 = vpop.permute.xlu0 %1339  ;;  %v6996_v32 = vld [vmem:[#allocation56_spill] sm:$0xff]  ;;  %v1184_v12 = vadd.f32 %v6998_v37, %v896_v49  ;;  %v2336_v49 = vstv %s4087_s30  ;;  %v7001_v37 = vld [vmem:[#allocation38_spill] sm:$0xff]  ;;  %s4089_s30 = sld [smem:[#allocation13 + $0x2]] }
 0x2f8   : > { %v1358_v3 = vadd.f32 %v1338_v21, %v1182_v19  ;;  %v1183_v45 = vadd.f32 %v6996_v32, %v895_v33  ;;  %v4373_v32 = vld [vmem:[%s4812_s24 + $0x18] sm:$0x7]  ;;  %s4079_s24 = sld [smem:[#allocation12 + $0x1]] }
 0x2fa   : > { %v1359_v36 = vadd.f32 %v1340_v24, %v1183_v45  ;;  %v717_v45 = vmul.f32 %v4373_v32, %v5942_v38  ;;  %v2309_v38 = vmul.f32 %v5918_v4, %v5909_v44 }
 0x2fc   : > { %v5994_v52 = vpop.eup %4290 }
 0x2fd   : > { %v2278_v10 = vmul.f32 %v5994_v52, %v5992_v40 }
 0x2fe   : > { %v2256_v62 = vstv %s4079_s24  ;;  %s2933_s24 = sld [smem:[#allocation4]] }
 0x2ff   : > { %v1432_v35 = vpop.permute.xlu1 %1431  ;;  %2395 = vrot.lane.b32.xlu1 %v2278_v10, %s4582_s12 }
 0x300   : > { %v1453_v5 = vadd.f32 %v1432_v35, %v1357_v2  ;;  %v1360_v35 = vadd.f32 %v1342_v31, %v1184_v12  ;;  %v897_v12 = vadd.f32 %v7001_v37, %v717_v45  ;;  %v6145_v37 = vstv %s4082_s23  ;;  %s4092_s23 = sld [smem:[#allocation15 + $0x1]] }
 0x302   : > { %v1463_v27 = vadd.f32 %v5961_v56, %v1453_v5 }
 0x304   : > { %4292 = vtanh.f32 %v1463_v27 }
 0x307   : > { %v1434_v30 = vpop.permute.xlu1 %1433  ;;  %2437 = vrot.lane.b32.xlu1 %v2299_v20, %s4583_s28  ;;  %v2308_v20 = vmul.f32 %v5888_v0, %v5909_v44 }
 0x308   : > { %v1454_v41 = vadd.f32 %v1434_v30, %v1358_v3 }
 0x30a   : > { %v6011_v42 = vpop.eup %4292  ;;  %v1464_v51 = vadd.f32 %v5961_v56, %v1454_v41  ;;  %v2301_v41 = vmul.f32 %v5906_v48, %v5951_v58 }
 0x30b   : > { %v2279_v7 = vmul.f32 %v6011_v42, %v5992_v40 }
 0x30c   : > { %4294 = vtanh.f32 %v1464_v51  ;;  %v2302_v51 = vmul.f32 %v5963_v17, %v5951_v58  ;;  %v2307_v58 = vmul.f32 %v5892_v63, %v5909_v44 }
 0x30d   : > { %2397 = vrot.lane.b32.xlu0 %v2279_v7, %s4582_s12 }
 0x30e   : > { %v1428_v61 = vpop.permute.xlu0 %1427 }
 0x30f   : > { %v1451_v26 = vadd.f32 %v1428_v61, %v1355_v60  ;;  %2433 = vrot.lane.b32.xlu1 %v2297_v18, %s4583_s28  ;;  %v1346_v43 = vpop.permute.xlu1 %1345  ;;  %v7000_v60 = vld [vmem:[#allocation59_spill] sm:$0xff]  ;;  %v2310_v61 = vmul.f32 %v5931_v57, %v5909_v44 }
 0x310   : > { %v1186_v18 = vadd.f32 %v7000_v60, %v898_v47  ;;  %v2341_v47 = vmul.f32 %v5906_v48, %v2336_v49  ;;  %v2344_v60 = vmul.f32 %v5965_v34, %v2336_v49 }
 0x311   : > { %v1461_v55 = vadd.f32 %v5961_v56, %v1451_v26 }
 0x312   : > { %v6029_v14 = vpop.eup %4294  ;;  %v1362_v26 = vadd.f32 %v1346_v43, %v1186_v18 }
 0x313   : > { %4296 = vtanh.f32 %v1461_v55  ;;  %v2280_v21 = vmul.f32 %v6029_v14, %v5992_v40 }
 0x315   : > { %2399 = vrot.lane.b32.xlu0 %v2280_v21, %s4582_s12 }
 0x316   : > { %v1436_v10 = vpop.permute.xlu0 %1435  ;;  %v1438_v1 = vpop.permute.xlu2 %1437 }
 0x317   : > { %v1455_v2 = vadd.f32 %v1436_v10, %v1359_v36  ;;  %v1456_v9 = vadd.f32 %v1438_v1, %v1360_v35  ;;  %v2339_v36 = vmul.f32 %v5918_v4, %v2336_v49  ;;  %v7002_v10 = vld [vmem:[#allocation54_spill] sm:$0xff] }
 0x318   : > { %v1185_v1 = vadd.f32 %v7002_v10, %v897_v12 }
 0x319   : > { %v6037_v5 = vpop.eup %4296  ;;  %v1465_v50 = vadd.f32 %v5961_v56, %v1455_v2  ;;  %v1466_v15 = vadd.f32 %v5961_v56, %v1456_v9 }
 0x31a   : > { %v2277_v27 = vmul.f32 %v6037_v5, %v5992_v40  ;;  %v1361_v2 = vadd.f32 %v6022_v39, %v1185_v1  ;;  %v2338_v39 = vmul.f32 %v5888_v0, %v2336_v49 }
 0x31b   : > { %4298 = vtanh.f32 %v1465_v50 }
 0x31c   : > { %2393 = vrot.lane.b32.xlu2 %v2277_v27, %s4582_s12  ;;  %4300 = vtanh.f32 %v1466_v15 }
 0x321   : > { %v6044_v19 = vpop.eup %4298 }
 0x322   : > { %v2281_v31 = vmul.f32 %v6044_v19, %v5992_v40  ;;  %v6054_v24 = vpop.eup %4300 }
 0x323   : > { %v2282_v53 = vmul.f32 %v6054_v24, %v5992_v40 }
 0x324   : > { %2439 = vrot.lane.b32.xlu2 %v2300_v11, %s4583_s28  ;;  %2401 = vrot.lane.b32.xlu1 %v2281_v31, %s4582_s12  ;;  %v2340_v11 = vmul.f32 %v5931_v57, %v2336_v49 }
 0x327   : > { %v2476_v3 = vpop.permute.xlu2 %2475 }
 0x328   : > { %v2498_v30 = vadd.f32 %v2476_v3, %v2308_v20 }
 0x32a   : > { %2595 = vrot.lane.b32.xlu0 %v2498_v30, %s4585_s0 }
 0x32c   : > { %2441 = vrot.lane.b32.xlu2 %v2301_v41, %s4583_s28  ;;  %2403 = vrot.lane.b32.xlu1 %v2282_v53, %s4582_s12 }
 0x32d   : > { %v1442_v7 = vpop.permute.xlu1 %1441 }
 0x32e   : > { %v1458_v59 = vadd.f32 %v1442_v7, %v1362_v26 }
 0x330   : > { %v1468_v21 = vadd.f32 %v5961_v56, %v1458_v59  ;;  %v2258_v59 = vmul.f32 %v5994_v52, %v2256_v62 }
 0x332   : > { %4302 = vtanh.f32 %v1468_v21  ;;  %v2260_v21 = vmul.f32 %v6029_v14, %v2256_v62 }
 0x334   : > { %2443 = vrot.lane.b32.xlu2 %v2302_v51, %s4583_s28  ;;  %v2342_v51 = vmul.f32 %v5963_v17, %v2336_v49 }
 0x338   : > { %v6088_v35 = vpop.eup %4302 }
 0x339   : > { %v2284_v15 = vmul.f32 %v6088_v35, %v5992_v40 }
 0x33e   : > { %v1440_v29 = vpop.permute.xlu0 %1439 }
 0x33f   : > { %v2480_v23 = vpop.permute.xlu2 %2479  ;;  %v1457_v50 = vadd.f32 %v1440_v29, %v1361_v2  ;;  %v2288_v2 = vmul.f32 %v5994_v52, %v6145_v37 }
 0x340   : > { %v2500_v8 = vadd.f32 %v2480_v23, %v2310_v61 }
 0x341   : > { %v2474_v33 = vpop.permute.xlu1 %2473 }
 0x342   : > { %v2497_v55 = vadd.f32 %v2474_v33, %v2307_v58  ;;  %2599 = vrot.lane.b32.xlu2 %v2500_v8, %s4585_s0  ;;  %v2257_v8 = vmul.f32 %v6037_v5, %v2256_v62  ;;  %v2262_v58 = vmul.f32 %v6054_v24, %v2256_v62  ;;  %v2261_v33 = vmul.f32 %v6044_v19, %v2256_v62 }
 0x344   : > { %2593 = vrot.lane.b32.xlu1 %v2497_v55, %s4585_s0 }
 0x349   : > { %v2486_v20 = vpop.permute.xlu2 %2485 }
 0x34a   : > { %2517 = vrot.lane.b32.xlu2 %v2339_v36, %s4582_s12 }
 0x34c   : > { %2445 = vrot.lane.b32.xlu1 %v5957_v54, %s4583_s28  ;;  %v1467_v54 = vadd.f32 %v5961_v56, %v1457_v50 }
 0x34e   : > { %4304 = vtanh.f32 %v1467_v54 }
 0x34f   : > { %v2478_v9 = vpop.permute.xlu0 %2477 }
 0x350   : > { %v2499_v27 = vadd.f32 %v2478_v9, %v2309_v38 }
 0x351   : > { %v2436_v6 = vpop.permute.xlu2 %2435 }
 0x352   : > { %2597 = vrot.lane.b32.xlu0 %v2499_v27, %s4585_s0  ;;  %2447 = vrot.lane.b32.xlu2 %v5978_v22, %s4583_s28  ;;  %v2313_v22 = vmul.f32 %v5948_v25, %v5909_v44  ;;  %v2343_v44 = vmul.f32 %v5948_v25, %v2336_v49  ;;  %v2458_v38 = vadd.f32 %v2436_v6, %v2288_v2 }
 0x354   : > { %2407 = vrot.lane.b32.xlu1 %v2284_v15, %s4582_s12  ;;  %v6101_v31 = vpop.eup %4304  ;;  %v2503_v3 = vadd.f32 %v2486_v20, %v2313_v22  ;;  %v2290_v22 = vmul.f32 %v6029_v14, %v6145_v37 }
 0x355   : > { %v2283_v56 = vmul.f32 %v6101_v31, %v5992_v40  ;;  %v2337_v40 = vmul.f32 %v5892_v63, %v2336_v49  ;;  %v2263_v1 = vmul.f32 %v6101_v31, %v2256_v62 }
 0x357   : > { %v2482_v30 = vpop.permute.xlu0 %2481 }
 0x358   : > { %v2501_v53 = vadd.f32 %v2482_v30, %v5913_v28  ;;  %v2259_v28 = vmul.f32 %v6011_v42, %v2256_v62 }
 0x35a   : > { %2515 = vrot.lane.b32.xlu0 %v2338_v39, %s4582_s12 }
 0x35c   : > { %2519 = vrot.lane.b32.xlu1 %v2340_v11, %s4582_s12  ;;  %v2264_v11 = vmul.f32 %v6088_v35, %v2256_v62  ;;  %v2289_v62 = vmul.f32 %v6011_v42, %v6145_v37 }
 0x362   : > { %2405 = vrot.lane.b32.xlu0 %v2283_v56, %s4582_s12 }
 0x364   : > { %2605 = vrot.lane.b32.xlu1 %v2503_v3, %s4585_s0 }
 0x367   : > { %v2484_v41 = vpop.permute.xlu1 %2483 }
 0x368   : > { %v2502_v43 = vadd.f32 %v2484_v41, %v5971_v13  ;;  %v6121_v13 = vstv %s4080_s18  ;;  %v2488_v61 = vpop.permute.xlu0 %2487  ;;  %s4094_s18 = sld [smem:[#allocation15 + $0x3]] }
 0x369   : > { %v2268_v16 = vmul.f32 %v5994_v52, %v6121_v13  ;;  %v2504_v23 = vadd.f32 %v2488_v61, %v5982_v46  ;;  %v2267_v46 = vmul.f32 %v6037_v5, %v6121_v13  ;;  %v2269_v12 = vmul.f32 %v6011_v42, %v6121_v13 }
 0x36a   : > { %2601 = vrot.lane.b32.xlu0 %v2501_v53, %s4585_s0  ;;  %2603 = vrot.lane.b32.xlu2 %v2502_v43, %s4585_s0  ;;  %v2270_v54 = vmul.f32 %v6029_v14, %v6121_v13  ;;  %v2271_v30 = vmul.f32 %v6044_v19, %v6121_v13 }
 0x36c   : > { %2525 = vrot.lane.b32.xlu1 %v2343_v44, %s4582_s12  ;;  %v2272_v44 = vmul.f32 %v6054_v24, %v6121_v13 }
 0x371   : > { %v2396_v7 = vpop.permute.xlu1 %2395 }
 0x372   : > { %2513 = vrot.lane.b32.xlu0 %v2337_v40, %s4582_s12  ;;  %2523 = vrot.lane.b32.xlu2 %v2342_v51, %s4582_s12  ;;  %v2418_v18 = vadd.f32 %v2396_v7, %v2268_v16  ;;  %v6172_v16 = vstv %s4086_s26  ;;  %s4095_s26 = sld [smem:[#allocation15 + $0x4]] }
 0x373   : > { %v2328_v61 = vmul.f32 %v5888_v0, %v6172_v16  ;;  %v2291_v0 = vmul.f32 %v6044_v19, %v6145_v37 }
 0x374   : > { %2357 = vrot.lane.b32.xlu1 %v2259_v28, %s4582_s12 }
 0x376   : > { %v2394_v26 = vpop.permute.xlu2 %2393 }
 0x377   : > { %v2417_v45 = vadd.f32 %v2394_v26, %v2267_v46 }
 0x379   : > { %v2438_v29 = vpop.permute.xlu1 %2437 }
 0x37a   : > { %2521 = vrot.lane.b32.xlu0 %v2341_v47, %s4582_s12  ;;  %2527 = vrot.lane.b32.xlu2 %v2344_v60, %s4582_s12  ;;  %v2459_v28 = vadd.f32 %v2438_v29, %v2289_v62  ;;  %v2287_v47 = vmul.f32 %v6037_v5, %v6145_v37 }
 0x37c   : > { %2555 = vrot.lane.b32.xlu1 %v2418_v18, %s4584_s6 }
 0x37e   : > { %v2440_v55 = vpop.permute.xlu2 %2439 }
 0x37f   : > { %v2398_v32 = vpop.permute.xlu0 %2397  ;;  %v2460_v3 = vadd.f32 %v2440_v55, %v2290_v22 }
 0x380   : > { %v2419_v10 = vadd.f32 %v2398_v32, %v2269_v12 }
 0x381   : > { %v2434_v50 = vpop.permute.xlu1 %2433 }
 0x382   : > { %2607 = vrot.lane.b32.xlu0 %v2504_v23, %s4585_s0  ;;  %2353 = vrot.lane.b32.xlu2 %v2257_v8, %s4582_s12  ;;  %v2457_v18 = vadd.f32 %v2434_v50, %v2287_v47  ;;  %v2330_v50 = vmul.f32 %v5931_v57, %v6172_v16  ;;  %v2331_v57 = vmul.f32 %v5906_v48, %v6172_v16 }
 0x384   : > { %2363 = vrot.lane.b32.xlu1 %v2262_v58, %s4582_s12 }
 0x386   : > { %v2442_v49 = vpop.permute.xlu2 %2441 }
 0x387   : > { %v2400_v36 = vpop.permute.xlu0 %2399  ;;  %v2461_v29 = vadd.f32 %v2442_v49, %v2291_v0  ;;  %v2327_v49 = vmul.f32 %v5892_v63, %v6172_v16 }
 0x388   : > { %v2420_v39 = vadd.f32 %v2400_v36, %v2270_v54  ;;  %v2274_v36 = vmul.f32 %v6088_v35, %v6121_v13 }
 0x38a   : > { %2355 = vrot.lane.b32.xlu0 %v2258_v59, %s4582_s12  ;;  %2361 = vrot.lane.b32.xlu2 %v2261_v33, %s4582_s12  ;;  %v2329_v59 = vmul.f32 %v5918_v4, %v6172_v16  ;;  %v2273_v33 = vmul.f32 %v6101_v31, %v6121_v13 }
 0x38e   : > { %v2444_v27 = vpop.permute.xlu2 %2443 }
 0x392   : > { %2359 = vrot.lane.b32.xlu0 %v2260_v21, %s4582_s12  ;;  %2553 = vrot.lane.b32.xlu2 %v2417_v45, %s4584_s6 }
 0x396   : > { %v2402_v20 = vpop.permute.xlu1 %2401 }
 0x397   : > { %v2421_v41 = vadd.f32 %v2402_v20, %v2271_v30  ;;  %v2293_v20 = vmul.f32 %v6101_v31, %v6145_v37  ;;  %v2294_v30 = vmul.f32 %v6088_v35, %v6145_v37 }
 0x39a   : > { %2557 = vrot.lane.b32.xlu0 %v2419_v10, %s4584_s6  ;;  %2365 = vrot.lane.b32.xlu2 %v2263_v1, %s4582_s12 }
 0x39c   : > { %v2596_v9 = vpop.permute.xlu0 %2595  ;;  %v2600_v56 = vpop.permute.xlu2 %2599 }
 0x39d   : > { %v2618_v15 = vadd.f32 %v2596_v9, %v2458_v38  ;;  %v2620_v53 = vadd.f32 %v2600_v56, %v2460_v3  ;;  %v2292_v38 = vmul.f32 %v6054_v24, %v6145_v37  ;;  %v2334_v37 = vmul.f32 %v5965_v34, %v6172_v16 }
 0x39e   : > { %v2404_v43 = vpop.permute.xlu1 %2403 }
 0x39f   : > { %2635 = vrot.lane.b32.xlu1 %v2618_v15, %s4587_s25  ;;  %v2422_v40 = vadd.f32 %v2404_v43, %v2272_v44  ;;  %v2462_v9 = vadd.f32 %v2444_v27, %v2292_v38  ;;  %v2333_v43 = vmul.f32 %v5948_v25, %v6172_v16  ;;  %v2332_v44 = vmul.f32 %v5963_v17, %v6172_v16 }
 0x3a2   : > { %2559 = vrot.lane.b32.xlu0 %v2420_v39, %s4584_s6  ;;  %2367 = vrot.lane.b32.xlu2 %v2264_v11, %s4582_s12 }
 0x3a4   : > { %v2518_v58 = vpop.permute.xlu2 %2517 }
 0x3a5   : > { %v2539_v46 = vadd.f32 %v2518_v58, %v2329_v59 }
 0x3aa   : > { %2561 = vrot.lane.b32.xlu0 %v2421_v41, %s4584_s6  ;;  %2639 = vrot.lane.b32.xlu2 %v2620_v53, %s4587_s25 }
 0x3ac   : > { %v2448_v21 = vpop.permute.xlu2 %2447 }
 0x3ad   : > { %v2464_v53 = vadd.f32 %v2448_v21, %v2294_v30 }
 0x3b2   : > { %2563 = vrot.lane.b32.xlu0 %v2422_v40, %s4584_s6 }
 0x3b6   : > { %v2594_v51 = vpop.permute.xlu1 %2593 }
 0x3b7   : > { %v2617_v23 = vadd.f32 %v2594_v51, %v2457_v18 }
 0x3be   : > { %v2446_v60 = vpop.permute.xlu1 %2445 }
 0x3bf   : > { %v2463_v63 = vadd.f32 %v2446_v60, %v2293_v20 }
 0x3c4   : > { %v2598_v6 = vpop.permute.xlu0 %2597  ;;  %v2604_v2 = vpop.permute.xlu2 %2603 }
 0x3c5   : > { %v2619_v7 = vadd.f32 %v2598_v6, %v2459_v28  ;;  %v2622_v39 = vadd.f32 %v2604_v2, %v2462_v9 }
 0x3c6   : > { %v2408_v55 = vpop.permute.xlu1 %2407 }
 0x3c7   : > { %2637 = vrot.lane.b32.xlu1 %v2619_v7, %s4587_s25  ;;  %v2424_v12 = vadd.f32 %v2408_v55, %v2274_v36  ;;  %v6227_v55 = vstv %s2245_s27  ;;  %s4093_s27 = sld [smem:[#allocation15 + $0x2]] }
 0x3c8   : > { %v2252_v20 = vmul.f32 %v6054_v24, %v6227_v55  ;;  %v2247_v24 = vmul.f32 %v6037_v5, %v6227_v55 }
 0x3cc   : > { %v2516_v26 = vpop.permute.xlu0 %2515  ;;  %v2524_v22 = vpop.permute.xlu2 %2523 }
 0x3cd   : > { %v2538_v8 = vadd.f32 %v2516_v26, %v2328_v61  ;;  %v2542_v28 = vadd.f32 %v2524_v22, %v2332_v44 }
 0x3ce   : > { %v2520_v1 = vpop.permute.xlu1 %2519 }
 0x3cf   : > { %2675 = vrot.lane.b32.xlu0 %v2538_v8, %s4588_s10  ;;  %2633 = vrot.lane.b32.xlu1 %v2617_v23, %s4587_s25  ;;  %v2540_v15 = vadd.f32 %v2520_v1, %v2330_v50  ;;  %v2249_v1 = vmul.f32 %v6011_v42, %v6227_v55 }
 0x3d4   : > { %v2406_v32 = vpop.permute.xlu0 %2405  ;;  %v2528_v40 = vpop.permute.xlu2 %2527 }
 0x3d5   : > { %v2423_v45 = vadd.f32 %v2406_v32, %v2273_v33  ;;  %v2544_v6 = vadd.f32 %v2528_v40, %v2334_v37  ;;  %v2248_v32 = vmul.f32 %v5994_v52, %v6227_v55 }
 0x3d6   : > { %v2606_v11 = vpop.permute.xlu1 %2605 }
 0x3d7   : > { %2565 = vrot.lane.b32.xlu1 %v2423_v45, %s4584_s6  ;;  %2677 = vrot.lane.b32.xlu0 %v2539_v46, %s4588_s10  ;;  %v2623_v3 = vadd.f32 %v2606_v11, %v2463_v63  ;;  %v6238_v11 = vstv %s4090_s21  ;;  %s3161_s21 = sld [smem:[#allocation5]] }
 0x3dc   : > { %v2602_v4 = vpop.permute.xlu0 %2601  ;;  %v2354_v7 = vpop.permute.xlu2 %2353 }
 0x3dd   : > { %v2621_v10 = vadd.f32 %v2602_v4, %v2461_v29  ;;  %v6233_v4 = vstv %s2705_s8  ;;  %s2951_s8 = sld [smem:[#allocation15]] }
 0x3de   : > { %v2526_v41 = vpop.permute.xlu1 %2525 }
 0x3df   : > { %2567 = vrot.lane.b32.xlu1 %v2424_v12, %s4584_s6  ;;  %2641 = vrot.lane.b32.xlu2 %v2621_v10, %s4587_s25  ;;  %v2543_v51 = vadd.f32 %v2526_v41, %v2333_v43 }
 0x3e4   : > { %v2514_v13 = vpop.permute.xlu0 %2513  ;;  %v6219_v17 = vpop.permute.xlu2 %2361 }
 0x3e5   : > { %v2537_v54 = vadd.f32 %v2514_v13, %v2327_v49 }
 0x3e6   : > { %v2358_v18 = vpop.permute.xlu1 %2357 }
 0x3e7   : > { %2679 = vrot.lane.b32.xlu1 %v2540_v15, %s4588_s10  ;;  %2673 = vrot.lane.b32.xlu0 %v2537_v54, %s4588_s10  ;;  %v2379_v50 = vadd.f32 %v2358_v18, %v2249_v1 }
 0x3e8   : > { %2643 = vrot.lane.b32.xlu2 %v2622_v39, %s4587_s25 }
 0x3ec   : > { %v2522_v27 = vpop.permute.xlu0 %2521  ;;  %v2554_v60 = vpop.permute.xlu2 %2553 }
 0x3ed   : > { %v2541_v56 = vadd.f32 %v2522_v27, %v2331_v57 }
 0x3ee   : > { %v2556_v23 = vpop.permute.xlu1 %2555 }
 0x3ef   : > { %2681 = vrot.lane.b32.xlu0 %v2541_v56, %s4588_s10  ;;  %v2250_v56 = vmul.f32 %v6029_v14, %v6227_v55 }
 0x3f0   : > { %2645 = vrot.lane.b32.xlu2 %v2623_v3, %s4587_s25 }
 0x3f4   : > { %v2608_v48 = vpop.permute.xlu0 %2607  ;;  %v6221_v26 = vpop.permute.xlu2 %2365 }
 0x3f5   : > { %v2624_v62 = vadd.f32 %v2608_v48, %v2464_v53  ;;  %v2377_v48 = vadd.f32 %v2354_v7, %v2247_v24 }
 0x3f6   : > { %v2364_v59 = vpop.permute.xlu1 %2363 }
 0x3f7   : > { %2685 = vrot.lane.b32.xlu0 %v2543_v51, %s4588_s10  ;;  %2647 = vrot.lane.b32.xlu1 %v2624_v62, %s4587_s25  ;;  %v2382_v57 = vadd.f32 %v2364_v59, %v2252_v20  ;;  %v2734_v20 = vstv %s4088_s29  ;;  %s3226_s29 = sld [smem:[#allocation16]] }
 0x3f8   : > { %2683 = vrot.lane.b32.xlu2 %v2542_v28, %s4588_s10  ;;  %v2577_v28 = vadd.f32 %v2554_v60, %v2377_v48 }
 0x3fc   : > { %v2356_v25 = vpop.permute.xlu0 %2355  ;;  %v6223_v58 = vpop.permute.xlu2 %2367 }
 0x3fd   : > { %v2378_v21 = vadd.f32 %v2356_v25, %v2248_v32  ;;  %v2251_v25 = vmul.f32 %v6044_v19, %v6227_v55 }
 0x3ff   : > { %2687 = vrot.lane.b32.xlu1 %v2544_v6, %s4588_s10  ;;  %v2578_v29 = vadd.f32 %v2556_v23, %v2378_v21  ;;  %v2381_v18 = vadd.f32 %v6219_v17, %v2251_v25 }
 0x404   : > { %v2360_v47 = vpop.permute.xlu0 %2359  ;;  %v2640_v16 = vpop.permute.xlu2 %2639 }
 0x405   : > { %v2380_v41 = vadd.f32 %v2360_v47, %v2250_v56 }
 0x40c   : > { %v2558_v61 = vpop.permute.xlu0 %2557 }
 0x40d   : > { %v2579_v49 = vadd.f32 %v2558_v61, %v2379_v50 }
 0x411   : > { %v2636_v33 = vpop.permute.xlu1 %2635 }
 0x412   : > { %v2658_v36 = vadd.f32 %v2636_v33, %v2578_v29  ;;  %v2253_v33 = vmul.f32 %v6101_v31, %v6227_v55 }
 0x414   : > { %v2560_v8 = vpop.permute.xlu0 %2559 }
 0x415   : > { %v2580_v40 = vadd.f32 %v2560_v8, %v2380_v41  ;;  %v6265_v8 = vstv %s2723_s22  ;;  %s4099_s22 = sld [smem:[#allocation16 + $0x1]] }
 0x417   : > { %v2660_v5 = vadd.f32 %v2640_v16, %v2580_v40  ;;  %v6268_v16 = vstv %s4091_s1  ;;  %s4097_s1 = sld [smem:[#allocation16 + $0x3]] }
 0x41c   : > { %v6225_v34 = vpop.permute.xlu0 %2561 }
 0x41d   : > { %v2581_v59 = vadd.f32 %v6225_v34, %v2381_v18  ;;  %v2383_v34 = vadd.f32 %v6221_v26, %v2253_v33 }
 0x424   : > { %v2564_v46 = vpop.permute.xlu0 %2563 }
 0x425   : > { %v2582_v27 = vadd.f32 %v2564_v46, %v2382_v57 }
 0x439   : > { %v2638_v45 = vpop.permute.xlu1 %2637  ;;  %v6231_v0 = vpop.permute.xlu2 %2641 }
 0x43a   : > { %v2659_v9 = vadd.f32 %v2638_v45, %v2579_v49  ;;  %v2661_v32 = vadd.f32 %v6231_v0, %v2581_v59 }
 0x441   : > { %v2676_v12 = vpop.permute.xlu0 %2675  ;;  %v2634_v10 = vpop.permute.xlu1 %2633 }
 0x442   : > { %v2698_v2 = vadd.f32 %v2676_v12, %v2658_v36  ;;  %v2644_v38 = vpop.permute.xlu2 %2643  ;;  %v2657_v14 = vadd.f32 %v2634_v10, %v2577_v28 }
 0x443   : > { %v2662_v3 = vadd.f32 %v2644_v38, %v2582_v27  ;;  %v2254_v38 = vmul.f32 %v6088_v35, %v6227_v55 }
 0x444   : > { %v2708_v52 = vadd.f32 %v6233_v4, %v2698_v2 }
 0x445   : > { %v2384_v49 = vadd.f32 %v6223_v58, %v2254_v38 }
 0x446   : > { %4306 = vtanh.f32 %v2708_v52 }
 0x449   : > { %v2566_v13 = vpop.permute.xlu1 %2565  ;;  %v2678_v15 = vpop.permute.xlu0 %2677 }
 0x44a   : > { %v2699_v54 = vadd.f32 %v2678_v15, %v2659_v9  ;;  %v2646_v39 = vpop.permute.xlu2 %2645  ;;  %v2583_v29 = vadd.f32 %v2566_v13, %v2383_v34 }
 0x44c   : > { %v6242_v22 = vpop.eup %4306  ;;  %v2709_v42 = vadd.f32 %v6233_v4, %v2699_v54  ;;  %v2663_v0 = vadd.f32 %v2646_v39, %v2583_v29 }
 0x44d   : > { %v2756_v63 = vmul.f32 %v6242_v22, %v6238_v11 }
 0x44e   : > { %4308 = vtanh.f32 %v2709_v42 }
 0x44f   : > { %2823 = vrot.lane.b32.xlu2 %v2756_v63, %s4582_s12  ;;  %v6314_v63 = vstv %s4089_s30  ;;  %s4098_s30 = sld [smem:[#allocation16 + $0x2]] }
 0x450   : > { %v2746_v18 = vmul.f32 %v6242_v22, %v6314_v63 }
 0x451   : > { %v2568_v30 = vpop.permute.xlu1 %2567 }
 0x452   : > { %v2684_v53 = vpop.permute.xlu2 %2683  ;;  %v2584_v15 = vadd.f32 %v2568_v30, %v2384_v49 }
 0x453   : > { %v2702_v43 = vadd.f32 %v2684_v53, %v2662_v3  ;;  %v2736_v3 = vmul.f32 %v6242_v22, %v2734_v20 }
 0x454   : > { %v6252_v44 = vpop.eup %4308 }
 0x455   : > { %v2712_v51 = vadd.f32 %v6233_v4, %v2702_v43  ;;  %v2757_v62 = vmul.f32 %v6252_v44, %v6238_v11  ;;  %v2737_v41 = vmul.f32 %v6252_v44, %v2734_v20  ;;  %v2747_v59 = vmul.f32 %v6252_v44, %v6314_v63 }
 0x457   : > { %4310 = vtanh.f32 %v2712_v51  ;;  %2825 = vrot.lane.b32.xlu0 %v2757_v62, %s4582_s12  ;;  %v2766_v62 = vmul.f32 %v6242_v22, %v6268_v16 }
 0x459   : > { %v2680_v37 = vpop.permute.xlu1 %2679  ;;  %v2674_v6 = vpop.permute.xlu0 %2673 }
 0x45a   : > { %v2700_v7 = vadd.f32 %v2680_v37, %v2660_v5  ;;  %v2697_v47 = vadd.f32 %v2674_v6, %v2657_v14  ;;  %v2767_v14 = vmul.f32 %v6252_v44, %v6268_v16 }
 0x45c   : > { %v2710_v61 = vadd.f32 %v6233_v4, %v2700_v7  ;;  %v2707_v23 = vadd.f32 %v6233_v4, %v2697_v47 }
 0x45d   : > { %v6263_v60 = vpop.eup %4310 }
 0x45e   : > { %4312 = vtanh.f32 %v2710_v61  ;;  %v6272_v19 = vmul.f32 %v6263_v60, %v6265_v8  ;;  %v6276_v17 = vmul.f32 %v6263_v60, %v6268_v16  ;;  %v2760_v54 = vmul.f32 %v6263_v60, %v6238_v11 }
 0x45f   : > { %4314 = vtanh.f32 %v2707_v23 }
 0x461   : > { %v2682_v46 = vpop.permute.xlu0 %2681 }
 0x462   : > { %v2701_v45 = vadd.f32 %v2682_v46, %v2661_v32 }
 0x464   : > { %v6282_v21 = vpop.eup %4312  ;;  %v2711_v36 = vadd.f32 %v6233_v4, %v2701_v45 }
 0x465   : > { %v6285_v12 = vpop.eup %4314  ;;  %v2758_v10 = vmul.f32 %v6282_v21, %v6238_v11  ;;  %v2738_v48 = vmul.f32 %v6282_v21, %v2734_v20  ;;  %v2768_v7 = vmul.f32 %v6282_v21, %v6268_v16  ;;  %v2748_v34 = vmul.f32 %v6282_v21, %v6314_v63 }
 0x466   : > { %4316 = vtanh.f32 %v2711_v36  ;;  %v2755_v31 = vmul.f32 %v6285_v12, %v6238_v11  ;;  %v6294_v26 = vmul.f32 %v6285_v12, %v6265_v8  ;;  %v2735_v51 = vmul.f32 %v6285_v12, %v2734_v20 }
 0x467   : > { %2827 = vrot.lane.b32.xlu2 %v2758_v10, %s4582_s12  ;;  %v2765_v37 = vmul.f32 %v6285_v12, %v6268_v16  ;;  %v2745_v10 = vmul.f32 %v6285_v12, %v6314_v63  ;;  %v2750_v12 = vmul.f32 %v6263_v60, %v6314_v63 }
 0x468   : > { %2821 = vrot.lane.b32.xlu1 %v2755_v31, %s4582_s12 }
 0x469   : > { %v2686_v1 = vpop.permute.xlu0 %2685  ;;  %v2648_v2 = vpop.permute.xlu1 %2647 }
 0x46a   : > { %v2703_v50 = vadd.f32 %v2686_v1, %v2663_v0  ;;  %v2664_v55 = vadd.f32 %v2648_v2, %v2584_v15 }
 0x46c   : > { %v6299_v52 = vpop.eup %4316  ;;  %v2713_v9 = vadd.f32 %v6233_v4, %v2703_v50 }
 0x46d   : > { %v2759_v13 = vmul.f32 %v6299_v52, %v6238_v11  ;;  %v6309_v35 = vmul.f32 %v6299_v52, %v6265_v8  ;;  %v2739_v28 = vmul.f32 %v6299_v52, %v2734_v20  ;;  %v2769_v25 = vmul.f32 %v6299_v52, %v6268_v16 }
 0x46e   : > { %4318 = vtanh.f32 %v2713_v9  ;;  %v2749_v2 = vmul.f32 %v6299_v52, %v6314_v63 }
 0x46f   : > { %2829 = vrot.lane.b32.xlu0 %v2759_v13, %s4582_s12 }
 0x470   : > { %2831 = vrot.lane.b32.xlu1 %v2760_v54, %s4582_s12 }
 0x471   : > { %v2688_v58 = vpop.permute.xlu1 %2687 }
 0x472   : > { %v2704_v39 = vadd.f32 %v2688_v58, %v2664_v55 }
 0x474   : > { %v4319_v42 = vpop.eup %4318  ;;  %v2714_v57 = vadd.f32 %v6233_v4, %v2704_v39 }
 0x475   : > { %v2761_v27 = vmul.f32 %v4319_v42, %v6238_v11  ;;  %v6318_v56 = vmul.f32 %v4319_v42, %v6314_v63  ;;  %v6322_v30 = vmul.f32 %v4319_v42, %v6265_v8  ;;  %v2741_v5 = vmul.f32 %v4319_v42, %v2734_v20 }
 0x476   : > { %4320 = vtanh.f32 %v2714_v57  ;;  %v2771_v23 = vmul.f32 %v4319_v42, %v6268_v16 }
 0x477   : > { %2833 = vrot.lane.b32.xlu2 %v2761_v27, %s4582_s12  ;;  %v6399_v27 = vstv %s2933_s24  ;;  %s4096_s24 = sld [smem:[#allocation16 + $0x4]] }
 0x478   : > { %2783 = vrot.lane.b32.xlu1 %v2736_v3, %s4582_s12 }
 0x47c   : > { %v4321_v24 = vpop.eup %4320 }
 0x47d   : > { %v2762_v4 = vmul.f32 %v4321_v24, %v6238_v11  ;;  %v6329_v53 = vmul.f32 %v4321_v24, %v6314_v63  ;;  %v6332_v43 = vmul.f32 %v4321_v24, %v6268_v16  ;;  %v6336_v40 = vmul.f32 %v4321_v24, %v6265_v8 }
 0x47e   : > { %v2740_v11 = vmul.f32 %v6263_v60, %v2734_v20  ;;  %v2742_v6 = vmul.f32 %v4321_v24, %v2734_v20  ;;  %v2727_v16 = vmul.f32 %v6252_v44, %v6265_v8  ;;  %v2726_v20 = vmul.f32 %v6242_v22, %v6265_v8 }
 0x47f   : > { %2835 = vrot.lane.b32.xlu0 %v2762_v4, %s4582_s12  ;;  %2785 = vrot.lane.b32.xlu2 %v2737_v41, %s4582_s12 }
 0x480   : > { %2787 = vrot.lane.b32.xlu1 %v2738_v48, %s4582_s12 }
 0x487   : > { %2791 = vrot.lane.b32.xlu2 %v2740_v11, %s4582_s12  ;;  %2781 = vrot.lane.b32.xlu0 %v2735_v51, %s4582_s12 }
 0x48f   : > { %2903 = vrot.lane.b32.xlu2 %v2766_v62, %s4587_s25  ;;  %2789 = vrot.lane.b32.xlu0 %v2739_v28, %s4582_s12  ;;  %v2728_v28 = vmul.f32 %v6282_v21, %v6265_v8 }
 0x497   : > { %2905 = vrot.lane.b32.xlu2 %v2767_v14, %s4587_s25  ;;  %2793 = vrot.lane.b32.xlu0 %v2741_v5, %s4582_s12 }
 0x49f   : > { %2901 = vrot.lane.b32.xlu2 %v2765_v37, %s4587_s25  ;;  %2795 = vrot.lane.b32.xlu0 %v2742_v6, %s4582_s12 }
 0x4a7   : > { %2909 = vrot.lane.b32.xlu2 %v2769_v25, %s4587_s25  ;;  %2907 = vrot.lane.b32.xlu0 %v2768_v7, %s4587_s25 }
 0x4a9   : > { %v2824_v47 = vpop.permute.xlu2 %2823 }
 0x4aa   : > { %v2846_v61 = vadd.f32 %v2824_v47, %v2746_v18 }
 0x4af   : > { %2863 = vrot.lane.b32.xlu2 %v2846_v61, %s4584_s6 }
 0x4b7   : > { %2913 = vrot.lane.b32.xlu2 %v2771_v23, %s4587_s25 }
 0x4c1   : > { %v2828_v33 = vpop.permute.xlu2 %2827 }
 0x4c2   : > { %v2848_v29 = vadd.f32 %v2828_v33, %v2748_v34 }
 0x4c9   : > { %v2826_v32 = vpop.permute.xlu0 %2825 }
 0x4ca   : > { %v2847_v46 = vadd.f32 %v2826_v32, %v2747_v59 }
 0x4cc   : > { %2865 = vrot.lane.b32.xlu1 %v2847_v46, %s4584_s6 }
 0x4d1   : > { %v2834_v45 = vpop.permute.xlu2 %2833 }
 0x4d2   : > { %v2851_v52 = vadd.f32 %v2834_v45, %v6318_v56 }
 0x4d4   : > { %2867 = vrot.lane.b32.xlu1 %v2848_v29, %s4584_s6 }
 0x4d9   : > { %v2786_v36 = vpop.permute.xlu2 %2785 }
 0x4da   : > { %v2807_v31 = vadd.f32 %v2786_v36, %v2727_v16  ;;  %v2822_v0 = vpop.permute.xlu1 %2821 }
 0x4db   : > { %v2845_v1 = vadd.f32 %v2822_v0, %v2745_v10 }
 0x4dd   : > { %2861 = vrot.lane.b32.xlu0 %v2845_v1, %s4584_s6 }
 0x4e1   : > { %v2830_v38 = vpop.permute.xlu0 %2829  ;;  %v2792_v50 = vpop.permute.xlu2 %2791 }
 0x4e2   : > { %v2849_v49 = vadd.f32 %v2830_v38, %v2749_v2  ;;  %v6383_v9 = vadd.f32 %v2792_v50, %v6272_v19  ;;  %v2832_v44 = vpop.permute.xlu1 %2831 }
 0x4e3   : > { %v2850_v15 = vadd.f32 %v2832_v44, %v2750_v12 }
 0x4e4   : > { %2869 = vrot.lane.b32.xlu1 %v2849_v49, %s4584_s6 }
 0x4e9   : > { %v2904_v13 = vpop.permute.xlu2 %2903 }
 0x4ea   : > { %v2784_v39 = vpop.permute.xlu1 %2783 }
 0x4eb   : > { %v2806_v42 = vadd.f32 %v2784_v39, %v2726_v20 }
 0x4ec   : > { %2871 = vrot.lane.b32.xlu1 %v2850_v15, %s4584_s6 }
 0x4f1   : > { %v2836_v54 = vpop.permute.xlu0 %2835  ;;  %v2906_v55 = vpop.permute.xlu2 %2905 }
 0x4f2   : > { %v2852_v58 = vadd.f32 %v2836_v54, %v6329_v53 }
 0x4f4   : > { %2873 = vrot.lane.b32.xlu1 %v2851_v52, %s4584_s6  ;;  %2875 = vrot.lane.b32.xlu0 %v2852_v58, %s4584_s6 }
 0x4f9   : > { %v2902_v19 = vpop.permute.xlu2 %2901  ;;  %v2782_v22 = vpop.permute.xlu0 %2781 }
 0x4fa   : > { %v2805_v23 = vadd.f32 %v2782_v22, %v6294_v26 }
 0x4fc   : > { %2911 = vrot.lane.b32.xlu1 %v6276_v17, %s4587_s25  ;;  %2915 = vrot.lane.b32.xlu0 %v6332_v43, %s4587_s25  ;;  %v6402_v17 = vstv %s4094_s18  ;;  %v2788_v43 = vpop.permute.xlu1 %2787  ;;  %s3249_s18 = sld [smem:[#allocation6]] }
 0x4fd   : > { %v2808_v5 = vadd.f32 %v2788_v43, %v2728_v28 }
 0x501   : > { %v2910_v60 = vpop.permute.xlu2 %2909  ;;  %v2790_v41 = vpop.permute.xlu0 %2789 }
 0x502   : > { %v2809_v34 = vadd.f32 %v2790_v41, %v6309_v35 }
 0x509   : > { %v2864_v57 = vpop.permute.xlu2 %2863  ;;  %v2794_v53 = vpop.permute.xlu0 %2793 }
 0x50a   : > { %v2886_v63 = vadd.f32 %v2864_v57, %v2806_v42  ;;  %v2811_v1 = vadd.f32 %v2794_v53, %v6322_v30 }
 0x50c   : > { %v2926_v56 = vadd.f32 %v2904_v13, %v2886_v63  ;;  %v2962_v63 = vstv %s4092_s23  ;;  %s4103_s23 = sld [smem:[#allocation18 + $0x1]] }
 0x50e   : > { %v2936_v3 = vadd.f32 %v6399_v27, %v2926_v56 }
 0x510   : > { %4322 = vtanh.f32 %v2936_v3 }
 0x511   : > { %v2796_v48 = vpop.permute.xlu0 %2795  ;;  %v2914_v49 = vpop.permute.xlu2 %2913 }
 0x512   : > { %v2812_v12 = vadd.f32 %v2796_v48, %v6336_v40 }
 0x516   : > { %v6404_v24 = vpop.eup %4322 }
 0x517   : > { %v2984_v4 = vmul.f32 %v6404_v24, %v6402_v17  ;;  %v2964_v56 = vmul.f32 %v6404_v24, %v2962_v63 }
 0x519   : > { %3051 = vrot.lane.b32.xlu1 %v2984_v4, %s4582_s12  ;;  %v2908_v6 = vpop.permute.xlu0 %2907 }
 0x53e   : > { %v2866_v11 = vpop.permute.xlu1 %2865 }
 0x53f   : > { %v2887_v51 = vadd.f32 %v2866_v11, %v2807_v31 }
 0x541   : > { %v2927_v62 = vadd.f32 %v2906_v55, %v2887_v51 }
 0x543   : > { %v2937_v14 = vadd.f32 %v6399_v27, %v2927_v62 }
 0x545   : > { %4324 = vtanh.f32 %v2937_v14  ;;  %v2972_v14 = vstv %s4093_s27  ;;  %s3272_s27 = sld [smem:[#allocation18]] }
 0x546   : > { %v2868_v37 = vpop.permute.xlu1 %2867 }
 0x547   : > { %v2888_v25 = vadd.f32 %v2868_v37, %v2808_v5 }
 0x549   : > { %v2928_v7 = vadd.f32 %v2908_v6, %v2888_v25 }
 0x54b   : > { %v6412_v47 = vpop.eup %4324  ;;  %v2938_v18 = vadd.f32 %v6399_v27, %v2928_v7  ;;  %v2974_v7 = vmul.f32 %v6404_v24, %v2972_v14 }
 0x54c   : > { %v2985_v61 = vmul.f32 %v6412_v47, %v6402_v17  ;;  %v2975_v5 = vmul.f32 %v6412_v47, %v2972_v14 }
 0x54d   : > { %4326 = vtanh.f32 %v2938_v18 }
 0x54e   : > { %3053 = vrot.lane.b32.xlu2 %v2985_v61, %s4582_s12 }
 0x54f   : > { %v2862_v8 = vpop.permute.xlu0 %2861 }
 0x550   : > { %v2885_v21 = vadd.f32 %v2862_v8, %v2805_v23 }
 0x552   : > { %v2925_v59 = vadd.f32 %v2902_v19, %v2885_v21 }
 0x553   : > { %v6419_v33 = vpop.eup %4326 }
 0x554   : > { %v2935_v32 = vadd.f32 %v6399_v27, %v2925_v59  ;;  %v2986_v46 = vmul.f32 %v6419_v33, %v6402_v17  ;;  %v2966_v22 = vmul.f32 %v6419_v33, %v2962_v63  ;;  %v2976_v23 = vmul.f32 %v6419_v33, %v2972_v14 }
 0x556   : > { %4328 = vtanh.f32 %v2935_v32  ;;  %v2870_v45 = vpop.permute.xlu1 %2869  ;;  %3055 = vrot.lane.b32.xlu1 %v2986_v46, %s4582_s12 }
 0x557   : > { %v2889_v29 = vadd.f32 %v2870_v45, %v2809_v34 }
 0x559   : > { %v2929_v26 = vadd.f32 %v2910_v60, %v2889_v29 }
 0x55b   : > { %v2939_v16 = vadd.f32 %v6399_v27, %v2929_v26 }
 0x55c   : > { %v6427_v36 = vpop.eup %4328 }
 0x55d   : > { %4330 = vtanh.f32 %v2939_v16  ;;  %v2983_v10 = vmul.f32 %v6427_v36, %v6402_v17  ;;  %v2963_v3 = vmul.f32 %v6427_v36, %v2962_v63  ;;  %v2973_v46 = vmul.f32 %v6427_v36, %v2972_v14 }
 0x55e   : > { %v2872_v31 = vpop.permute.xlu1 %2871 }
 0x55f   : > { %3049 = vrot.lane.b32.xlu0 %v2983_v10, %s4582_s12  ;;  %v2890_v15 = vadd.f32 %v2872_v31, %v6383_v9 }
 0x563   : > { %v6432_v0 = vpop.eup %4330 }
 0x564   : > { %v2987_v35 = vmul.f32 %v6432_v0, %v6402_v17  ;;  %v2967_v41 = vmul.f32 %v6432_v0, %v2962_v63  ;;  %v2977_v32 = vmul.f32 %v6432_v0, %v2972_v14 }
 0x566   : > { %v2874_v2 = vpop.permute.xlu1 %2873  ;;  %3057 = vrot.lane.b32.xlu2 %v2987_v35, %s4582_s12  ;;  %v2876_v38 = vpop.permute.xlu0 %2875 }
 0x567   : > { %v2891_v50 = vadd.f32 %v2874_v2, %v2811_v1  ;;  %v2892_v54 = vadd.f32 %v2876_v38, %v2812_v12 }
 0x569   : > { %v2931_v44 = vadd.f32 %v2914_v49, %v2891_v50 }
 0x56b   : > { %v2941_v13 = vadd.f32 %v6399_v27, %v2931_v44 }
 0x56d   : > { %4332 = vtanh.f32 %v2941_v13 }
 0x56e   : > { %v2912_v55 = vpop.permute.xlu1 %2911  ;;  %v2916_v52 = vpop.permute.xlu0 %2915 }
 0x56f   : > { %v2930_v58 = vadd.f32 %v2912_v55, %v2890_v15  ;;  %v2932_v19 = vadd.f32 %v2916_v52, %v2892_v54 }
 0x571   : > { %v2940_v30 = vadd.f32 %v6399_v27, %v2930_v58  ;;  %v2942_v60 = vadd.f32 %v6399_v27, %v2932_v19  ;;  %v2965_v27 = vmul.f32 %v6412_v47, %v2962_v63 }
 0x573   : > { %v6443_v39 = vpop.eup %4332  ;;  %4334 = vtanh.f32 %v2940_v30 }
 0x574   : > { %4336 = vtanh.f32 %v2942_v60  ;;  %v2989_v40 = vmul.f32 %v6443_v39, %v6402_v17  ;;  %v2969_v43 = vmul.f32 %v6443_v39, %v2962_v63  ;;  %v2979_v49 = vmul.f32 %v6443_v39, %v2972_v14 }
 0x576   : > { %3061 = vrot.lane.b32.xlu1 %v2989_v40, %s4582_s12 }
 0x579   : > { %v6448_v9 = vpop.eup %4334 }
 0x57a   : > { %v6450_v20 = vpop.eup %4336  ;;  %v2988_v42 = vmul.f32 %v6448_v9, %v6402_v17  ;;  %v2968_v4 = vmul.f32 %v6448_v9, %v2962_v63  ;;  %v2978_v1 = vmul.f32 %v6448_v9, %v2972_v14 }
 0x57b   : > { %v2990_v57 = vmul.f32 %v6450_v20, %v6402_v17  ;;  %v2992_v17 = vstv %s4095_s26  ;;  %v2970_v11 = vmul.f32 %v6450_v20, %v2962_v63  ;;  %v2980_v16 = vmul.f32 %v6450_v20, %v2972_v14  ;;  %s4101_s26 = sld [smem:[#allocation18 + $0x3]] }
 0x57c   : > { %3059 = vrot.lane.b32.xlu0 %v2988_v42, %s4582_s12  ;;  %v2994_v53 = vmul.f32 %v6404_v24, %v2992_v17  ;;  %v2995_v48 = vmul.f32 %v6412_v47, %v2992_v17  ;;  %v2993_v51 = vmul.f32 %v6427_v36, %v2992_v17  ;;  %v2996_v62 = vmul.f32 %v6419_v33, %v2992_v17 }
 0x57d   : > { %3063 = vrot.lane.b32.xlu2 %v2990_v57, %s4582_s12  ;;  %v2997_v28 = vmul.f32 %v6432_v0, %v2992_v17  ;;  %v2999_v61 = vmul.f32 %v6443_v39, %v2992_v17  ;;  %v3000_v31 = vmul.f32 %v6450_v20, %v2992_v17  ;;  %v2998_v15 = vmul.f32 %v6448_v9, %v2992_v17 }
 0x57e   : > { %3013 = vrot.lane.b32.xlu1 %v2965_v27, %s4582_s12  ;;  %v6512_v57 = vstv %s2951_s8  ;;  %s4102_s8 = sld [smem:[#allocation18 + $0x2]] }
 0x57f   : > { %v2954_v63 = vmul.f32 %v6404_v24, %v6512_v57  ;;  %v2955_v27 = vmul.f32 %v6412_v47, %v6512_v57 }
 0x584   : > { %3011 = vrot.lane.b32.xlu0 %v2964_v56, %s4582_s12 }
 0x585   : > { %3009 = vrot.lane.b32.xlu2 %v2963_v3, %s4582_s12 }
 0x586   : > { %3019 = vrot.lane.b32.xlu1 %v2968_v4, %s4582_s12 }
 0x58b   : > { %v3052_v6 = vpop.permute.xlu1 %3051 }
 0x58c   : > { %3015 = vrot.lane.b32.xlu0 %v2966_v22, %s4582_s12  ;;  %v3074_v18 = vadd.f32 %v3052_v6, %v2974_v7 }
 0x58d   : > { %3017 = vrot.lane.b32.xlu2 %v2967_v41, %s4582_s12 }
 0x58e   : > { %3131 = vrot.lane.b32.xlu1 %v2994_v53, %s4587_s25 }
 0x595   : > { %3021 = vrot.lane.b32.xlu2 %v2969_v43, %s4582_s12 }
 0x596   : > { %3133 = vrot.lane.b32.xlu1 %v2995_v48, %s4587_s25 }
 0x59d   : > { %3023 = vrot.lane.b32.xlu2 %v2970_v11, %s4582_s12  ;;  %v2953_v11 = vmul.f32 %v6427_v36, %v6512_v57  ;;  %v2956_v36 = vmul.f32 %v6419_v33, %v6512_v57 }
 0x59e   : > { %3129 = vrot.lane.b32.xlu1 %v2993_v51, %s4587_s25  ;;  %v6520_v51 = vstv %s3161_s21  ;;  %s4100_s21 = sld [smem:[#allocation18 + $0x4]] }
 0x5a5   : > { %3135 = vrot.lane.b32.xlu2 %v2996_v62, %s4587_s25 }
 0x5a6   : > { %3137 = vrot.lane.b32.xlu1 %v2997_v28, %s4587_s25 }
 0x5a8   : > { %v3054_v37 = vpop.permute.xlu2 %3053 }
 0x5a9   : > { %v3075_v25 = vadd.f32 %v3054_v37, %v2975_v5 }
 0x5ab   : > { %3093 = vrot.lane.b32.xlu0 %v3075_v25, %s4584_s6 }
 0x5ae   : > { %3091 = vrot.lane.b32.xlu1 %v3074_v18, %s4584_s6 }
 0x5b6   : > { %3141 = vrot.lane.b32.xlu1 %v2999_v61, %s4587_s25 }
 0x5c0   : > { %v3058_v59 = vpop.permute.xlu2 %3057 }
 0x5c1   : > { %v3077_v34 = vadd.f32 %v3058_v59, %v2977_v32 }
 0x5c8   : > { %v3056_v8 = vpop.permute.xlu1 %3055 }
 0x5c9   : > { %v3076_v21 = vadd.f32 %v3056_v8, %v2976_v23 }
 0x5cb   : > { %3095 = vrot.lane.b32.xlu0 %v3076_v21, %s4584_s6 }
 0x5d1   : > { %v3050_v45 = vpop.permute.xlu0 %3049 }
 0x5d2   : > { %v3073_v29 = vadd.f32 %v3050_v45, %v2973_v46 }
 0x5d3   : > { %3097 = vrot.lane.b32.xlu0 %v3077_v34, %s4584_s6  ;;  %v2957_v34 = vmul.f32 %v6432_v0, %v6512_v57 }
 0x5d4   : > { %3089 = vrot.lane.b32.xlu2 %v3073_v29, %s4584_s6 }
 0x5d7   : > { %v3064_v26 = vpop.permute.xlu2 %3063 }
 0x5d8   : > { %v3080_v10 = vadd.f32 %v3064_v26, %v2980_v16 }
 0x5dc   : > { %3103 = vrot.lane.b32.xlu2 %v3080_v10, %s4584_s6 }
 0x5df   : > { %v3010_v13 = vpop.permute.xlu2 %3009 }
 0x5e0   : > { %v3033_v62 = vadd.f32 %v3010_v13, %v2953_v11  ;;  %v2959_v13 = vmul.f32 %v6443_v39, %v6512_v57 }
 0x5e4   : > { %3143 = vrot.lane.b32.xlu2 %v3000_v31, %s4587_s25 }
 0x5e7   : > { %v3018_v55 = vpop.permute.xlu2 %3017 }
 0x5e8   : > { %v3062_v35 = vpop.permute.xlu1 %3061  ;;  %v3037_v29 = vadd.f32 %v3018_v55, %v2957_v34 }
 0x5e9   : > { %v3079_v44 = vadd.f32 %v3062_v35, %v2979_v49 }
 0x5ee   : > { %v3060_v2 = vpop.permute.xlu0 %3059 }
 0x5ef   : > { %v3078_v38 = vadd.f32 %v3060_v2, %v2978_v1  ;;  %v6508_v30 = vpop.permute.xlu2 %3021 }
 0x5f0   : > { %v3014_v50 = vpop.permute.xlu1 %3013 }
 0x5f1   : > { %3099 = vrot.lane.b32.xlu0 %v3078_v38, %s4584_s6  ;;  %v3035_v17 = vadd.f32 %v3014_v50, %v2955_v27 }
 0x5f6   : > { %v3012_v19 = vpop.permute.xlu0 %3011 }
 0x5f7   : > { %v6510_v42 = vpop.permute.xlu2 %3023  ;;  %v3034_v3 = vadd.f32 %v3012_v19, %v2954_v63 }
 0x5f8   : > { %v6503_v12 = vpop.permute.xlu1 %3019 }
 0x5f9   : > { %3101 = vrot.lane.b32.xlu0 %v3079_v44, %s4584_s6  ;;  %v4589_v44 = vmov 0.0  }
 0x5fa   : > { %696 = vst [vmem:[#allocation2] sm:$0xff] %v4589_v44 }
 0x5fb   : > { %698 = vst.msk [vmem:[#allocation2 + $0x8] sm:$0xff] %vm697_vm4, %v4589_v44 }
 0x5fc   : > { %700 = vst.msk [vmem:[#allocation2 + $0x18] sm:$0xff] %vm697_vm4, %v4589_v44 }
 0x5fd   : > { %699 = vst [vmem:[#allocation2 + $0x10] sm:$0xff] %v4589_v44  ;;  %v3261_v44 = vstv %s4100_s21  ;;  %s4110_s21 = sld [smem:[#allocation19 + $0x7]] }
 0x5fe   : > { %v3016_v40 = vpop.permute.xlu0 %3015 }
 0x5ff   : > { %v3136_v41 = vpop.permute.xlu2 %3135  ;;  %v3036_v23 = vadd.f32 %v3016_v40, %v2956_v36  ;;  %v2958_v40 = vmul.f32 %v6448_v9, %v6512_v57 }
 0x600   : > { %v3132_v54 = vpop.permute.xlu1 %3131 }
 0x601   : > { %3139 = vrot.lane.b32.xlu0 %v2998_v15, %s4587_s25  ;;  %v2960_v15 = vmul.f32 %v6450_v20, %v6512_v57  ;;  %v3038_v39 = vadd.f32 %v6503_v12, %v2958_v40 }
 0x603   : > { %v3040_v55 = vadd.f32 %v6510_v42, %v2960_v15 }
 0x608   : > { %v3134_v52 = vpop.permute.xlu1 %3133 }
 0x610   : > { %v3130_v58 = vpop.permute.xlu1 %3129 }
 0x618   : > { %v3138_v60 = vpop.permute.xlu1 %3137 }
 0x61d   : > { %v3094_v4 = vpop.permute.xlu0 %3093 }
 0x61e   : > { %v3115_v53 = vadd.f32 %v3094_v4, %v3035_v17 }
 0x620   : > { %v3092_v56 = vpop.permute.xlu1 %3091  ;;  %v3155_v48 = vadd.f32 %v3134_v52, %v3115_v53 }
 0x621   : > { %v3114_v22 = vadd.f32 %v3092_v56, %v3034_v3 }
 0x622   : > { %v3165_v47 = vadd.f32 %v6520_v51, %v3155_v48 }
 0x623   : > { %v3154_v43 = vadd.f32 %v3132_v54, %v3114_v22  ;;  %v3039_v54 = vadd.f32 %v6508_v30, %v2959_v13 }
 0x625   : > { %v3164_v24 = vadd.f32 %v6520_v51, %v3154_v43 }
 0x627   : > { %4338 = vtanh.f32 %v3164_v24  ;;  %v3218_v24 = vstv %s4097_s1  ;;  %s4111_s1 = sld [smem:[#allocation19 + $0x6]] }
 0x628   : > { %4340 = vtanh.f32 %v3165_v47  ;;  %v3142_v63 = vpop.permute.xlu1 %3141 }
 0x62d   : > { %v4339_v6 = vpop.eup %4338 }
 0x62e   : > { %v3090_v28 = vpop.permute.xlu2 %3089  ;;  %v4341_v25 = vpop.eup %4340  ;;  %v3187_v7 = vrot.slane %v4339_v6, 7  ;;  %v3221_v6 = vstv %s4098_s30  ;;  %s4107_s30 = sld [smem:[#allocation19 + $0x1]] }
 0x62f   : > { %v3113_v14 = vadd.f32 %v3090_v28, %v3033_v62  ;;  %v3190_v61 = vrot.slane %v4341_v25, 6  ;;  %v3224_v62 = vstv %s4099_s22  ;;  %s3295_s22 = sld [smem:[#allocation7]] }
 0x631   : > { %v3153_v5 = vadd.f32 %v3130_v58, %v3113_v14 }
 0x633   : > { %v3163_v37 = vadd.f32 %v6520_v51, %v3153_v5  ;;  %v3227_v5 = vstv %s3226_s29  ;;  %s4109_s29 = sld [smem:[#allocation19 + $0x8]] }
 0x635   : > { %4342 = vtanh.f32 %v3163_v37 }
 0x636   : > { %v3104_v49 = vpop.permute.xlu2 %3103 }
 0x637   : > { %v3120_v19 = vadd.f32 %v3104_v49, %v3040_v55 }
 0x63b   : > { %v4343_v18 = vpop.eup %4342 }
 0x63c   : > { %v3189_v8 = vsel %vm3188_vm0, %v3187_v7, %v4343_v18  ;;  %v3215_v18 = vstv %s4096_s24  ;;  %s4112_s24 = sld [smem:[#allocation19 + $0x5]]  ;;  %vm3525_vm0 = vcmask 1022976  }
 0x63d   : > { %v3096_v21 = vpop.permute.xlu0 %3095  ;;  %v3192_v59 = vsel %vm3191_vm1, %v3190_v61, %v3189_v8 }
 0x63e   : > { %v3116_v32 = vadd.f32 %v3096_v21, %v3036_v23  ;;  %v3144_v52 = vpop.permute.xlu2 %3143 }
 0x63f   : > { %v3160_v27 = vadd.f32 %v3144_v52, %v3120_v19  ;;  %v3296_v19 = vstv %s3295_s22  ;;  %s4106_s22 = sld [smem:[#allocation19 + $0x2]] }
 0x640   : > { %v3156_v46 = vadd.f32 %v3136_v41, %v3116_v32 }
 0x641   : > { %v3170_v3 = vadd.f32 %v6520_v51, %v3160_v27 }
 0x642   : > { %v3166_v45 = vadd.f32 %v6520_v51, %v3156_v46  ;;  %v3250_v46 = vstv %s3249_s18  ;;  %s4105_s18 = sld [smem:[#allocation19 + $0x3]] }
 0x644   : > { %4344 = vtanh.f32 %v3166_v45 }
 0x645   : > { %v3098_v26 = vpop.permute.xlu0 %3097 }
 0x646   : > { %v3117_v16 = vadd.f32 %v3098_v26, %v3037_v29 }
 0x648   : > { %v3157_v33 = vadd.f32 %v3138_v60, %v3117_v16  ;;  %v3270_v16 = vstv %s4103_s23  ;;  %s3318_s23 = sld [smem:[#allocation19]] }
 0x64a   : > { %v4345_v10 = vpop.eup %4344  ;;  %v3167_v31 = vadd.f32 %v6520_v51, %v3157_v33  ;;  %v3264_v33 = vstv %s4101_s26  ;;  %s6566_s26 = sld [smem:[#allocation22 + $0x1]] }
 0x64b   : > { %v3193_v35 = vrot.slane %v4345_v10, 5 }
 0x64c   : > { %4346 = vtanh.f32 %v3167_v31 }
 0x64d   : > { %v3195_v1 = vsel %vm3194_vm2, %v3193_v35, %v3192_v59  ;;  %4348 = vtanh.f32 %v3170_v3  ;;  %v3316_v3 = vstv %s4107_s30  ;;  %s4108_s30 = sld [smem:[#allocation19 + $0x9]] }
 0x652   : > { %v4347_v2 = vpop.eup %4346 }
 0x653   : > { %v3196_v38 = vrot.slane %v4347_v2, 4  ;;  %v4349_v22 = vpop.eup %4348 }
 0x654   : > { %v3205_v12 = vrot.slane %v4349_v22, 1  ;;  %v3310_v22 = vstv %s4105_s18  ;;  %s4113_s18 = sld [smem:[#allocation21 + $0x1]] }
 0x655   : > { %v3198_v50 = vsel %vm3197_vm3, %v3196_v38, %v3195_v1  ;;  %v3273_v1 = vstv %s3272_s27  ;;  %v3267_v38 = vstv %s4102_s8  ;;  %s6573_s27 = sld [smem:[#allocation22 + $0x11]] }
 0x656   : > { %s6586_s8 = sld [smem:[#allocation22 + $0xf]] }
 0x663   : > { %v3100_v0 = vpop.permute.xlu0 %3099 }
 0x664   : > { %v3118_v20 = vadd.f32 %v3100_v0, %v3038_v39  ;;  %v3349_v39 = vstv %s4109_s29  ;;  %s6599_s29 = sld [smem:[#allocation22 + $0x16]] }
 0x66b   : > { %v3102_v58 = vpop.permute.xlu0 %3101 }
 0x66c   : > { %v3119_v60 = vadd.f32 %v3102_v58, %v3039_v54 }
 0x66e   : > { %v3159_v56 = vadd.f32 %v3142_v63, %v3119_v60 }
 0x670   : > { %v3169_v4 = vadd.f32 %v6520_v51, %v3159_v56  ;;  %v3355_v56 = vstv %s4111_s1  ;;  %s6597_s1 = sld [smem:[#allocation22 + $0x2]] }
 0x672   : > { %4350 = vtanh.f32 %v3169_v4 }
 0x673   : > { %v3140_v30 = vpop.permute.xlu0 %3139 }
 0x674   : > { %v3158_v17 = vadd.f32 %v3140_v30, %v3118_v20 }
 0x676   : > { %v3168_v42 = vadd.f32 %v6520_v51, %v3158_v17 }
 0x678   : > { %4352 = vtanh.f32 %v3168_v42  ;;  %v4351_v41 = vpop.eup %4350  ;;  %v3358_v42 = vstv %s4112_s24  ;;  %s6616_s24 = sld [smem:[#allocation22 + $0x10]] }
 0x679   : > { %v3202_v53 = vrot.slane %v4351_v41, 2 }
 0x67e   : > { %v4353_v9 = vpop.eup %4352 }
 0x67f   : > { %v3199_v57 = vrot.slane %v4353_v9, 3 }
 0x681   : > { %v3201_v43 = vsel %vm3200_vm5, %v3199_v57, %v3198_v50  ;;  %v3319_v57 = vstv %s3318_s23  ;;  %s6627_s23 = sld [smem:[#allocation22 + $0x3]] }
 0x682   : > { %v3204_v48 = vsel %vm3203_vm6, %v3202_v53, %v3201_v43  ;;  %v3412_v43 = vstv %s6566_s26  ;;  %s4143_s26 = sld [smem:[#allocation22 + $0x19]] }
 0x683   : > { %v3207_v11 = vsel %vm3206_vm7, %v3205_v12, %v3204_v48  ;;  %v6570_v12 = vld [vmem:[#allocation2 + $0x8] sm:$0xff] }
 0x684   : > { %3208 = vrot.lane.b32.xlu0 %v3207_v11, %s4583_s28  ;;  %v3414_v48 = vmul.f32 %v3412_v43, %v6570_v12  ;;  %v6579_v11 = vld [vmem:[#allocation2 + $0x18] sm:$0xff] }
 0x6f6   : > { %v3209_v51 = vpop.permute.xlu0 %3208 }
 0x6f7   : > { %3212 = vst.msk [vmem:[#allocation2] sm:$0xff] %vm3211_vm8, %v3209_v51  ;;  %v3427_v51 = vstv %s6573_s27  ;;  %s4128_s27 = sld [smem:[#allocation22 + $0x18]] }
 0x6fe   : > { %v3213_v47 = vld [vmem:[#allocation2] sm:$0xff] }
 0x6ff   : > { %v3225_v28 = vmul.f32 %v3224_v62, %v3213_v47  ;;  %v3219_v14 = vmul.f32 %v3218_v24, %v3213_v47  ;;  %v3228_v37 = vmul.f32 %v3227_v5, %v3213_v47  ;;  %v3222_v25 = vmul.f32 %v3221_v6, %v3213_v47 }
 0x700   : > { %v3216_v23 = vmul.f32 %v3215_v18, %v3213_v47  ;;  %v3429_v62 = vmul.f32 %v3427_v51, %v6579_v11  ;;  %v3435_v24 = vstv %s6586_s8  ;;  %v3313_v6 = vstv %s4106_s22  ;;  %s6631_s22 = sld [smem:[#allocation22 + $0x1b]] }
 0x701   : > { %3235 = vrot.lane.b32.xlu1 %v3225_v28, %s4582_s12  ;;  %3230 = vrot.lane.b32.xlu2 %v3219_v14, %s4582_s12  ;;  %v3437_v47 = vmul.f32 %v3435_v24, %v6579_v11  ;;  %v3352_v28 = vstv %s4110_s21  ;;  %s4104_s21 = sld [smem:[#allocation19 + $0x4]] }
 0x702   : > { %s6723_s8 = sld [smem:[#allocation22 + $0x8]] }
 0x709   : > { %3245 = vrot.lane.b32.xlu1 %v3228_v37, %s4587_s25 }
 0x75b   : > { %v3231_v61 = vpop.permute.xlu2 %3230 }
 0x75c   : > { %v3233_v8 = vadd.f32 %v3231_v61, %v3216_v23 }
 0x773   : > { %v3236_v36 = vpop.permute.xlu1 %3235 }
 0x774   : > { %v3238_v7 = vadd.f32 %v3236_v36, %v3222_v25 }
 0x776   : > { %3240 = vrot.lane.b32.xlu0 %v3238_v7, %s4584_s6 }
 0x77b   : > { %v3246_v32 = vpop.permute.xlu1 %3245 }
 0x7e8   : > { %v3241_v21 = vpop.permute.xlu0 %3240 }
 0x7e9   : > { %v3243_v59 = vadd.f32 %v3241_v21, %v3233_v8  ;;  %v3408_v8 = vstv %s6597_s1  ;;  %v3559_v21 = vstv %s6599_s29  ;;  %s4139_s29 = sld [smem:[#allocation22 + $0x1d]] }
 0x7ea   : > { %s4114_s1 = sld [smem:[#allocation22 + $0x4]] }
 0x7eb   : > { %v3248_v34 = vadd.f32 %v3246_v32, %v3243_v59  ;;  %v3561_v59 = vmul.f32 %v3559_v21, %v6579_v11 }
 0x7ed   : > { %v3251_v45 = vadd.f32 %v3250_v46, %v3248_v34  ;;  %v3410_v46 = vmul.f32 %v3408_v8, %v6570_v12 }
 0x7ef   : > { %4354 = vtanh.f32 %v3251_v45 }
 0x7f5   : > { %v4355_v29 = vpop.eup %4354 }
 0x7f6   : > { %3254 = vrot.lane.b32.xlu2 %v4355_v29, %s4583_s28  ;;  %v3346_v29 = vstv %s4108_s30  ;;  %s6633_s30 = sld [smem:[#allocation22 + $0x12]] }
 0x850   : > { %v3255_v26 = vpop.permute.xlu2 %3254 }
 0x851   : > { %3258 = vst.msk [vmem:[#allocation2] sm:$0xff] %vm3257_vm9, %v3255_v26  ;;  %v3431_v26 = vstv %s6616_s24  ;;  %s4136_s24 = sld [smem:[#allocation22 + $0xc]] }
 0x858   : > { %v3259_v10 = vld [vmem:[#allocation2] sm:$0xff] }
 0x859   : > { %v3271_v31 = vmul.f32 %v3270_v16, %v3259_v10  ;;  %v3265_v35 = vmul.f32 %v3264_v33, %v3259_v10  ;;  %v3274_v2 = vmul.f32 %v3273_v1, %v3259_v10  ;;  %v3268_v50 = vmul.f32 %v3267_v38, %v3259_v10 }
 0x85a   : > { %v3262_v15 = vmul.f32 %v3261_v44, %v3259_v10  ;;  %v3433_v16 = vmul.f32 %v3431_v26, %v6579_v11  ;;  %v3381_v38 = vstv %s4113_s18  ;;  %v3404_v44 = vstv %s6627_s23  ;;  %s3341_s18 = sld [smem:[#allocation21]] }
 0x85b   : > { %3281 = vrot.lane.b32.xlu0 %v3271_v31, %s4582_s12  ;;  %3276 = vrot.lane.b32.xlu1 %v3265_v35, %s4582_s12  ;;  %s6648_s23 = sld [smem:[#allocation22 + $0xb]] }
 0x863   : > { %3291 = vrot.lane.b32.xlu0 %v3274_v2, %s4587_s25 }
 0x8cd   : > { %v3282_v49 = vpop.permute.xlu0 %3281  ;;  %v3277_v13 = vpop.permute.xlu1 %3276 }
 0x8ce   : > { %v3284_v0 = vadd.f32 %v3282_v49, %v3268_v50  ;;  %v3279_v54 = vadd.f32 %v3277_v13, %v3262_v15  ;;  %v3406_v13 = vmul.f32 %v3404_v44, %v6570_v12  ;;  %v3307_v15 = vstv %s4104_s21  ;;  %s6650_s21 = sld [smem:[#allocation22 + $0x6]] }
 0x8d0   : > { %3286 = vrot.lane.b32.xlu2 %v3284_v0, %s4584_s6 }
 0x8d5   : > { %v3292_v58 = vpop.permute.xlu0 %3291 }
 0x92a   : > { %v3287_v55 = vpop.permute.xlu2 %3286 }
 0x92b   : > { %v3289_v52 = vadd.f32 %v3287_v55, %v3279_v54 }
 0x92d   : > { %v3294_v60 = vadd.f32 %v3292_v58, %v3289_v52  ;;  %v3686_v52 = vstv %s6631_s22  ;;  %s4118_s22 = sld [smem:[#allocation22 + $0x13]] }
 0x92f   : > { %v3297_v40 = vadd.f32 %v3296_v19, %v3294_v60 }
 0x931   : > { %4356 = vtanh.f32 %v3297_v40  ;;  %v3688_v40 = vmul.f32 %v3686_v52, %v6579_v11 }
 0x937   : > { %v4357_v63 = vpop.eup %4356 }
 0x938   : > { %3300 = vrot.lane.b32.xlu1 %v4357_v63, %s4583_s28  ;;  %v3423_v63 = vstv %s6633_s30  ;;  %s4135_s30 = sld [smem:[#allocation22 + $0xd]] }
 0x9aa   : > { %v3301_v27 = vpop.permute.xlu1 %3300 }
 0x9ab   : > { %3304 = vst.msk [vmem:[#allocation2] sm:$0xff] %vm3303_vm10, %v3301_v27  ;;  %v3342_v27 = vstv %s3341_s18  ;;  %s4140_s18 = sld [smem:[#allocation22 + $0x1c]] }
 0x9b2   : > { %v6554_v20 = vld [vmem:[#allocation2] sm:$0xff] }
 0x9b3   : > { %v3356_v4 = vmul.f32 %v3355_v56, %v6554_v20  ;;  %v3350_v30 = vmul.f32 %v3349_v39, %v6554_v20  ;;  %v3317_v17 = vmul.f32 %v3316_v3, %v6554_v20  ;;  %v3359_v41 = vmul.f32 %v3358_v42, %v6554_v20 }
 0x9b4   : > { %v3311_v9 = vmul.f32 %v3310_v22, %v6554_v20  ;;  %v3320_v53 = vmul.f32 %v3319_v57, %v6554_v20  ;;  %v3353_v14 = vmul.f32 %v3352_v28, %v6554_v20  ;;  %v3314_v25 = vmul.f32 %v3313_v6, %v6554_v20 }
 0x9b5   : > { %3366 = vrot.lane.b32.xlu2 %v3356_v4, %s4582_s12  ;;  %3361 = vrot.lane.b32.xlu0 %v3350_v30, %s4582_s12  ;;  %v3347_v33 = vmul.f32 %v3346_v29, %v6554_v20  ;;  %v3308_v55 = vmul.f32 %v3307_v15, %v6554_v20  ;;  %v3425_v39 = vmul.f32 %v3423_v63, %v6579_v11  ;;  %v3671_v30 = vstv %s6648_s23  ;;  %s6669_s23 = sld [smem:[#allocation22 + $0x17]] }
 0x9b6   : > { %3327 = vrot.lane.b32.xlu1 %v3317_v17, %s4582_s12  ;;  %v3544_v17 = vstv %s6650_s21  ;;  %v3673_v22 = vmul.f32 %v3671_v30, %v6570_v12  ;;  %v3682_v6 = vstv %s4140_s18  ;;  %s6683_s21 = sld [smem:[#allocation22 + $0x14]] }
 0x9b7   : > { %s6793_s18 = sld [smem:[#allocation22 + $0x5]] }
 0x9bd   : > { %3376 = vrot.lane.b32.xlu0 %v3359_v41, %s4587_s25  ;;  %v3546_v41 = vmul.f32 %v3544_v17, %v6570_v12 }
 0x9be   : > { %3322 = vrot.lane.b32.xlu1 %v3311_v9, %s4582_s12 }
 0x9c5   : > { %3337 = vrot.lane.b32.xlu0 %v3320_v53, %s4587_s25 }
 0x9cd   : > { %3452 = vrot.lane.b32.xlu0 %v3414_v48, %s4582_s12 }
 0x9d5   : > { %3469 = vrot.lane.b32.xlu0 %v3429_v62, %s4582_s12  ;;  %v3420_v62 = vstv %s4118_s22  ;;  %s6770_s22 = sld [smem:[#allocation22 + $0x7]] }
 0x9dd   : > { %3480 = vrot.lane.b32.xlu0 %v3437_v47, %s4582_s12 }
 0x9e5   : > { %3710 = vrot.lane.b32.xlu0 %v3673_v22, %s4582_s12 }
 0xa0f   : > { %v3367_v5 = vpop.permute.xlu2 %3366 }
 0xa10   : > { %v3369_v37 = vadd.f32 %v3367_v5, %v3353_v14 }
 0xa12   : > { %3371 = vrot.lane.b32.xlu2 %v3369_v37, %s4584_s6 }
 0xa27   : > { %v3362_v18 = vpop.permute.xlu0 %3361 }
 0xa28   : > { %v3328_v36 = vpop.permute.xlu1 %3327  ;;  %v3364_v35 = vadd.f32 %v3362_v18, %v3347_v33 }
 0xa29   : > { %v3330_v7 = vadd.f32 %v3328_v36, %v3314_v25 }
 0xa2b   : > { %3332 = vrot.lane.b32.xlu2 %v3330_v7, %s4584_s6  ;;  %v3555_v7 = vstv %s6669_s23  ;;  %s6806_s23 = sld [smem:[#allocation22 + $0x15]] }
 0xa2f   : > { %v3377_v61 = vpop.permute.xlu0 %3376 }
 0xa30   : > { %v3323_v54 = vpop.permute.xlu1 %3322 }
 0xa31   : > { %v3325_v58 = vadd.f32 %v3323_v54, %v3308_v55 }
 0xa33   : > { %3600 = vrot.lane.b32.xlu2 %v3561_v59, %s4582_s12  ;;  %v3557_v59 = vmul.f32 %v3555_v7, %v6579_v11 }
 0xa37   : > { %v3338_v23 = vpop.permute.xlu0 %3337 }
 0xa3f   : > { %v6606_v32 = vpop.permute.xlu0 %3452 }
 0xa40   : > { %v3458_v34 = vadd.f32 %v6606_v32, %v3410_v46  ;;  %v3567_v46 = vstv %s6683_s21  ;;  %s3529_s21 = sld [smem:[#allocation24]] }
 0xa42   : > { %3491 = vrot.lane.b32.xlu2 %v3458_v34, %s4584_s6  ;;  %v3569_v34 = vmul.f32 %v3567_v46, %v6579_v11 }
 0xa47   : > { %v6614_v45 = vpop.permute.xlu0 %3469 }
 0xa48   : > { %v3475_v20 = vadd.f32 %v6614_v45, %v3425_v39 }
 0xa4f   : > { %v6623_v10 = vpop.permute.xlu0 %3480 }
 0xa50   : > { %v3486_v31 = vadd.f32 %v6623_v10, %v3433_v16  ;;  %v3694_v16 = vstv %s4143_s26  ;;  %s6868_s26 = scalar_lea.vmem %s6923_s17, %s4046_s19  ;;  %s4134_s19 = sld [smem:[#allocation22 + $0xe]] }
 0xa51   : > { %v3696_v33 = vmul.f32 %v3694_v16, %v6579_v11 }
 0xa52   : > { %3523 = vrot.lane.b32.xlu2 %v3486_v31, %s4588_s10 }
 0xa6c   : > { %v3372_v1 = vpop.permute.xlu2 %3371 }
 0xa6d   : > { %v3374_v2 = vadd.f32 %v3372_v1, %v3364_v35  ;;  %v3552_v1 = vstv %s4128_s27  ;;  %s4144_s27 = sld [smem:[#allocation24 + $0x2]] }
 0xa6f   : > { %v3379_v50 = vadd.f32 %v3377_v61, %v3374_v2 }
 0xa71   : > { %v3382_v49 = vadd.f32 %v3381_v38, %v3379_v50 }
 0xa73   : > { %4358 = vtanh.f32 %v3382_v49 }
 0xa79   : > { %v4359_v0 = vpop.eup %4358 }
 0xa7a   : > { %3391 = vrot.lane.b32.xlu1 %v4359_v0, %s4583_s28 }
 0xa82   : > { %3442 = vrot.lane.b32.xlu1 %v3406_v13, %s4582_s12 }
 0xa85   : > { %v3333_v19 = vpop.permute.xlu2 %3332 }
 0xa86   : > { %v3335_v60 = vadd.f32 %v3333_v19, %v3325_v58 }
 0xa88   : > { %v3340_v56 = vadd.f32 %v3338_v23, %v3335_v60  ;;  %v3684_v23 = vmul.f32 %v3682_v6, %v6579_v11 }
 0xa8a   : > { %v3343_v3 = vadd.f32 %v3342_v27, %v3340_v56  ;;  %3727 = vrot.lane.b32.xlu1 %v3688_v40, %s4582_s12 }
 0xa8c   : > { %4360 = vtanh.f32 %v3343_v3 }
 0xa8d   : > { %v6654_v42 = vpop.permute.xlu2 %3600 }
 0xa8e   : > { %v3606_v29 = vadd.f32 %v6654_v42, %v3557_v59 }
 0xa92   : > { %v4361_v4 = vpop.eup %4360  ;;  %3501 = vrot.lane.b32.xlu1 %v3475_v20, %s4585_s0 }
 0xa93   : > { %3385 = vrot.lane.b32.xlu2 %v4361_v4, %s4583_s28 }
 0xa9a   : > { %3583 = vrot.lane.b32.xlu1 %v3546_v41, %s4582_s12 }
 0xa9c   : > { %v6660_v9 = vpop.permute.xlu2 %3491 }
 0xaac   : > { %v6662_v57 = vpop.permute.xlu2 %3523 }
 0xaec   : > { %v3392_v53 = vpop.permute.xlu1 %3391 }
 0xaed   : > { %3395 = vst.msk [vmem:[#allocation2 + $0x10] sm:$0xff] %vm3388_vm11, %v3392_v53  ;;  %v3386_v48 = vpop.permute.xlu2 %3385 }
 0xaee   : > { %3389 = vst.msk [vmem:[#allocation2] sm:$0xff] %vm3388_vm11, %v3386_v48 }
 0xaf4   : > { %v6664_v47 = vld [vmem:[#allocation2 + $0x10] sm:$0xff]  ;;  %v6678_v25 = vpop.permute.xlu1 %3442 }
 0xaf5   : > { %v6666_v28 = vld [vmem:[#allocation2] sm:$0xff]  ;;  %v3421_v14 = vmul.f32 %v3420_v62, %v6664_v47  ;;  %v6681_v36 = vmul.f32 %v3682_v6, %v6664_v47  ;;  %v3428_v18 = vmul.f32 %v3427_v51, %v6664_v47  ;;  %v3687_v61 = vmul.f32 %v3686_v52, %v6664_v47 }
 0xaf6   : > { %v3413_v5 = vmul.f32 %v3412_v43, %v6666_v28  ;;  %v3405_v37 = vmul.f32 %v3404_v44, %v6666_v28  ;;  %v3560_v43 = vmul.f32 %v3559_v21, %v6664_v47  ;;  %v3436_v31 = vmul.f32 %v3435_v24, %v6664_v47 }
 0xaf7   : > { %3460 = vrot.lane.b32.xlu1 %v3421_v14, %s4583_s28  ;;  %v3545_v35 = vmul.f32 %v3544_v17, %v6666_v28  ;;  %v3553_v2 = vmul.f32 %v3552_v1, %v6664_v47  ;;  %v3672_v38 = vmul.f32 %v3671_v30, %v6666_v28  ;;  %v3695_v50 = vmul.f32 %v3694_v16, %v6664_v47 }
 0xaf8   : > { %3450 = vrot.lane.b32.xlu2 %v3413_v5, %s4582_s12  ;;  %3440 = vrot.lane.b32.xlu0 %v3405_v37, %s4582_s12  ;;  %v3679_v24 = vstv %s4139_s29  ;;  %v3568_v49 = vmul.f32 %v3567_v46, %v6664_v47  ;;  %v3536_v44 = vstv %s6723_s8  ;;  %v3409_v54 = vmul.f32 %v3408_v8, %v6666_v28 }
 0xaf9   : > { %v3680_v0 = vmul.f32 %v3679_v24, %v6664_v47  ;;  %v3537_v13 = vmul.f32 %v3536_v44, %v6666_v28  ;;  %v3424_v19 = vmul.f32 %v3423_v63, %v6664_v47  ;;  %v3401_v63 = vstv %s4114_s1 }
 0xafa   : > { %v3432_v4 = vmul.f32 %v3431_v26, %v6664_v47  ;;  %v3402_v22 = vmul.f32 %v3401_v63, %v6666_v28  ;;  %v3556_v26 = vmul.f32 %v3555_v7, %v6664_v47  ;;  %v3663_v5 = vstv %s4135_s30 }
 0xafb   : > { %v3540_v7 = vstv %s6770_s22  ;;  %v3667_v46 = vstv %s4136_s24 }
 0xafc   : > { %v6700_v21 = vpop.permute.xlu1 %3727 }
 0xafd   : > { %v3733_v51 = vadd.f32 %v6700_v21, %v3684_v23  ;;  %v3538_v23 = vmul.f32 %v3536_v44, %v6570_v12 }
 0xaff   : > { %3598 = vrot.lane.b32.xlu1 %v3560_v43, %s4582_s12 }
 0xb00   : > { %3467 = vrot.lane.b32.xlu2 %v3428_v18, %s4582_s12  ;;  %3725 = vrot.lane.b32.xlu0 %v3687_v61, %s4582_s12  ;;  %v3664_v18 = vmul.f32 %v3663_v5, %v6666_v28  ;;  %v3542_v61 = vmul.f32 %v3540_v7, %v6570_v12 }
 0xb04   : > { %v6738_v58 = vpop.permute.xlu1 %3501 }
 0xb07   : > { %3631 = vrot.lane.b32.xlu1 %v3606_v29, %s4585_s0 }
 0xb08   : > { %3611 = vrot.lane.b32.xlu2 %v3569_v34, %s4582_s12  ;;  %3758 = vrot.lane.b32.xlu0 %v3733_v51, %s4585_s0  ;;  %v3669_v34 = vmul.f32 %v3667_v46, %v6570_v12 }
 0xb0c   : > { %v3584_v8 = vpop.permute.xlu1 %3583 }
 0xb0f   : > { %3738 = vrot.lane.b32.xlu1 %v3696_v33, %s4582_s12  ;;  %v3668_v33 = vmul.f32 %v3667_v46, %v6666_v28 }
 0xb10   : > { %3478 = vrot.lane.b32.xlu2 %v3436_v31, %s4582_s12  ;;  %3581 = vrot.lane.b32.xlu0 %v3545_v35, %s4582_s12 }
 0xb17   : > { %3591 = vrot.lane.b32.xlu1 %v3553_v2, %s4583_s28  ;;  %v3548_v2 = vstv %s6793_s18 }
 0xb18   : > { %3708 = vrot.lane.b32.xlu2 %v3672_v38, %s4582_s12  ;;  %3736 = vrot.lane.b32.xlu0 %v3695_v50, %s4582_s12  ;;  %v3549_v24 = vmul.f32 %v3548_v2, %v6666_v28 }
 0xb1f   : > { %3609 = vrot.lane.b32.xlu1 %v3568_v49, %s4582_s12  ;;  %v3541_v49 = vmul.f32 %v3540_v7, %v6666_v28 }
 0xb20   : > { %3718 = vrot.lane.b32.xlu2 %v3680_v0, %s4583_s28  ;;  %s6745_s28 = sld [smem:[#allocation22]] }
 0xb26   : > { %v3416_v39 = vstv %s6745_s28 }
 0xb27   : > { %v3417_v3 = vmul.f32 %v3416_v39, %v6666_v28 }
 0xb28   : > { %3572 = vrot.lane.b32.xlu2 %v3537_v13, %s4582_s12 }
 0xb52   : > { %v3451_v15 = vpop.permute.xlu2 %3450 }
 0xb53   : > { %v3454_v55 = vsel %vm3444_vm12, %v3451_v15, %v6606_v32  ;;  %v3711_v32 = vpop.permute.xlu0 %3710 }
 0xb54   : > { %v3457_v52 = vadd.f32 %v3454_v55, %v3409_v54  ;;  %v3716_v35 = vadd.f32 %v3711_v32, %v3669_v34 }
 0xb56   : > { %3489 = vrot.lane.b32.xlu1 %v3457_v52, %s4584_s6 }
 0xb5a   : > { %v3468_v60 = vpop.permute.xlu2 %3467 }
 0xb5b   : > { %v3471_v40 = vsel %vm3444_vm12, %v3468_v60, %v6614_v45 }
 0xb5c   : > { %v3474_v27 = vadd.f32 %v3471_v40, %v3424_v19  ;;  %v3563_v19 = vstv %s6806_s23 }
 0xb5d   : > { %v3564_v60 = vmul.f32 %v3563_v19, %v6664_v47 }
 0xb5e   : > { %3499 = vrot.lane.b32.xlu0 %v3474_v27, %s4585_s0 }
 0xb62   : > { %v6748_v56 = vpop.permute.xlu2 %3611 }
 0xb69   : > { %v6754_v20 = vpop.permute.xlu1 %3460 }
 0xb6a   : > { %v6757_v45 = vadd.f32 %v6754_v20, %v3417_v3  ;;  %v3479_v30 = vpop.permute.xlu2 %3478  ;;  %v3441_v17 = vpop.permute.xlu0 %3440 }
 0xb6b   : > { %v3482_v41 = vsel %vm3444_vm12, %v3479_v30, %v6623_v10  ;;  %v3445_v53 = vsel %vm3444_vm12, %v3441_v17, %v6678_v25 }
 0xb6c   : > { %v3485_v48 = vadd.f32 %v3482_v41, %v3432_v4  ;;  %v6767_v62 = vadd.f32 %v3445_v53, %v3402_v22 }
 0xb6e   : > { %3521 = vrot.lane.b32.xlu1 %v3485_v48, %s4588_s10 }
 0xb71   : > { %v3599_v14 = vpop.permute.xlu1 %3598 }
 0xb72   : > { %v3602_v37 = vsel %vm3444_vm12, %v3599_v14, %v6654_v42  ;;  %v3726_v10 = vpop.permute.xlu0 %3725  ;;  %v3709_v51 = vpop.permute.xlu2 %3708 }
 0xb73   : > { %v3605_v6 = vadd.f32 %v3602_v37, %v3556_v26  ;;  %v3729_v25 = vsel %vm3444_vm12, %v3726_v10, %v6700_v21  ;;  %v3589_v21 = vadd.f32 %v3584_v8, %v3542_v61  ;;  %v3712_v29 = vsel %vm3444_vm12, %v3709_v51, %v3711_v32 }
 0xb74   : > { %v3732_v43 = vadd.f32 %v3729_v25, %v6681_v36  ;;  %v3665_v36 = vmul.f32 %v3663_v5, %v6570_v12  ;;  %v3715_v1 = vadd.f32 %v3712_v29, %v3668_v33  ;;  %v3565_v5 = vmul.f32 %v3563_v19, %v6579_v11 }
 0xb75   : > { %3629 = vrot.lane.b32.xlu0 %v3605_v6, %s4585_s0  ;;  %v3550_v37 = vmul.f32 %v3548_v2, %v6570_v12 }
 0xb76   : > { %3699 = vrot.lane.b32.xlu1 %v3664_v18, %s4582_s12  ;;  %3756 = vrot.lane.b32.xlu2 %v3732_v43, %s4585_s0  ;;  %s6798_s0 = sld [smem:[#allocation22 + $0x1a]] }
 0xb79   : > { %v6786_v42 = vpop.permute.xlu1 %3631 }
 0xb7a   : > { %v6789_v59 = vpop.permute.xlu0 %3758  ;;  %v3719_v32 = vpop.permute.xlu2 %3718 }
 0xb7c   : > { %v3690_v38 = vstv %s6798_s0 }
 0xb7d   : > { %3574 = vrot.lane.b32.xlu0 %v3538_v23, %s4582_s12  ;;  %v3691_v13 = vmul.f32 %v3690_v38, %v6664_v47  ;;  %v3418_v47 = vmul.f32 %v3416_v39, %v6570_v12 }
 0xb7e   : > { %3622 = vrot.lane.b32.xlu1 %v3589_v21, %s4584_s6  ;;  %3701 = vrot.lane.b32.xlu2 %v3665_v36, %s4582_s12  ;;  %s4138_s12 = sld [smem:[#allocation22 + $0xa]] }
 0xb7f   : > { %v3464_v26 = vadd.f32 %v6754_v20, %v3418_v47 }
 0xb81   : > { %v6801_v16 = vpop.permute.xlu1 %3738 }
 0xb82   : > { %v3582_v31 = vpop.permute.xlu0 %3581  ;;  %v3573_v63 = vpop.permute.xlu2 %3572 }
 0xb83   : > { %v3585_v50 = vsel %vm3444_vm12, %v3582_v31, %v3584_v8 }
 0xb84   : > { %v3588_v54 = vadd.f32 %v3585_v50, %v3541_v49  ;;  %v3675_v3 = vstv %s4138_s12 }
 0xb85   : > { %3749 = vrot.lane.b32.xlu0 %v3716_v35, %s4584_s6  ;;  %v3676_v4 = vmul.f32 %v3675_v3, %v6666_v28  ;;  %v3677_v20 = vmul.f32 %v3675_v3, %v6570_v12 }
 0xb86   : > { %3747 = vrot.lane.b32.xlu2 %v3715_v1, %s4584_s6 }
 0xb87   : > { %v3721_v30 = vadd.f32 %v3719_v32, %v3676_v4  ;;  %v3722_v7 = vadd.f32 %v3719_v32, %v3677_v20 }
 0xb89   : > { %v3592_v0 = vpop.permute.xlu1 %3591 }
 0xb8a   : > { %v3594_v44 = vadd.f32 %v3592_v0, %v3549_v24  ;;  %v3737_v15 = vpop.permute.xlu0 %3736  ;;  %v3595_v39 = vadd.f32 %v3592_v0, %v3550_v37  ;;  %v3530_v0 = vstv %s3529_s21 }
 0xb8b   : > { %v3740_v55 = vsel %vm3444_vm12, %v3737_v15, %v6801_v16 }
 0xb8c   : > { %v3743_v52 = vadd.f32 %v3740_v55, %v3691_v13 }
 0xb8d   : > { %3620 = vrot.lane.b32.xlu0 %v3588_v54, %s4584_s6  ;;  %s4123_s6 = sld [smem:[#allocation22 + $0x9]] }
 0xb91   : > { %v3610_v40 = vpop.permute.xlu1 %3609 }
 0xb92   : > { %v3613_v27 = vsel %vm3444_vm12, %v3610_v40, %v6748_v56 }
 0xb93   : > { %v3616_v8 = vadd.f32 %v3613_v27, %v3564_v60  ;;  %v3533_v43 = vstv %s4123_s6 }
 0xb94   : > { %v3534_v61 = vmul.f32 %v3533_v43, %v6666_v28 }
 0xb95   : > { %3649 = vrot.lane.b32.xlu2 %v3616_v8, %s4588_s10 }
 0xbd0   : > { %v3757_v17 = vpop.permute.xlu2 %3756  ;;  %v3500_v22 = vpop.permute.xlu0 %3499 }
 0xbd1   : > { %v3763_v41 = vadd.f32 %v3757_v17, %v3721_v30  ;;  %v3507_v53 = vadd.f32 %v3500_v22, %v6757_v45  ;;  %v3504_v48 = vsel %vm3503_vm13, %v3500_v22, %v6738_v58  ;;  %v3617_v45 = vadd.f32 %v6748_v56, %v3565_v5 }
 0xbd2   : > { %v3508_v14 = vadd.f32 %v3504_v48, %v3464_v26  ;;  %v3692_v56 = vmul.f32 %v3690_v38, %v6579_v11  ;;  %v3760_v18 = vsel %vm3503_vm13, %v3757_v17, %v6789_v59  ;;  %v3490_v59 = vpop.permute.xlu1 %3489  ;;  %v3657_v30 = vstv %s4133_s20 }
 0xbd3   : > { %3767 = vrot.lane.b32.xlu0 %v3763_v41, %s4587_s25  ;;  %3511 = vrot.lane.b32.xlu2 %v3507_v53, %s4587_s25  ;;  %v3764_v36 = vadd.f32 %v3760_v18, %v3722_v7  ;;  %v3660_v41 = vstv %s4134_s19  ;;  %v3784_v18 = vstv %s4144_s27 }
 0xbd4   : > { %v3744_v21 = vadd.f32 %v6801_v16, %v3692_v56  ;;  %v3494_v16 = vsel %vm3493_vm14, %v3490_v59, %v6660_v9 }
 0xbd5   : > { %v3496_v1 = vadd.f32 %v3494_v16, %v6767_v62 }
 0xbd8   : > { %v3702_v11 = vpop.permute.xlu2 %3701 }
 0xbdb   : > { %3513 = vrot.lane.b32.xlu0 %v3508_v14, %s4587_s25 }
 0xbe0   : > { %v6853_v51 = vpop.permute.xlu2 %3747  ;;  %v3522_v29 = vpop.permute.xlu1 %3521 }
 0xbe1   : > { %v3526_v49 = vsel %vm3525_vm0, %v3522_v29, %v6662_v57 }
 0xbe3   : > { %3651 = vrot.lane.b32.xlu0 %v3617_v45, %s4588_s10  ;;  %v3661_v45 = vmul.f32 %v3660_v41, %v6666_v28 }
 0xbe7   : > { %v3630_v10 = vpop.permute.xlu0 %3629 }
 0xbe8   : > { %v3633_v6 = vsel %vm3503_vm13, %v3630_v10, %v6786_v42  ;;  %v3636_v58 = vadd.f32 %v3630_v10, %v3594_v44  ;;  %v3700_v35 = vpop.permute.xlu1 %3699 }
 0xbe9   : > { %v3637_v25 = vadd.f32 %v3633_v6, %v3595_v39  ;;  %v3703_v14 = vsel %vm3444_vm12, %v3700_v35, %v3702_v11 }
 0xbea   : > { %3640 = vrot.lane.b32.xlu1 %v3636_v58, %s4587_s25  ;;  %v3705_v6 = vadd.f32 %v3703_v14, %v3661_v45 }
 0xbeb   : > { %3642 = vrot.lane.b32.xlu2 %v3637_v25, %s4587_s25 }
 0xbef   : > { %v3575_v23 = vpop.permute.xlu0 %3574  ;;  %v3650_v33 = vpop.permute.xlu2 %3649 }
 0xbf0   : > { %v3576_v42 = vsel %vm3444_vm12, %v3573_v63, %v3575_v23  ;;  %v3623_v62 = vpop.permute.xlu1 %3622 }
 0xbf1   : > { %v3578_v12 = vadd.f32 %v3576_v42, %v3534_v61 }
 0xbf2   : > { %3769 = vrot.lane.b32.xlu1 %v3764_v36, %s4587_s25 }
 0xbf3   : > { %3778 = vrot.lane.b32.xlu2 %v3744_v21, %s4588_s10 }
 0xbf7   : > { %v6851_v46 = vpop.permute.xlu0 %3749 }
 0xbf8   : > { %v3751_v39 = vsel %vm3493_vm14, %v6853_v51, %v6851_v46 }
 0xbf9   : > { %v3753_v20 = vadd.f32 %v3751_v39, %v3705_v6 }
 0xbfa   : > { %3776 = vrot.lane.b32.xlu1 %v3743_v52, %s4588_s10 }
 0xbff   : > { %v3621_v34 = vpop.permute.xlu0 %3620 }
 0xc00   : > { %v3624_v19 = vsel %vm3493_vm14, %v3621_v34, %v3623_v62 }
 0xc01   : > { %v3626_v27 = vadd.f32 %v3624_v19, %v3578_v12 }
 0xc2d   : > { %v3512_v2 = vpop.permute.xlu2 %3511 }
 0xc45   : > { %v6855_v31 = vpop.permute.xlu0 %3767  ;;  %v3643_v40 = vpop.permute.xlu2 %3642 }
 0xc4d   : > { %v3514_v38 = vpop.permute.xlu0 %3513  ;;  %v3779_v28 = vpop.permute.xlu2 %3778 }
 0xc4e   : > { %v3516_v50 = vsel %vm3515_vm15, %v3512_v2, %v3514_v38 }
 0xc4f   : > { %v3518_v24 = vadd.f32 %v3516_v50, %v3496_v1 }
 0xc51   : > { %v3528_v44 = vadd.f32 %v3526_v49, %v3518_v24 }
 0xc53   : > { %v3531_v9 = vadd.f32 %v3530_v0, %v3528_v44 }
 0xc55   : > { %v3787_v13 = vrot.slane %v3531_v9, 1  ;;  %v3788_v15 = vrot.slane %v3531_v9, 2  ;;  %v3789_v54 = vrot.slane %v3531_v9, 3  ;;  %3801 = vst [vmem:[%s6868_s26] sm:$0x1] %v3531_v9  ;;  %v3790_v57 = vrot.slane %v3531_v9, 4  ;;  %v3652_v8 = vpop.permute.xlu0 %3651 }
 0xc56   : > { %v3791_v55 = vrot.slane %v3531_v9, 5  ;;  %v3792_v52 = vrot.slane %v3531_v9, 6  ;;  %v3793_v60 = vrot.slane %v3531_v9, 7  ;;  %v3653_v4 = vsel %vm3525_vm0, %v3650_v33, %v3652_v8 }
 0xc57   : > { %3802 = vst [vmem:[%s6868_s26 + $0x4] sm:$0x1] %v3787_v13 }
 0xc58   : > { %3803 = vst [vmem:[%s6868_s26 + $0x8] sm:$0x1] %v3788_v15 }
 0xc59   : > { %3804 = vst [vmem:[%s6868_s26 + $0xc] sm:$0x1] %v3789_v54 }
 0xc5a   : > { %3805 = vst [vmem:[%s6868_s26 + $0x10] sm:$0x1] %v3790_v57 }
 0xc5b   : > { %3806 = vst [vmem:[%s6868_s26 + $0x14] sm:$0x1] %v3791_v55 }
 0xc5c   : > { %3807 = vst [vmem:[%s6868_s26 + $0x18] sm:$0x1] %v3792_v52  ;;  %v3641_v32 = vpop.permute.xlu1 %3640 }
 0xc5d   : > { %3808 = vst [vmem:[%s6868_s26 + $0x1c] sm:$0x1] %v3793_v60  ;;  %v3644_v63 = vsel %vm3515_vm15, %v3641_v32, %v3643_v40 }
 0xc5e   : > { %v3646_v3 = vadd.f32 %v3644_v63, %v3626_v27 }
 0xc60   : > { %v3655_v17 = vadd.f32 %v3653_v4, %v3646_v3 }
 0xc62   : > { %v3658_v22 = vadd.f32 %v3657_v30, %v3655_v17 }
 0xc64   : > { %v3810_v53 = vrot.slane %v3658_v22, 1  ;;  %v3811_v47 = vrot.slane %v3658_v22, 2  ;;  %v3812_v48 = vrot.slane %v3658_v22, 3  ;;  %3824 = vst [vmem:[%s6868_s26 + $0x1] sm:$0x1] %v3658_v22  ;;  %v3770_v26 = vpop.permute.xlu1 %3769  ;;  %v3813_v5 = vrot.slane %v3658_v22, 4 }
 0xc65   : > { %v3814_v37 = vrot.slane %v3658_v22, 5  ;;  %v3815_v10 = vrot.slane %v3658_v22, 6  ;;  %v3816_v58 = vrot.slane %v3658_v22, 7  ;;  %v3771_v25 = vsel %vm3515_vm15, %v6855_v31, %v3770_v26 }
 0xc66   : > { %3825 = vst [vmem:[%s6868_s26 + $0x5] sm:$0x1] %v3810_v53  ;;  %v3773_v43 = vadd.f32 %v3771_v25, %v3753_v20 }
 0xc67   : > { %3826 = vst [vmem:[%s6868_s26 + $0x9] sm:$0x1] %v3811_v47 }
 0xc68   : > { %3827 = vst [vmem:[%s6868_s26 + $0xd] sm:$0x1] %v3812_v48 }
 0xc69   : > { %3828 = vst [vmem:[%s6868_s26 + $0x11] sm:$0x1] %v3813_v5 }
 0xc6a   : > { %3829 = vst [vmem:[%s6868_s26 + $0x15] sm:$0x1] %v3814_v37 }
 0xc6b   : > { %3830 = vst [vmem:[%s6868_s26 + $0x19] sm:$0x1] %v3815_v10 }
 0xc6c   : > { %3831 = vst [vmem:[%s6868_s26 + $0x1d] sm:$0x1] %v3816_v58  ;;  %v3777_v56 = vpop.permute.xlu1 %3776 }
 0xc6d   : > { %v3780_v7 = vsel %vm3525_vm0, %v3777_v56, %v3779_v28 }
 0xc6e   : > { %v3782_v61 = vadd.f32 %v3780_v7, %v3773_v43 }
 0xc70   : > { %v3785_v23 = vadd.f32 %v3784_v18, %v3782_v61 }
 0xc72   : > { %v3833_v36 = vrot.slane %v3785_v23, 1  ;;  %v3834_v42 = vrot.slane %v3785_v23, 2  ;;  %v3835_v21 = vrot.slane %v3785_v23, 3  ;;  %3847 = vst [vmem:[%s6868_s26 + $0x2] sm:$0x1] %v3785_v23  ;;  %v3836_v12 = vrot.slane %v3785_v23, 4 }
 0xc73   : > { %v3837_v11 = vrot.slane %v3785_v23, 5  ;;  %v3838_v46 = vrot.slane %v3785_v23, 6  ;;  %v3839_v59 = vrot.slane %v3785_v23, 7 }
 0xc74   : > { %3848 = vst [vmem:[%s6868_s26 + $0x6] sm:$0x1] %v3833_v36 }
 0xc75   : > { %3849 = vst [vmem:[%s6868_s26 + $0xa] sm:$0x1] %v3834_v42 }
 0xc76   : > { %3850 = vst [vmem:[%s6868_s26 + $0xe] sm:$0x1] %v3835_v21 }
 0xc77   : > { %3851 = vst [vmem:[%s6868_s26 + $0x12] sm:$0x1] %v3836_v12 }
 0xc78   : > { %3852 = vst [vmem:[%s6868_s26 + $0x16] sm:$0x1] %v3837_v11 }
 0xc79   : > { %3853 = vst [vmem:[%s6868_s26 + $0x1a] sm:$0x1] %v3838_v46 }
 0xc7a   : > { %3854 = vst [vmem:[%s6868_s26 + $0x1e] sm:$0x1] %v3839_v59 }
 0xc7b PF: > { %s38_s4 = sadd.s32 1, %s4569_s4  }
 0xc7c   : > { %p35_p7 = scmp.ge.s32.totalorder %s38_s4, 4  }
 0xc7e   :  { %37 = sbr.rel (!%p35_p7) target bundleno = 14 (0xe), region = 164 }
 0xc83   :  { %3877 = vsyncpa [#allocation9], 1 }
 0xc84   :  { %3879 = vsyncpa [#allocation9 + $0x1], 1 }
 0xc85   :  { %3880 = vsyncpa [#allocation11], 1 }
 0xc86   :  { %3881 = vsyncpa [#allocation14], 1 }
 0xc87   :  { %3882 = vsyncpa [#allocation17], 1 }
 0xc88   :  { %3883 = vsyncpa [#allocation20], 1 }
 0xc89   :  { %3884 = vsyncpa [#allocation23], 1 }

</bundles_post_ra>
